<compile_context>
chip_gen: v7x
topology: tpu7x:2x2x1
jax: 0.10.0
libtpu: 0.0.40
codegen_flags: <defaults>
</compile_context>

<pallas_src>
import jax
import jax.numpy as jnp
from jax.experimental import pallas as pl
from jax.experimental.pallas import tpu as pltpu

LN_EPS = 1e-5


def _mm(a, w):
    """MXU matmul: cast the activation to the weight's dtype (bf16), f32 acc."""
    return jnp.dot(a.astype(w.dtype), w, preferred_element_type=jnp.float32)


def _ln_relu(h, gamma, beta):
    """LayerNorm over the last axis + ReLU, all in f32.

    Single-pass mean / mean-of-squares (the two cross-lane reductions have no
    data dependence so they co-issue on the XLU); rsqrt goes to the EUP.
    Activations here are O(1)-scale, so E[x^2]-E[x]^2 (clamped >= 0) is safe.
    """
    inv_l = 1.0 / h.shape[-1]
    mean = jnp.sum(h, axis=-1, keepdims=True) * inv_l
    meansq = jnp.sum(h * h, axis=-1, keepdims=True) * inv_l
    var = jnp.maximum(meansq - mean * mean, 0.0)
    hn = (h - mean) * jax.lax.rsqrt(var + LN_EPS)
    return jnp.maximum(hn * gamma + beta, 0.0)


def _fused_subgraph_kernel(x_ref, w1_ref, w2t_ref, w2b_ref, w3t_ref, w3b_ref,
                           vec_ref, o_ref):
    bb, V, L1 = x_ref.shape
    L2, L3 = 2 * L1, 4 * L1

    # Packed bias / gamma / beta blob: one (9, 4*L1) f32 load, static slices.
    vecs = vec_ref[...]
    b1, g1, be1 = vecs[0:1, :L1], vecs[1:2, :L1], vecs[2:3, :L1]
    b2, g2, be2 = vecs[3:4, :L2], vecs[4:5, :L2], vecs[5:6, :L2]
    b3, g3, be3 = vecs[6:7, :L3], vecs[7:8, :L3], vecs[8:9, :L3]

    # ---------------- layer 1: h1 = relu(LN(x @ W1 + b1)) ----------------
    # Reshape while still f32 (layout no-op for (8,128)-tiled data), cast at dot.
    x2d = x_ref[...].reshape(bb * V, L1)
    h = _mm(x2d, w1_ref[...]).reshape(bb, V, L1) + b1
    h1 = _ln_relu(h, g1, be1)                         # (bb, V, L1) f32
    p1 = jnp.max(h1, axis=1)                          # (bb, L1)   max over V

    # ---------------- layer 2 ----------------
    # layer-2 input is concat([bcast_V(p1), h1]); the pooled half is constant
    # over V, so it is a 1-row-per-batch matmul with the top half of W2.
    z2 = _mm(p1, w2t_ref[...])                                        # (bb, L2)
    h = _mm(h1.reshape(bb * V, L1), w2b_ref[...]).reshape(bb, V, L2)
    h = h + z2[:, None, :] + b2
    h2 = _ln_relu(h, g2, be2)                                         # (bb, V, L2)
    p2 = jnp.max(h2, axis=1)                                          # (bb, L2)

    # ---------------- layer 3 ----------------
    z3 = _mm(p2, w3t_ref[...])                                        # (bb, L3)
    h = _mm(h2.reshape(bb * V, L2), w3b_ref[...]).reshape(bb, V, L3)
    h = h + z3[:, None, :] + b3
    h3 = _ln_relu(h, g3, be3)                                         # (bb, V, L3)
    p3 = jnp.max(h3, axis=1)                                          # (bb, L3)

    # Final max-pool over V of concat([bcast_V(p3), h3]) == concat([p3, p3]).
    # Two direct 128-lane-aligned stores; no concatenated temporary.
    o_ref[:, :L3] = p3
    o_ref[:, L3:] = p3


def _pick_block_b(B, V, L, *, target_rows=6144, vmem_budget_bytes=16 << 20):
    """Pick the per-step batch block `bb`.

    Goals: ~target_rows matmul rows (bb*V) per step to amortize the ~0.35us
    fixed per-step cost; activation working set capped at a v7x-safe VMEM
    budget; bb sublane-aligned for the (bb, 8*L) output store; when the grid
    has more than one step, prefer an even step count (v7x has 2 TensorCores).
    """
    # Per activation row we hold roughly pre-LN + post-LN copies of the
    # L1/L2/L3 features in f32.
    bytes_per_row = (L + 2 * L + 4 * L) * 4 * 2
    cap_rows = max(V, vmem_budget_bytes // max(bytes_per_row, 1))
    max_bb = max(1, min(B, min(target_rows, cap_rows) // max(V, 1)))
    cands = [bb for bb in range(1, max_bb + 1)
             if B % bb == 0 and (bb % 8 == 0 or bb == B)]
    if not cands:
        # No 8-aligned divisor fits the budget; a full-batch block is always
        # layout-legal.  Callers with huge, awkward B should pass block_b.
        return B

    def score(bb):
        steps = B // bb
        return (steps == 1 or steps % 2 == 0, bb)   # prefer even grid, then big bb

    return max(cands, key=score)


def _pack_vectors(params, L):
    """Pack the nine (1, Li) bias/gamma/beta vectors into one (9, 4L) f32 blob."""
    L3 = 4 * L
    rows = []
    for i, (_, b, g, be) in enumerate(params):
        Li = L * (2 ** i)
        for v in (b, g, be):
            rows.append(jnp.pad(v[0].astype(jnp.float32), (0, L3 - Li)))
    return jnp.stack(rows)


def subgraph_forward(x, params, *, block_b=None, matmul_dtype=jnp.bfloat16,
                     single_buffer_weights=True):
    """Fused SubGraph forward: [B, V, len] -> [B, 8*len]."""
    B, V, L = x.shape
    (w1, _, _, _), (w2, _, _, _), (w3, _, _, _) = params
    L2, L3 = 2 * L, 4 * L
    assert w1.shape == (L, L) and w2.shape == (L2, L2) and w3.shape == (L3, L3)

    # Split W2/W3 once on the host (pooled-half vs per-vector-half), then cast
    # the matmul weights to bf16: half the weight DMA bytes, native MXU rate.
    w2t, w2b = w2[:L, :], w2[L:, :]
    w3t, w3b = w3[:L2, :], w3[L2:, :]
    w1c, w2tc, w2bc, w3tc, w3bc = (w.astype(matmul_dtype)
                                   for w in (w1, w2t, w2b, w3t, w3b))
    vecs = _pack_vectors(params, L)                      # (9, 4L) f32

    bb = _pick_block_b(B, V, L) if block_b is None else block_b
    assert B % bb == 0, (B, bb)
    grid = (B // bb,)

    # Advisory cost estimate so XLA overlaps surrounding ops around this small
    # custom call.
    flops = 2 * B * V * (L * L + L * L2 + L2 * L3) + 2 * B * (L * L2 + L2 * L3)
    bytes_accessed = int(
        x.size * 4 + B * 2 * L3 * 4 + vecs.size * 4
        + sum(int(w.size) * w.dtype.itemsize
              for w in (w1c, w2tc, w2bc, w3tc, w3bc)))
    cost = pl.CostEstimate(flops=int(flops), transcendentals=int(3 * B * V),
                           bytes_accessed=bytes_accessed)

    const2d = lambda i: (0, 0)

    def build(use_buffered):
        def wspec(shape):
            if use_buffered:
                return pl.BlockSpec(shape, const2d,
                                    pipeline_mode=pl.Buffered(buffer_count=1))
            return pl.BlockSpec(shape, const2d)

        in_specs = [
            pl.BlockSpec((bb, V, L), lambda i: (i, 0, 0)),
            wspec(w1c.shape), wspec(w2tc.shape), wspec(w2bc.shape),
            wspec(w3tc.shape), wspec(w3bc.shape), wspec(vecs.shape),
        ]
        return pl.pallas_call(
            _fused_subgraph_kernel,
            out_shape=jax.ShapeDtypeStruct((B, 2 * L3), jnp.float32),
            grid=grid,
            in_specs=in_specs,
            out_specs=pl.BlockSpec((bb, 2 * L3), lambda i: (i, 0)),
            compiler_params=pltpu.CompilerParams(
                dimension_semantics=("parallel",),
                vmem_limit_bytes=32 * 1024 * 1024),
            cost_estimate=cost,
        )

    args = (x, w1c, w2tc, w2bc, w3tc, w3bc, vecs)
    if single_buffer_weights and hasattr(pl, "Buffered"):
        try:
            # Grid-invariant weights/blob: single-buffered (halves resident
            # weight VMEM, one DMA each for the whole grid).
            return build(True)(*args)
        except Exception:
            # This jax/Mosaic version rejects Buffered(1) on the main pipeline
            # path: fall back to default (double-buffered) invariant specs.
            pass
    return build(False)(*args)


def init_params(key, base_len):
    """Three SubGraphLayers with feature dims len, 2*len, 4*len."""
    params = []
    for i in range(3):
        L = base_len * (2 ** i)
        key, kw, kb = jax.random.split(key, 3)
        w = jax.random.normal(kw, (L, L), jnp.float32) / jnp.sqrt(float(L))
        b = jax.random.normal(kb, (1, L), jnp.float32) * 0.01
        gamma = jnp.ones((1, L), jnp.float32)   # LayerNorm default init
        beta = jnp.zeros((1, L), jnp.float32)
        params.append((w, b, gamma, beta))
    return params


def _reference(x, params, matmul_dtype=jnp.float32):
    """Pure-JAX reference mirroring the PyTorch forward (un-factored)."""
    for (w, b, gamma, beta) in params:
        h = jnp.dot(x.astype(matmul_dtype), w.astype(matmul_dtype),
                    preferred_element_type=jnp.float32)
        h = h + b[0]
        mean = h.mean(-1, keepdims=True)
        var = ((h - mean) ** 2).mean(-1, keepdims=True)
        h = (h - mean) / jnp.sqrt(var + LN_EPS) * gamma[0] + beta[0]
        h = jnp.maximum(h, 0.0)
        pooled = jnp.broadcast_to(h.max(axis=1, keepdims=True), h.shape)
        x = jnp.concatenate([pooled, h], axis=-1)
    return x.max(axis=1)


if __name__ == "__main__":
    # B polylines, V vectors per polyline, base vector length L.
    B, V, L = 16, 8, 32
    key = jax.random.PRNGKey(0)
    kx, kp = jax.random.split(key)
    x = jax.random.normal(kx, (B, V, L), jnp.float32)
    params = init_params(kp, L)

    # Auto block pick -> bb=B, grid=(1,) at this size (review: fewest steps).
    out = jax.block_until_ready(subgraph_forward(x, params))
    assert out.shape == (B, 8 * L), out.shape

    # Also exercise the B-blocked multi-step "parallel" grid path (grid=(2,)).
    out_blocked = jax.block_until_ready(subgraph_forward(x, params, block_b=8))
    assert out_blocked.shape == (B, 8 * L), out_blocked.shape

    # Tight check vs. a reference that mirrors the kernel's matmul precision
    # (bf16 MXU operands, f32 accumulation / LayerNorm), loose check vs. the
    # pure-f32 reference (difference = bf16 operand rounding only).
    ref_mixed = _reference(x, params, matmul_dtype=jnp.bfloat16)
    ref_f32 = _reference(x, params)
    for o in (out, out_blocked):
        assert jnp.allclose(o, ref_mixed, atol=5e-3, rtol=5e-3), \
            float(jnp.max(jnp.abs(o - ref_mixed)))
        assert jnp.allclose(o, ref_f32, atol=1e-1, rtol=1e-1), \
            float(jnp.max(jnp.abs(o - ref_f32)))

    print("KERNEL_OK")
</pallas_src>

<mosaic_0001>
module attributes {stable_mosaic.version = 11 : i64} {
  func.func @_fused_subgraph_kernel(%arg0: i32, %arg1: memref<16x8x32xf32, #tpu.memory_space<vmem>>, %arg2: memref<32x32xbf16, #tpu.memory_space<vmem>>, %arg3: memref<32x64xbf16, #tpu.memory_space<vmem>>, %arg4: memref<32x64xbf16, #tpu.memory_space<vmem>>, %arg5: memref<64x128xbf16, #tpu.memory_space<vmem>>, %arg6: memref<64x128xbf16, #tpu.memory_space<vmem>>, %arg7: memref<9x128xf32, #tpu.memory_space<vmem>>, %arg8: memref<16x256xf32, #tpu.memory_space<vmem>>) attributes {dimension_semantics = [#tpu.dimension_semantics<parallel>], iteration_bounds = array<i64: 1>, scalar_prefetch = 0 : i64, scratch_operands = 0 : i64, tpu.core_type = #tpu.core_type<tc>, window_params = [{transform_indices = @transform_0, window_bounds = array<i64: 16, 8, 32>}, {pipeline_mode = #tpu.pipeline_mode<synchronous>, transform_indices = @transform_1, window_bounds = array<i64: 32, 32>}, {pipeline_mode = #tpu.pipeline_mode<synchronous>, transform_indices = @transform_2, window_bounds = array<i64: 32, 64>}, {pipeline_mode = #tpu.pipeline_mode<synchronous>, transform_indices = @transform_3, window_bounds = array<i64: 32, 64>}, {pipeline_mode = #tpu.pipeline_mode<synchronous>, transform_indices = @transform_4, window_bounds = array<i64: 64, 128>}, {pipeline_mode = #tpu.pipeline_mode<synchronous>, transform_indices = @transform_5, window_bounds = array<i64: 64, 128>}, {pipeline_mode = #tpu.pipeline_mode<synchronous>, transform_indices = @transform_6, window_bounds = array<i64: 9, 128>}, {transform_indices = @transform_7, window_bounds = array<i64: 16, 256>}]} {
    %c0 = arith.constant 0 : index
    %c0_0 = arith.constant 0 : index
    %0 = vector.load %arg7[%c0, %c0_0] : memref<9x128xf32, #tpu.memory_space<vmem>>, vector<9x128xf32>
    %1 = vector.extract_strided_slice %0 {offsets = [0, 0], sizes = [1, 32], strides = [1, 1]} : vector<9x128xf32> to vector<1x32xf32>
    %2 = vector.extract_strided_slice %0 {offsets = [1, 0], sizes = [1, 32], strides = [1, 1]} : vector<9x128xf32> to vector<1x32xf32>
    %3 = vector.extract_strided_slice %0 {offsets = [2, 0], sizes = [1, 32], strides = [1, 1]} : vector<9x128xf32> to vector<1x32xf32>
    %4 = vector.extract_strided_slice %0 {offsets = [3, 0], sizes = [1, 64], strides = [1, 1]} : vector<9x128xf32> to vector<1x64xf32>
    %5 = vector.extract_strided_slice %0 {offsets = [4, 0], sizes = [1, 64], strides = [1, 1]} : vector<9x128xf32> to vector<1x64xf32>
    %6 = vector.extract_strided_slice %0 {offsets = [5, 0], sizes = [1, 64], strides = [1, 1]} : vector<9x128xf32> to vector<1x64xf32>
    %7 = vector.extract_strided_slice %0 {offsets = [6, 0], sizes = [1, 128], strides = [1, 1]} : vector<9x128xf32> to vector<1x128xf32>
    %8 = vector.extract_strided_slice %0 {offsets = [7, 0], sizes = [1, 128], strides = [1, 1]} : vector<9x128xf32> to vector<1x128xf32>
    %9 = vector.extract_strided_slice %0 {offsets = [8, 0], sizes = [1, 128], strides = [1, 1]} : vector<9x128xf32> to vector<1x128xf32>
    %c0_1 = arith.constant 0 : index
    %c0_2 = arith.constant 0 : index
    %c0_3 = arith.constant 0 : index
    %10 = vector.load %arg1[%c0_1, %c0_2, %c0_3] : memref<16x8x32xf32, #tpu.memory_space<vmem>>, vector<16x8x32xf32>
    %11 = vector.shape_cast %10 : vector<16x8x32xf32> to vector<128x32xf32>
    %c0_4 = arith.constant 0 : index
    %c0_5 = arith.constant 0 : index
    %12 = vector.load %arg2[%c0_4, %c0_5] : memref<32x32xbf16, #tpu.memory_space<vmem>>, vector<32x32xbf16>
    %13 = arith.truncf %11 : vector<128x32xf32> to vector<128x32xbf16>
    %cst = arith.constant dense<0.000000e+00> : vector<128x32xf32>
    %14 = tpu.matmul %13, %12, %cst {dimension_numbers = #tpu.dot_dimension_numbers<[1], [0], [0], [1], [0, 0, 1, 1], [], []>} : vector<128x32xbf16>, vector<32x32xbf16>, vector<128x32xf32> -> vector<128x32xf32>
    %15 = vector.shape_cast %14 : vector<128x32xf32> to vector<16x8x32xf32>
    %16 = vector.shape_cast %1 : vector<1x32xf32> to vector<1x1x32xf32>
    %17 = vector.broadcast %16 : vector<1x1x32xf32> to vector<16x8x32xf32>
    %18 = arith.addf %15, %17 : vector<16x8x32xf32>
    %cst_6 = arith.constant dense<0.000000e+00> : vector<16x8xf32>
    %19 = vector.multi_reduction <add>, %18, %cst_6 [2] : vector<16x8x32xf32> to vector<16x8xf32>
    %20 = vector.shape_cast %19 : vector<16x8xf32> to vector<16x8x1xf32>
    %cst_7 = arith.constant 3.125000e-02 : f32
    %21 = vector.broadcast %cst_7 : f32 to vector<16x8x1xf32>
    %22 = arith.mulf %20, %21 : vector<16x8x1xf32>
    %23 = arith.mulf %18, %18 : vector<16x8x32xf32>
    %cst_8 = arith.constant dense<0.000000e+00> : vector<16x8xf32>
    %24 = vector.multi_reduction <add>, %23, %cst_8 [2] : vector<16x8x32xf32> to vector<16x8xf32>
    %25 = vector.shape_cast %24 : vector<16x8xf32> to vector<16x8x1xf32>
    %cst_9 = arith.constant 3.125000e-02 : f32
    %26 = vector.broadcast %cst_9 : f32 to vector<16x8x1xf32>
    %27 = arith.mulf %25, %26 : vector<16x8x1xf32>
    %28 = arith.mulf %22, %22 : vector<16x8x1xf32>
    %29 = arith.subf %27, %28 : vector<16x8x1xf32>
    %cst_10 = arith.constant 0.000000e+00 : f32
    %30 = vector.broadcast %cst_10 : f32 to vector<16x8x1xf32>
    %31 = arith.maximumf %29, %30 : vector<16x8x1xf32>
    %32 = vector.broadcast %22 : vector<16x8x1xf32> to vector<16x8x32xf32>
    %33 = arith.subf %18, %32 : vector<16x8x32xf32>
    %cst_11 = arith.constant 9.99999974E-6 : f32
    %34 = vector.broadcast %cst_11 : f32 to vector<16x8x1xf32>
    %35 = arith.addf %31, %34 : vector<16x8x1xf32>
    %36 = math.rsqrt %35 : vector<16x8x1xf32>
    %37 = vector.broadcast %36 : vector<16x8x1xf32> to vector<16x8x32xf32>
    %38 = arith.mulf %33, %37 : vector<16x8x32xf32>
    %39 = vector.shape_cast %2 : vector<1x32xf32> to vector<1x1x32xf32>
    %40 = vector.broadcast %39 : vector<1x1x32xf32> to vector<16x8x32xf32>
    %41 = arith.mulf %38, %40 : vector<16x8x32xf32>
    %42 = vector.shape_cast %3 : vector<1x32xf32> to vector<1x1x32xf32>
    %43 = vector.broadcast %42 : vector<1x1x32xf32> to vector<16x8x32xf32>
    %44 = arith.addf %41, %43 : vector<16x8x32xf32>
    %cst_12 = arith.constant 0.000000e+00 : f32
    %45 = vector.broadcast %cst_12 : f32 to vector<16x8x32xf32>
    %46 = arith.maximumf %44, %45 : vector<16x8x32xf32>
    %cst_13 = arith.constant dense<0xFF800000> : vector<16x32xf32>
    %47 = vector.multi_reduction <maximumf>, %46, %cst_13 [1] : vector<16x8x32xf32> to vector<16x32xf32>
    %c0_14 = arith.constant 0 : index
    %c0_15 = arith.constant 0 : index
    %48 = vector.load %arg3[%c0_14, %c0_15] : memref<32x64xbf16, #tpu.memory_space<vmem>>, vector<32x64xbf16>
    %49 = arith.truncf %47 : vector<16x32xf32> to vector<16x32xbf16>
    %cst_16 = arith.constant dense<0.000000e+00> : vector<16x64xf32>
    %50 = tpu.matmul %49, %48, %cst_16 {dimension_numbers = #tpu.dot_dimension_numbers<[1], [0], [0], [1], [0, 0, 1, 1], [], []>} : vector<16x32xbf16>, vector<32x64xbf16>, vector<16x64xf32> -> vector<16x64xf32>
    %51 = vector.shape_cast %46 : vector<16x8x32xf32> to vector<128x32xf32>
    %c0_17 = arith.constant 0 : index
    %c0_18 = arith.constant 0 : index
    %52 = vector.load %arg4[%c0_17, %c0_18] : memref<32x64xbf16, #tpu.memory_space<vmem>>, vector<32x64xbf16>
    %53 = arith.truncf %51 : vector<128x32xf32> to vector<128x32xbf16>
    %cst_19 = arith.constant dense<0.000000e+00> : vector<128x64xf32>
    %54 = tpu.matmul %53, %52, %cst_19 {dimension_numbers = #tpu.dot_dimension_numbers<[1], [0], [0], [1], [0, 0, 1, 1], [], []>} : vector<128x32xbf16>, vector<32x64xbf16>, vector<128x64xf32> -> vector<128x64xf32>
    %55 = vector.shape_cast %54 : vector<128x64xf32> to vector<16x8x64xf32>
    %56 = vector.shape_cast %50 : vector<16x64xf32> to vector<16x1x64xf32>
    %57 = vector.broadcast %56 : vector<16x1x64xf32> to vector<16x8x64xf32>
    %58 = arith.addf %55, %57 : vector<16x8x64xf32>
    %59 = vector.shape_cast %4 : vector<1x64xf32> to vector<1x1x64xf32>
    %60 = vector.broadcast %59 : vector<1x1x64xf32> to vector<16x8x64xf32>
    %61 = arith.addf %58, %60 : vector<16x8x64xf32>
    %cst_20 = arith.constant dense<0.000000e+00> : vector<16x8xf32>
    %62 = vector.multi_reduction <add>, %61, %cst_20 [2] : vector<16x8x64xf32> to vector<16x8xf32>
    %63 = vector.shape_cast %62 : vector<16x8xf32> to vector<16x8x1xf32>
    %cst_21 = arith.constant 1.562500e-02 : f32
    %64 = vector.broadcast %cst_21 : f32 to vector<16x8x1xf32>
    %65 = arith.mulf %63, %64 : vector<16x8x1xf32>
    %66 = arith.mulf %61, %61 : vector<16x8x64xf32>
    %cst_22 = arith.constant dense<0.000000e+00> : vector<16x8xf32>
    %67 = vector.multi_reduction <add>, %66, %cst_22 [2] : vector<16x8x64xf32> to vector<16x8xf32>
    %68 = vector.shape_cast %67 : vector<16x8xf32> to vector<16x8x1xf32>
    %cst_23 = arith.constant 1.562500e-02 : f32
    %69 = vector.broadcast %cst_23 : f32 to vector<16x8x1xf32>
    %70 = arith.mulf %68, %69 : vector<16x8x1xf32>
    %71 = arith.mulf %65, %65 : vector<16x8x1xf32>
    %72 = arith.subf %70, %71 : vector<16x8x1xf32>
    %cst_24 = arith.constant 0.000000e+00 : f32
    %73 = vector.broadcast %cst_24 : f32 to vector<16x8x1xf32>
    %74 = arith.maximumf %72, %73 : vector<16x8x1xf32>
    %75 = vector.broadcast %65 : vector<16x8x1xf32> to vector<16x8x64xf32>
    %76 = arith.subf %61, %75 : vector<16x8x64xf32>
    %cst_25 = arith.constant 9.99999974E-6 : f32
    %77 = vector.broadcast %cst_25 : f32 to vector<16x8x1xf32>
    %78 = arith.addf %74, %77 : vector<16x8x1xf32>
    %79 = math.rsqrt %78 : vector<16x8x1xf32>
    %80 = vector.broadcast %79 : vector<16x8x1xf32> to vector<16x8x64xf32>
    %81 = arith.mulf %76, %80 : vector<16x8x64xf32>
    %82 = vector.shape_cast %5 : vector<1x64xf32> to vector<1x1x64xf32>
    %83 = vector.broadcast %82 : vector<1x1x64xf32> to vector<16x8x64xf32>
    %84 = arith.mulf %81, %83 : vector<16x8x64xf32>
    %85 = vector.shape_cast %6 : vector<1x64xf32> to vector<1x1x64xf32>
    %86 = vector.broadcast %85 : vector<1x1x64xf32> to vector<16x8x64xf32>
    %87 = arith.addf %84, %86 : vector<16x8x64xf32>
    %cst_26 = arith.constant 0.000000e+00 : f32
    %88 = vector.broadcast %cst_26 : f32 to vector<16x8x64xf32>
    %89 = arith.maximumf %87, %88 : vector<16x8x64xf32>
    %cst_27 = arith.constant dense<0xFF800000> : vector<16x64xf32>
    %90 = vector.multi_reduction <maximumf>, %89, %cst_27 [1] : vector<16x8x64xf32> to vector<16x64xf32>
    %c0_28 = arith.constant 0 : index
    %c0_29 = arith.constant 0 : index
    %91 = vector.load %arg5[%c0_28, %c0_29] : memref<64x128xbf16, #tpu.memory_space<vmem>>, vector<64x128xbf16>
    %92 = arith.truncf %90 : vector<16x64xf32> to vector<16x64xbf16>
    %cst_30 = arith.constant dense<0.000000e+00> : vector<16x128xf32>
    %93 = tpu.matmul %92, %91, %cst_30 {dimension_numbers = #tpu.dot_dimension_numbers<[1], [0], [0], [1], [0, 0, 1, 1], [], []>} : vector<16x64xbf16>, vector<64x128xbf16>, vector<16x128xf32> -> vector<16x128xf32>
    %94 = vector.shape_cast %89 : vector<16x8x64xf32> to vector<128x64xf32>
    %c0_31 = arith.constant 0 : index
    %c0_32 = arith.constant 0 : index
    %95 = vector.load %arg6[%c0_31, %c0_32] : memref<64x128xbf16, #tpu.memory_space<vmem>>, vector<64x128xbf16>
    %96 = arith.truncf %94 : vector<128x64xf32> to vector<128x64xbf16>
    %cst_33 = arith.constant dense<0.000000e+00> : vector<128x128xf32>
    %97 = tpu.matmul %96, %95, %cst_33 {dimension_numbers = #tpu.dot_dimension_numbers<[1], [0], [0], [1], [0, 0, 1, 1], [], []>} : vector<128x64xbf16>, vector<64x128xbf16>, vector<128x128xf32> -> vector<128x128xf32>
    %98 = vector.shape_cast %97 : vector<128x128xf32> to vector<16x8x128xf32>
    %99 = vector.shape_cast %93 : vector<16x128xf32> to vector<16x1x128xf32>
    %100 = vector.broadcast %99 : vector<16x1x128xf32> to vector<16x8x128xf32>
    %101 = arith.addf %98, %100 : vector<16x8x128xf32>
    %102 = vector.shape_cast %7 : vector<1x128xf32> to vector<1x1x128xf32>
    %103 = vector.broadcast %102 : vector<1x1x128xf32> to vector<16x8x128xf32>
    %104 = arith.addf %101, %103 : vector<16x8x128xf32>
    %cst_34 = arith.constant dense<0.000000e+00> : vector<16x8xf32>
    %105 = vector.multi_reduction <add>, %104, %cst_34 [2] : vector<16x8x128xf32> to vector<16x8xf32>
    %106 = vector.shape_cast %105 : vector<16x8xf32> to vector<16x8x1xf32>
    %cst_35 = arith.constant 7.812500e-03 : f32
    %107 = vector.broadcast %cst_35 : f32 to vector<16x8x1xf32>
    %108 = arith.mulf %106, %107 : vector<16x8x1xf32>
    %109 = arith.mulf %104, %104 : vector<16x8x128xf32>
    %cst_36 = arith.constant dense<0.000000e+00> : vector<16x8xf32>
    %110 = vector.multi_reduction <add>, %109, %cst_36 [2] : vector<16x8x128xf32> to vector<16x8xf32>
    %111 = vector.shape_cast %110 : vector<16x8xf32> to vector<16x8x1xf32>
    %cst_37 = arith.constant 7.812500e-03 : f32
    %112 = vector.broadcast %cst_37 : f32 to vector<16x8x1xf32>
    %113 = arith.mulf %111, %112 : vector<16x8x1xf32>
    %114 = arith.mulf %108, %108 : vector<16x8x1xf32>
    %115 = arith.subf %113, %114 : vector<16x8x1xf32>
    %cst_38 = arith.constant 0.000000e+00 : f32
    %116 = vector.broadcast %cst_38 : f32 to vector<16x8x1xf32>
    %117 = arith.maximumf %115, %116 : vector<16x8x1xf32>
    %118 = vector.broadcast %108 : vector<16x8x1xf32> to vector<16x8x128xf32>
    %119 = arith.subf %104, %118 : vector<16x8x128xf32>
    %cst_39 = arith.constant 9.99999974E-6 : f32
    %120 = vector.broadcast %cst_39 : f32 to vector<16x8x1xf32>
    %121 = arith.addf %117, %120 : vector<16x8x1xf32>
    %122 = math.rsqrt %121 : vector<16x8x1xf32>
    %123 = vector.broadcast %122 : vector<16x8x1xf32> to vector<16x8x128xf32>
    %124 = arith.mulf %119, %123 : vector<16x8x128xf32>
    %125 = vector.shape_cast %8 : vector<1x128xf32> to vector<1x1x128xf32>
    %126 = vector.broadcast %125 : vector<1x1x128xf32> to vector<16x8x128xf32>
    %127 = arith.mulf %124, %126 : vector<16x8x128xf32>
    %128 = vector.shape_cast %9 : vector<1x128xf32> to vector<1x1x128xf32>
    %129 = vector.broadcast %128 : vector<1x1x128xf32> to vector<16x8x128xf32>
    %130 = arith.addf %127, %129 : vector<16x8x128xf32>
    %cst_40 = arith.constant 0.000000e+00 : f32
    %131 = vector.broadcast %cst_40 : f32 to vector<16x8x128xf32>
    %132 = arith.maximumf %130, %131 : vector<16x8x128xf32>
    %cst_41 = arith.constant dense<0xFF800000> : vector<16x128xf32>
    %133 = vector.multi_reduction <maximumf>, %132, %cst_41 [1] : vector<16x8x128xf32> to vector<16x128xf32>
    %c0_42 = arith.constant 0 : index
    %c0_43 = arith.constant 0 : index
    %134 = vector.load %arg8[%c0_42, %c0_43] : memref<16x256xf32, #tpu.memory_space<vmem>>, vector<16x128xf32>
    tpu.vector_store %arg8[%c0_42, %c0_43], %133 {strides = array<i32>} : memref<16x256xf32, #tpu.memory_space<vmem>>, vector<16x128xf32>,
    %c0_44 = arith.constant 0 : index
    %c128 = arith.constant 128 : index
    %135 = vector.load %arg8[%c0_44, %c128] : memref<16x256xf32, #tpu.memory_space<vmem>>, vector<16x128xf32>
    tpu.vector_store %arg8[%c0_44, %c128], %133 {strides = array<i32>} : memref<16x256xf32, #tpu.memory_space<vmem>>, vector<16x128xf32>,
    return
  }
  func.func @transform_0(%arg0: i32) -> (i32, i32, i32) {
    %c0_i32 = arith.constant 0 : i32
    %c0_i32_0 = arith.constant 0 : i32
    %c0_i32_1 = arith.constant 0 : i32
    return %arg0, %c0_i32, %c0_i32_0 : i32, i32, i32
  }
  func.func @transform_1(%arg0: i32) -> (i32, i32) {
    %c0_i32 = arith.constant 0 : i32
    %c0_i32_0 = arith.constant 0 : i32
    %c0_i32_1 = arith.constant 0 : i32
    return %c0_i32, %c0_i32_0 : i32, i32
  }
  func.func @transform_2(%arg0: i32) -> (i32, i32) {
    %c0_i32 = arith.constant 0 : i32
    %c0_i32_0 = arith.constant 0 : i32
    %c0_i32_1 = arith.constant 0 : i32
    return %c0_i32, %c0_i32_0 : i32, i32
  }
  func.func @transform_3(%arg0: i32) -> (i32, i32) {
    %c0_i32 = arith.constant 0 : i32
    %c0_i32_0 = arith.constant 0 : i32
    %c0_i32_1 = arith.constant 0 : i32
    return %c0_i32, %c0_i32_0 : i32, i32
  }
  func.func @transform_4(%arg0: i32) -> (i32, i32) {
    %c0_i32 = arith.constant 0 : i32
    %c0_i32_0 = arith.constant 0 : i32
    %c0_i32_1 = arith.constant 0 : i32
    return %c0_i32, %c0_i32_0 : i32, i32
  }
  func.func @transform_5(%arg0: i32) -> (i32, i32) {
    %c0_i32 = arith.constant 0 : i32
    %c0_i32_0 = arith.constant 0 : i32
    %c0_i32_1 = arith.constant 0 : i32
    return %c0_i32, %c0_i32_0 : i32, i32
  }
  func.func @transform_6(%arg0: i32) -> (i32, i32) {
    %c0_i32 = arith.constant 0 : i32
    %c0_i32_0 = arith.constant 0 : i32
    %c0_i32_1 = arith.constant 0 : i32
    return %c0_i32, %c0_i32_0 : i32, i32
  }
  func.func @transform_7(%arg0: i32) -> (i32, i32) {
    %c0_i32 = arith.constant 0 : i32
    %c0_i32_0 = arith.constant 0 : i32
    return %arg0, %c0_i32 : i32, i32
  }
}

module attributes {stable_mosaic.version = 11 : i64} {
  func.func @_fused_subgraph_kernel(%arg0: i32, %arg1: memref<16x8x32xf32, #tpu.memory_space<vmem>>, %arg2: memref<32x32xbf16, #tpu.memory_space<vmem>>, %arg3: memref<32x64xbf16, #tpu.memory_space<vmem>>, %arg4: memref<32x64xbf16, #tpu.memory_space<vmem>>, %arg5: memref<64x128xbf16, #tpu.memory_space<vmem>>, %arg6: memref<64x128xbf16, #tpu.memory_space<vmem>>, %arg7: memref<9x128xf32, #tpu.memory_space<vmem>>, %arg8: memref<16x256xf32, #tpu.memory_space<vmem>>) attributes {dimension_semantics = [#tpu.dimension_semantics<parallel>], iteration_bounds = array<i64: 1>, scalar_prefetch = 0 : i64, scratch_operands = 0 : i64, tpu.core_type = #tpu.core_type<tc>, window_params = [{transform_indices = @transform_0, window_bounds = array<i64: 16, 8, 32>}, {pipeline_mode = #tpu.pipeline_mode<synchronous>, transform_indices = @transform_1, window_bounds = array<i64: 32, 32>}, {pipeline_mode = #tpu.pipeline_mode<synchronous>, transform_indices = @transform_2, window_bounds = array<i64: 32, 64>}, {pipeline_mode = #tpu.pipeline_mode<synchronous>, transform_indices = @transform_3, window_bounds = array<i64: 32, 64>}, {pipeline_mode = #tpu.pipeline_mode<synchronous>, transform_indices = @transform_4, window_bounds = array<i64: 64, 128>}, {pipeline_mode = #tpu.pipeline_mode<synchronous>, transform_indices = @transform_5, window_bounds = array<i64: 64, 128>}, {pipeline_mode = #tpu.pipeline_mode<synchronous>, transform_indices = @transform_6, window_bounds = array<i64: 9, 128>}, {transform_indices = @transform_7, window_bounds = array<i64: 16, 256>}]} {
    %c0 = arith.constant 0 : index
    %c0_0 = arith.constant 0 : index
    %0 = vector.load %arg7[%c0, %c0_0] : memref<9x128xf32, #tpu.memory_space<vmem>>, vector<9x128xf32>
    %1 = vector.extract_strided_slice %0 {offsets = [0, 0], sizes = [1, 32], strides = [1, 1]} : vector<9x128xf32> to vector<1x32xf32>
    %2 = vector.extract_strided_slice %0 {offsets = [1, 0], sizes = [1, 32], strides = [1, 1]} : vector<9x128xf32> to vector<1x32xf32>
    %3 = vector.extract_strided_slice %0 {offsets = [2, 0], sizes = [1, 32], strides = [1, 1]} : vector<9x128xf32> to vector<1x32xf32>
    %4 = vector.extract_strided_slice %0 {offsets = [3, 0], sizes = [1, 64], strides = [1, 1]} : vector<9x128xf32> to vector<1x64xf32>
    %5 = vector.extract_strided_slice %0 {offsets = [4, 0], sizes = [1, 64], strides = [1, 1]} : vector<9x128xf32> to vector<1x64xf32>
    %6 = vector.extract_strided_slice %0 {offsets = [5, 0], sizes = [1, 64], strides = [1, 1]} : vector<9x128xf32> to vector<1x64xf32>
    %7 = vector.extract_strided_slice %0 {offsets = [6, 0], sizes = [1, 128], strides = [1, 1]} : vector<9x128xf32> to vector<1x128xf32>
    %8 = vector.extract_strided_slice %0 {offsets = [7, 0], sizes = [1, 128], strides = [1, 1]} : vector<9x128xf32> to vector<1x128xf32>
    %9 = vector.extract_strided_slice %0 {offsets = [8, 0], sizes = [1, 128], strides = [1, 1]} : vector<9x128xf32> to vector<1x128xf32>
    %c0_1 = arith.constant 0 : index
    %c0_2 = arith.constant 0 : index
    %c0_3 = arith.constant 0 : index
    %10 = vector.load %arg1[%c0_1, %c0_2, %c0_3] : memref<16x8x32xf32, #tpu.memory_space<vmem>>, vector<16x8x32xf32>
    %11 = vector.shape_cast %10 : vector<16x8x32xf32> to vector<128x32xf32>
    %c0_4 = arith.constant 0 : index
    %c0_5 = arith.constant 0 : index
    %12 = vector.load %arg2[%c0_4, %c0_5] : memref<32x32xbf16, #tpu.memory_space<vmem>>, vector<32x32xbf16>
    %13 = arith.truncf %11 : vector<128x32xf32> to vector<128x32xbf16>
    %cst = arith.constant dense<0.000000e+00> : vector<128x32xf32>
    %14 = tpu.matmul %13, %12, %cst {dimension_numbers = #tpu.dot_dimension_numbers<[1], [0], [0], [1], [0, 0, 1, 1], [], []>} : vector<128x32xbf16>, vector<32x32xbf16>, vector<128x32xf32> -> vector<128x32xf32>
    %15 = vector.shape_cast %14 : vector<128x32xf32> to vector<16x8x32xf32>
    %16 = vector.shape_cast %1 : vector<1x32xf32> to vector<1x1x32xf32>
    %17 = vector.broadcast %16 : vector<1x1x32xf32> to vector<16x8x32xf32>
    %18 = arith.addf %15, %17 : vector<16x8x32xf32>
    %cst_6 = arith.constant dense<0.000000e+00> : vector<16x8xf32>
    %19 = vector.multi_reduction <add>, %18, %cst_6 [2] : vector<16x8x32xf32> to vector<16x8xf32>
    %20 = vector.shape_cast %19 : vector<16x8xf32> to vector<16x8x1xf32>
    %cst_7 = arith.constant 3.125000e-02 : f32
    %21 = vector.broadcast %cst_7 : f32 to vector<16x8x1xf32>
    %22 = arith.mulf %20, %21 : vector<16x8x1xf32>
    %23 = arith.mulf %18, %18 : vector<16x8x32xf32>
    %cst_8 = arith.constant dense<0.000000e+00> : vector<16x8xf32>
    %24 = vector.multi_reduction <add>, %23, %cst_8 [2] : vector<16x8x32xf32> to vector<16x8xf32>
    %25 = vector.shape_cast %24 : vector<16x8xf32> to vector<16x8x1xf32>
    %cst_9 = arith.constant 3.125000e-02 : f32
    %26 = vector.broadcast %cst_9 : f32 to vector<16x8x1xf32>
    %27 = arith.mulf %25, %26 : vector<16x8x1xf32>
    %28 = arith.mulf %22, %22 : vector<16x8x1xf32>
    %29 = arith.subf %27, %28 : vector<16x8x1xf32>
    %cst_10 = arith.constant 0.000000e+00 : f32
    %30 = vector.broadcast %cst_10 : f32 to vector<16x8x1xf32>
    %31 = arith.maximumf %29, %30 : vector<16x8x1xf32>
    %32 = vector.broadcast %22 : vector<16x8x1xf32> to vector<16x8x32xf32>
    %33 = arith.subf %18, %32 : vector<16x8x32xf32>
    %cst_11 = arith.constant 9.99999974E-6 : f32
    %34 = vector.broadcast %cst_11 : f32 to vector<16x8x1xf32>
    %35 = arith.addf %31, %34 : vector<16x8x1xf32>
    %36 = math.rsqrt %35 : vector<16x8x1xf32>
    %37 = vector.broadcast %36 : vector<16x8x1xf32> to vector<16x8x32xf32>
    %38 = arith.mulf %33, %37 : vector<16x8x32xf32>
    %39 = vector.shape_cast %2 : vector<1x32xf32> to vector<1x1x32xf32>
    %40 = vector.broadcast %39 : vector<1x1x32xf32> to vector<16x8x32xf32>
    %41 = arith.mulf %38, %40 : vector<16x8x32xf32>
    %42 = vector.shape_cast %3 : vector<1x32xf32> to vector<1x1x32xf32>
    %43 = vector.broadcast %42 : vector<1x1x32xf32> to vector<16x8x32xf32>
    %44 = arith.addf %41, %43 : vector<16x8x32xf32>
    %cst_12 = arith.constant 0.000000e+00 : f32
    %45 = vector.broadcast %cst_12 : f32 to vector<16x8x32xf32>
    %46 = arith.maximumf %44, %45 : vector<16x8x32xf32>
    %cst_13 = arith.constant dense<0xFF800000> : vector<16x32xf32>
    %47 = vector.multi_reduction <maximumf>, %46, %cst_13 [1] : vector<16x8x32xf32> to vector<16x32xf32>
    %c0_14 = arith.constant 0 : index
    %c0_15 = arith.constant 0 : index
    %48 = vector.load %arg3[%c0_14, %c0_15] : memref<32x64xbf16, #tpu.memory_space<vmem>>, vector<32x64xbf16>
    %49 = arith.truncf %47 : vector<16x32xf32> to vector<16x32xbf16>
    %cst_16 = arith.constant dense<0.000000e+00> : vector<16x64xf32>
    %50 = tpu.matmul %49, %48, %cst_16 {dimension_numbers = #tpu.dot_dimension_numbers<[1], [0], [0], [1], [0, 0, 1, 1], [], []>} : vector<16x32xbf16>, vector<32x64xbf16>, vector<16x64xf32> -> vector<16x64xf32>
    %51 = vector.shape_cast %46 : vector<16x8x32xf32> to vector<128x32xf32>
    %c0_17 = arith.constant 0 : index
    %c0_18 = arith.constant 0 : index
    %52 = vector.load %arg4[%c0_17, %c0_18] : memref<32x64xbf16, #tpu.memory_space<vmem>>, vector<32x64xbf16>
    %53 = arith.truncf %51 : vector<128x32xf32> to vector<128x32xbf16>
    %cst_19 = arith.constant dense<0.000000e+00> : vector<128x64xf32>
    %54 = tpu.matmul %53, %52, %cst_19 {dimension_numbers = #tpu.dot_dimension_numbers<[1], [0], [0], [1], [0, 0, 1, 1], [], []>} : vector<128x32xbf16>, vector<32x64xbf16>, vector<128x64xf32> -> vector<128x64xf32>
    %55 = vector.shape_cast %54 : vector<128x64xf32> to vector<16x8x64xf32>
    %56 = vector.shape_cast %50 : vector<16x64xf32> to vector<16x1x64xf32>
    %57 = vector.broadcast %56 : vector<16x1x64xf32> to vector<16x8x64xf32>
    %58 = arith.addf %55, %57 : vector<16x8x64xf32>
    %59 = vector.shape_cast %4 : vector<1x64xf32> to vector<1x1x64xf32>
    %60 = vector.broadcast %59 : vector<1x1x64xf32> to vector<16x8x64xf32>
    %61 = arith.addf %58, %60 : vector<16x8x64xf32>
    %cst_20 = arith.constant dense<0.000000e+00> : vector<16x8xf32>
    %62 = vector.multi_reduction <add>, %61, %cst_20 [2] : vector<16x8x64xf32> to vector<16x8xf32>
    %63 = vector.shape_cast %62 : vector<16x8xf32> to vector<16x8x1xf32>
    %cst_21 = arith.constant 1.562500e-02 : f32
    %64 = vector.broadcast %cst_21 : f32 to vector<16x8x1xf32>
    %65 = arith.mulf %63, %64 : vector<16x8x1xf32>
    %66 = arith.mulf %61, %61 : vector<16x8x64xf32>
    %cst_22 = arith.constant dense<0.000000e+00> : vector<16x8xf32>
    %67 = vector.multi_reduction <add>, %66, %cst_22 [2] : vector<16x8x64xf32> to vector<16x8xf32>
    %68 = vector.shape_cast %67 : vector<16x8xf32> to vector<16x8x1xf32>
    %cst_23 = arith.constant 1.562500e-02 : f32
    %69 = vector.broadcast %cst_23 : f32 to vector<16x8x1xf32>
    %70 = arith.mulf %68, %69 : vector<16x8x1xf32>
    %71 = arith.mulf %65, %65 : vector<16x8x1xf32>
    %72 = arith.subf %70, %71 : vector<16x8x1xf32>
    %cst_24 = arith.constant 0.000000e+00 : f32
    %73 = vector.broadcast %cst_24 : f32 to vector<16x8x1xf32>
    %74 = arith.maximumf %72, %73 : vector<16x8x1xf32>
    %75 = vector.broadcast %65 : vector<16x8x1xf32> to vector<16x8x64xf32>
    %76 = arith.subf %61, %75 : vector<16x8x64xf32>
    %cst_25 = arith.constant 9.99999974E-6 : f32
    %77 = vector.broadcast %cst_25 : f32 to vector<16x8x1xf32>
    %78 = arith.addf %74, %77 : vector<16x8x1xf32>
    %79 = math.rsqrt %78 : vector<16x8x1xf32>
    %80 = vector.broadcast %79 : vector<16x8x1xf32> to vector<16x8x64xf32>
    %81 = arith.mulf %76, %80 : vector<16x8x64xf32>
    %82 = vector.shape_cast %5 : vector<1x64xf32> to vector<1x1x64xf32>
    %83 = vector.broadcast %82 : vector<1x1x64xf32> to vector<16x8x64xf32>
    %84 = arith.mulf %81, %83 : vector<16x8x64xf32>
    %85 = vector.shape_cast %6 : vector<1x64xf32> to vector<1x1x64xf32>
    %86 = vector.broadcast %85 : vector<1x1x64xf32> to vector<16x8x64xf32>
    %87 = arith.addf %84, %86 : vector<16x8x64xf32>
    %cst_26 = arith.constant 0.000000e+00 : f32
    %88 = vector.broadcast %cst_26 : f32 to vector<16x8x64xf32>
    %89 = arith.maximumf %87, %88 : vector<16x8x64xf32>
    %cst_27 = arith.constant dense<0xFF800000> : vector<16x64xf32>
    %90 = vector.multi_reduction <maximumf>, %89, %cst_27 [1] : vector<16x8x64xf32> to vector<16x64xf32>
    %c0_28 = arith.constant 0 : index
    %c0_29 = arith.constant 0 : index
    %91 = vector.load %arg5[%c0_28, %c0_29] : memref<64x128xbf16, #tpu.memory_space<vmem>>, vector<64x128xbf16>
    %92 = arith.truncf %90 : vector<16x64xf32> to vector<16x64xbf16>
    %cst_30 = arith.constant dense<0.000000e+00> : vector<16x128xf32>
    %93 = tpu.matmul %92, %91, %cst_30 {dimension_numbers = #tpu.dot_dimension_numbers<[1], [0], [0], [1], [0, 0, 1, 1], [], []>} : vector<16x64xbf16>, vector<64x128xbf16>, vector<16x128xf32> -> vector<16x128xf32>
    %94 = vector.shape_cast %89 : vector<16x8x64xf32> to vector<128x64xf32>
    %c0_31 = arith.constant 0 : index
    %c0_32 = arith.constant 0 : index
    %95 = vector.load %arg6[%c0_31, %c0_32] : memref<64x128xbf16, #tpu.memory_space<vmem>>, vector<64x128xbf16>
    %96 = arith.truncf %94 : vector<128x64xf32> to vector<128x64xbf16>
    %cst_33 = arith.constant dense<0.000000e+00> : vector<128x128xf32>
    %97 = tpu.matmul %96, %95, %cst_33 {dimension_numbers = #tpu.dot_dimension_numbers<[1], [0], [0], [1], [0, 0, 1, 1], [], []>} : vector<128x64xbf16>, vector<64x128xbf16>, vector<128x128xf32> -> vector<128x128xf32>
    %98 = vector.shape_cast %97 : vector<128x128xf32> to vector<16x8x128xf32>
    %99 = vector.shape_cast %93 : vector<16x128xf32> to vector<16x1x128xf32>
    %100 = vector.broadcast %99 : vector<16x1x128xf32> to vector<16x8x128xf32>
    %101 = arith.addf %98, %100 : vector<16x8x128xf32>
    %102 = vector.shape_cast %7 : vector<1x128xf32> to vector<1x1x128xf32>
    %103 = vector.broadcast %102 : vector<1x1x128xf32> to vector<16x8x128xf32>
    %104 = arith.addf %101, %103 : vector<16x8x128xf32>
    %cst_34 = arith.constant dense<0.000000e+00> : vector<16x8xf32>
    %105 = vector.multi_reduction <add>, %104, %cst_34 [2] : vector<16x8x128xf32> to vector<16x8xf32>
    %106 = vector.shape_cast %105 : vector<16x8xf32> to vector<16x8x1xf32>
    %cst_35 = arith.constant 7.812500e-03 : f32
    %107 = vector.broadcast %cst_35 : f32 to vector<16x8x1xf32>
    %108 = arith.mulf %106, %107 : vector<16x8x1xf32>
    %109 = arith.mulf %104, %104 : vector<16x8x128xf32>
    %cst_36 = arith.constant dense<0.000000e+00> : vector<16x8xf32>
    %110 = vector.multi_reduction <add>, %109, %cst_36 [2] : vector<16x8x128xf32> to vector<16x8xf32>
    %111 = vector.shape_cast %110 : vector<16x8xf32> to vector<16x8x1xf32>
    %cst_37 = arith.constant 7.812500e-03 : f32
    %112 = vector.broadcast %cst_37 : f32 to vector<16x8x1xf32>
    %113 = arith.mulf %111, %112 : vector<16x8x1xf32>
    %114 = arith.mulf %108, %108 : vector<16x8x1xf32>
    %115 = arith.subf %113, %114 : vector<16x8x1xf32>
    %cst_38 = arith.constant 0.000000e+00 : f32
    %116 = vector.broadcast %cst_38 : f32 to vector<16x8x1xf32>
    %117 = arith.maximumf %115, %116 : vector<16x8x1xf32>
    %118 = vector.broadcast %108 : vector<16x8x1xf32> to vector<16x8x128xf32>
    %119 = arith.subf %104, %118 : vector<16x8x128xf32>
    %cst_39 = arith.constant 9.99999974E-6 : f32
    %120 = vector.broadcast %cst_39 : f32 to vector<16x8x1xf32>
    %121 = arith.addf %117, %120 : vector<16x8x1xf32>
    %122 = math.rsqrt %121 : vector<16x8x1xf32>
    %123 = vector.broadcast %122 : vector<16x8x1xf32> to vector<16x8x128xf32>
    %124 = arith.mulf %119, %123 : vector<16x8x128xf32>
    %125 = vector.shape_cast %8 : vector<1x128xf32> to vector<1x1x128xf32>
    %126 = vector.broadcast %125 : vector<1x1x128xf32> to vector<16x8x128xf32>
    %127 = arith.mulf %124, %126 : vector<16x8x128xf32>
    %128 = vector.shape_cast %9 : vector<1x128xf32> to vector<1x1x128xf32>
    %129 = vector.broadcast %128 : vector<1x1x128xf32> to vector<16x8x128xf32>
    %130 = arith.addf %127, %129 : vector<16x8x128xf32>
    %cst_40 = arith.constant 0.000000e+00 : f32
    %131 = vector.broadcast %cst_40 : f32 to vector<16x8x128xf32>
    %132 = arith.maximumf %130, %131 : vector<16x8x128xf32>
    %cst_41 = arith.constant dense<0xFF800000> : vector<16x128xf32>
    %133 = vector.multi_reduction <maximumf>, %132, %cst_41 [1] : vector<16x8x128xf32> to vector<16x128xf32>
    %c0_42 = arith.constant 0 : index
    %c0_43 = arith.constant 0 : index
    %134 = vector.load %arg8[%c0_42, %c0_43] : memref<16x256xf32, #tpu.memory_space<vmem>>, vector<16x128xf32>
    tpu.vector_store %arg8[%c0_42, %c0_43], %133 {strides = array<i32>} : memref<16x256xf32, #tpu.memory_space<vmem>>, vector<16x128xf32>,
    %c0_44 = arith.constant 0 : index
    %c128 = arith.constant 128 : index
    %135 = vector.load %arg8[%c0_44, %c128] : memref<16x256xf32, #tpu.memory_space<vmem>>, vector<16x128xf32>
    tpu.vector_store %arg8[%c0_44, %c128], %133 {strides = array<i32>} : memref<16x256xf32, #tpu.memory_space<vmem>>, vector<16x128xf32>,
    return
  }
  func.func @transform_0(%arg0: i32) -> (i32, i32, i32) {
    %c0_i32 = arith.constant 0 : i32
    %c0_i32_0 = arith.constant 0 : i32
    %c0_i32_1 = arith.constant 0 : i32
    return %arg0, %c0_i32, %c0_i32_0 : i32, i32, i32
  }
  func.func @transform_1(%arg0: i32) -> (i32, i32) {
    %c0_i32 = arith.constant 0 : i32
    %c0_i32_0 = arith.constant 0 : i32
    %c0_i32_1 = arith.constant 0 : i32
    return %c0_i32, %c0_i32_0 : i32, i32
  }
  func.func @transform_2(%arg0: i32) -> (i32, i32) {
    %c0_i32 = arith.constant 0 : i32
    %c0_i32_0 = arith.constant 0 : i32
    %c0_i32_1 = arith.constant 0 : i32
    return %c0_i32, %c0_i32_0 : i32, i32
  }
  func.func @transform_3(%arg0: i32) -> (i32, i32) {
    %c0_i32 = arith.constant 0 : i32
    %c0_i32_0 = arith.constant 0 : i32
    %c0_i32_1 = arith.constant 0 : i32
    return %c0_i32, %c0_i32_0 : i32, i32
  }
  func.func @transform_4(%arg0: i32) -> (i32, i32) {
    %c0_i32 = arith.constant 0 : i32
    %c0_i32_0 = arith.constant 0 : i32
    %c0_i32_1 = arith.constant 0 : i32
    return %c0_i32, %c0_i32_0 : i32, i32
  }
  func.func @transform_5(%arg0: i32) -> (i32, i32) {
    %c0_i32 = arith.constant 0 : i32
    %c0_i32_0 = arith.constant 0 : i32
    %c0_i32_1 = arith.constant 0 : i32
    return %c0_i32, %c0_i32_0 : i32, i32
  }
  func.func @transform_6(%arg0: i32) -> (i32, i32) {
    %c0_i32 = arith.constant 0 : i32
    %c0_i32_0 = arith.constant 0 : i32
    %c0_i32_1 = arith.constant 0 : i32
    return %c0_i32, %c0_i32_0 : i32, i32
  }
  func.func @transform_7(%arg0: i32) -> (i32, i32) {
    %c0_i32 = arith.constant 0 : i32
    %c0_i32_0 = arith.constant 0 : i32
    return %arg0, %c0_i32 : i32, i32
  }
}

</mosaic_0001>

<bundles_post_ra>
// kernel: tpu_custom_call.1
= control target key start
LH: loop header
LB: loop body
LE: loop exit
PB: predicated region body
PF: predicated region fallthrough
CT: control target
= control target key end

     0   :  { %12 = vsyncpa [#allocation3], 0  ;;  %s4490_s0 = inlined_call_operand.hbm [shape: f32[16,8,32], index: 0, kind: input, shape index: {}]   ;;  %s4491_s1 = inlined_call_operand.hbm [shape: bf16[32,32], index: 1, kind: input, shape index: {}]   ;;  %s4492_s2 = inlined_call_operand.hbm [shape: bf16[32,64], index: 2, kind: input, shape index: {}]   ;;  %s4493_s3 = inlined_call_operand.hbm [shape: bf16[32,64], index: 3, kind: input, shape index: {}]   ;;  %s4494_s4 = inlined_call_operand.hbm [shape: bf16[64,128], index: 4, kind: input, shape index: {}]   ;;  %s4495_s5 = inlined_call_operand.hbm [shape: bf16[64,128], index: 5, kind: input, shape index: {}]   ;;  %s4496_s6 = inlined_call_operand.vmem [shape: f32[9,128], index: 6, kind: input, shape index: {}]   ;;  %s4497_s7 = inlined_call_operand.hbm [shape: f32[16,256], index: 7, kind: output, shape index: {}]  }
   0x1   :  { %13 = vsyncpa [#allocation6], 0 }
   0x2   :  { %14 = vsyncpa [#allocation9], 0 }
   0x3   :  { %15 = vsyncpa [#allocation12], 0 }
   0x4   :  { %16 = vsyncpa [#allocation4], 0  ;;  %s3043_s24 = smov [#allocation5]   ;;  %s2879_s28 = scalar_lea.hbm %s4491_s1, 256 }
   0x5   :  { %s34_s25 = sshll.u32 %s3043_s24, 4  ;;  %p2880_p0 = scmp.ne.s32.totalorder %s4491_s1, %s2879_s28  ;;  %s35_s25 = int_to_ptr.vmem [resolvable:$true] %s34_s25 }
   0x6   :  { %p2883_p1 = scmp.lt.u32.totalorder %s2879_s28, %s4491_s1 }
   0x8   :  { %p2885_p2 = pnand %p2883_p1, %p2880_p0 }
   0xa   :  { %2888 = shalt.err (!%p2885_p2)
}
   0xb   :  { %s2889_s10 = scalar_lea.vmem %s35_s25, 256  ;;  %p2894_p4 = scmp.lt.s32.totalorder %s35_s25, %s35_s25 }
   0xc   :  { %p2890_p3 = scmp.ne.s32.totalorder %s35_s25, %s2889_s10  ;;  %p2895_p5 = scmp.lt.s32.totalorder %s2889_s10, %s2889_s10 }
   0xe   :  { %p2896_p6 = por %p2895_p5, %p2894_p4 }
  0x10   :  { %p2897_p7 = pnand %p2896_p6, %p2890_p3 }
  0x12   :  { %2900 = shalt.err (!%p2897_p7)
}
  0x13   :  { %s3044_s11 = smov 64   ;;  %s3045_s12 = smov 4  }
  0x14   :  { %40 = dma.hbm_to_vmem [thread:$0]  %s4491_s1, 256, %s35_s25, [#allocation6], %s3044_s11, %s3044_s11, %s3045_s12  }
  0x15   :  { %s3046_s15 = smov [#allocation8]   ;;  %s3047_s17 = smov [#allocation2]  }
  0x16   :  { %s58_s16 = sshll.u32 %s3046_s15, 4  ;;  %s22_s18 = sshll.u32 %s3047_s17, 4  ;;  %s59_s16 = int_to_ptr.vmem [resolvable:$true] %s58_s16  ;;  %s23_s18 = int_to_ptr.vmem [resolvable:$true] %s22_s18 }
  0x17   :  { %s2901_s21 = scalar_lea.hbm %s4493_s3, 256 }
  0x18   :  { %p2902_p8 = scmp.ne.s32.totalorder %s4493_s3, %s2901_s21  ;;  %p2905_p9 = scmp.lt.u32.totalorder %s2901_s21, %s4493_s3 }
  0x1a   :  { %p2907_p10 = pnand %p2905_p9, %p2902_p8 }
  0x1c   :  { %2910 = shalt.err (!%p2907_p10)
}
  0x1d   :  { %s2911_s1 = scalar_lea.vmem %s59_s16, 256  ;;  %p2916_p12 = scmp.lt.s32.totalorder %s59_s16, %s59_s16 }
  0x1e   :  { %p2912_p11 = scmp.ne.s32.totalorder %s59_s16, %s2911_s1  ;;  %p2917_p13 = scmp.lt.s32.totalorder %s2911_s1, %s2911_s1 }
  0x20   :  { %p2918_p0 = por %p2917_p13, %p2916_p12 }
  0x22   :  { %p2919_p1 = pnand %p2918_p0, %p2912_p11 }
  0x24   :  { %2922 = shalt.err (!%p2919_p1)
}
  0x25   :  { %64 = dma.hbm_to_vmem [thread:$0]  %s4493_s3, 256, %s59_s16, [#allocation9], %s3044_s11, %s3044_s11, %s3045_s12  }
  0x26   :  { %s2923_s30 = scalar_lea.hbm %s4490_s0, 2048 }
  0x27   :  { %p2924_p2 = scmp.ne.s32.totalorder %s4490_s0, %s2923_s30  ;;  %p2927_p3 = scmp.lt.u32.totalorder %s2923_s30, %s4490_s0 }
  0x29   :  { %p2929_p4 = pnand %p2927_p3, %p2924_p2 }
  0x2b   :  { %2932 = shalt.err (!%p2929_p4)
}
  0x2c   :  { %s2933_s14 = scalar_lea.vmem %s23_s18, 2048  ;;  %p2938_p6 = scmp.lt.s32.totalorder %s23_s18, %s23_s18 }
  0x2d   :  { %p2934_p5 = scmp.ne.s32.totalorder %s23_s18, %s2933_s14  ;;  %p2939_p7 = scmp.lt.s32.totalorder %s2933_s14, %s2933_s14 }
  0x2f   :  { %p2940_p8 = por %p2939_p7, %p2938_p6 }
  0x31   :  { %p2941_p9 = pnand %p2940_p8, %p2934_p5 }
  0x33   :  { %2944 = shalt.err (!%p2941_p9)
}
  0x34   :  { %s3048_s3 = smov 128   ;;  %s3049_s15 = smov 8  }
  0x35   :  { %28 = dma.hbm_to_vmem [thread:$0]  %s4490_s0, 2048, %s23_s18, [#allocation3], %s3048_s3, %s3048_s3, %s3049_s15  }
  0x36   :  { %s3050_s19 = smov [#allocation7]   ;;  %s3051_s21 = smov [#allocation10]  }
  0x37   :  { %s46_s20 = sshll.u32 %s3050_s19, 4  ;;  %s70_s22 = sshll.u32 %s3051_s21, 4  ;;  %s47_s20 = int_to_ptr.vmem [resolvable:$true] %s46_s20  ;;  %s71_s22 = int_to_ptr.vmem [resolvable:$true] %s70_s22 }
  0x38   :  { %s2945_s26 = scalar_lea.hbm %s4492_s2, 256 }
  0x39   :  { %p2946_p10 = scmp.ne.s32.totalorder %s4492_s2, %s2945_s26  ;;  %p2949_p11 = scmp.lt.u32.totalorder %s2945_s26, %s4492_s2 }
  0x3b   :  { %p2951_p12 = pnand %p2949_p11, %p2946_p10 }
  0x3d   :  { %2954 = shalt.err (!%p2951_p12)
}
  0x3e   :  { %s2955_s0 = scalar_lea.vmem %s47_s20, 256  ;;  %p2960_p0 = scmp.lt.s32.totalorder %s47_s20, %s47_s20 }
  0x3f   :  { %p2956_p13 = scmp.ne.s32.totalorder %s47_s20, %s2955_s0  ;;  %p2961_p1 = scmp.lt.s32.totalorder %s2955_s0, %s2955_s0 }
  0x41   :  { %p2962_p2 = por %p2961_p1, %p2960_p0 }
  0x43   :  { %p2963_p3 = pnand %p2962_p2, %p2956_p13 }
  0x45   :  { %2966 = shalt.err (!%p2963_p3)
}
  0x46   :  { %52 = dma.hbm_to_vmem [thread:$0]  %s4492_s2, 256, %s47_s20, [#allocation6], %s3044_s11, %s3044_s11, %s3045_s12  }
  0x47   :  { %s2967_s9 = scalar_lea.hbm %s4494_s4, 512 }
  0x48   :  { %p2968_p4 = scmp.ne.s32.totalorder %s4494_s4, %s2967_s9  ;;  %p2971_p5 = scmp.lt.u32.totalorder %s2967_s9, %s4494_s4 }
  0x4a   :  { %p2973_p6 = pnand %p2971_p5, %p2968_p4 }
  0x4c   :  { %2976 = shalt.err (!%p2973_p6)
}
  0x4d   :  { %s2977_s15 = scalar_lea.vmem %s71_s22, 512  ;;  %p2982_p8 = scmp.lt.s32.totalorder %s71_s22, %s71_s22 }
  0x4e   :  { %p2978_p7 = scmp.ne.s32.totalorder %s71_s22, %s2977_s15  ;;  %p2983_p9 = scmp.lt.s32.totalorder %s2977_s15, %s2977_s15 }
  0x50   :  { %p2984_p10 = por %p2983_p9, %p2982_p8 }
  0x52   :  { %p2985_p11 = pnand %p2984_p10, %p2978_p7 }
  0x54   :  { %2988 = shalt.err (!%p2985_p11)
}
  0x55   :  { %76 = dma.hbm_to_vmem [thread:$0]  %s4494_s4, 512, %s71_s22, [#allocation9], %s3044_s11, %s3044_s11, %s3045_s12  }
  0x56   :  { %s3052_s17 = smov [#allocation11]   ;;  %s2989_s23 = scalar_lea.hbm %s4495_s5, 512 }
  0x57   :  { %s82_s19 = sshll.u32 %s3052_s17, 4  ;;  %p2990_p12 = scmp.ne.s32.totalorder %s4495_s5, %s2989_s23  ;;  %s83_s19 = int_to_ptr.vmem [resolvable:$true] %s82_s19 }
  0x58   :  { %p2993_p13 = scmp.lt.u32.totalorder %s2989_s23, %s4495_s5 }
  0x5a   :  { %p2995_p0 = pnand %p2993_p13, %p2990_p12 }
  0x5c   :  { %2998 = shalt.err (!%p2995_p0)
}
  0x5d   :  { %s2999_s27 = scalar_lea.vmem %s83_s19, 512  ;;  %p3004_p2 = scmp.lt.s32.totalorder %s83_s19, %s83_s19 }
  0x5e   :  { %p3000_p1 = scmp.ne.s32.totalorder %s83_s19, %s2999_s27  ;;  %p3005_p3 = scmp.lt.s32.totalorder %s2999_s27, %s2999_s27 }
  0x60   :  { %p3006_p4 = por %p3005_p3, %p3004_p2 }
  0x62   :  { %p3007_p5 = pnand %p3006_p4, %p3000_p1 }
  0x64   :  { %3010 = shalt.err (!%p3007_p5)
}
  0x65   :  { %88 = dma.hbm_to_vmem [thread:$0]  %s4495_s5, 512, %s83_s19, [#allocation12], %s3044_s11, %s3044_s11, %s3045_s12  }
  0x66   :  { %3033 = dma.done.wait [#allocation3], 2048  }
  0x67   :  { %3034 = vsyncadd [#allocation3], 4294965248 }
  0x68   :  { %3035 = dma.done.wait [#allocation6], 512  }
  0x69   :  { %3036 = vsyncadd [#allocation6], 4294966784 }
  0x6a   :  { %3037 = dma.done.wait [#allocation9], 768  }
  0x6b   :  { %3038 = vsyncadd [#allocation9], 4294966528 }
  0x6c   :  { %3039 = dma.done.wait [#allocation12], 512  }
  0x6d   :  { %3040 = vsyncadd [#allocation12], 4294966784  ;;  %v2767_v0 = vld [vmem:[#allocation5] sm:$0xff]   ;;  %v2768_v1 = vld [vmem:[#allocation5 + $0x8] sm:$0xff]   ;;  %vm152_vm0 = vcmask 261120   ;;  %v274_v26 = vlaneseq  ;;  %vm3054_vm1 = vmmov 0  }
  0x6e   :  { %2663 = vmatprep.subr.bf16.mxu0 %v2767_v0  ;;  %v112_v2 = vld [vmem:[#allocation2] sm:$0xff]  ;;  %v113_v3 = vld [vmem:[#allocation2 + $0x8] sm:$0xff]  ;;  %v114_v5 = vld [vmem:[#allocation2 + $0x10] sm:$0xff]  ;;  %vm770_vm2 = vcmask 1041409   ;;  %vm772_vm3 = vcmask 1042434   ;;  %vm774_vm4 = vcmask 1043459  }
  0x6f   :  { %2664 = vmatpush3.bf16.msra.mxu0 %v2767_v0  ;;  %v132_v4 = vpack.c.bf16 %v113_v3, %v112_v2  ;;  %v115_v6 = vld [vmem:[#allocation2 + $0x18] sm:$0xff]  ;;  %v116_v7 = vld [vmem:[#allocation2 + $0x20] sm:$0xff]  ;;  %v117_v8 = vld [vmem:[#allocation2 + $0x28] sm:$0xff]  ;;  %v3194_v27 = vshrl.u32 %v274_v26, 7  ;;  %vm776_vm5 = vcmask 1044484   ;;  %vm778_vm6 = vcmask 1045509  }
  0x70   :  { %2665 = vmatprep.subr.bf16.mxu0 %v2768_v1  ;;  %v133_v9 = vpack.c.bf16 %v115_v6, %v114_v5  ;;  %v134_v10 = vpack.c.bf16 %v117_v8, %v116_v7  ;;  %v118_v11 = vld [vmem:[#allocation2 + $0x30] sm:$0xff]  ;;  %v119_v12 = vld [vmem:[#allocation2 + $0x38] sm:$0xff]  ;;  %v120_v13 = vld [vmem:[#allocation2 + $0x40] sm:$0xff]  ;;  %vm780_vm7 = vcmask 1046534   ;;  %vm782_vm8 = vcmask 1047559  }
  0x71   :  { %2667 = vmatprep.mubr.msk.bf16.mxu0 %vm152_vm0, %v132_v4  ;;  %v121_v14 = vld [vmem:[#allocation2 + $0x48] sm:$0xff]  ;;  %v135_v15 = vpack.c.bf16 %v119_v12, %v118_v11  ;;  %v122_v17 = vld [vmem:[#allocation2 + $0x50] sm:$0xff]  ;;  %v123_v18 = vld [vmem:[#allocation2 + $0x58] sm:$0xff]  ;;  %v3197_v28 = vsub.s32 0, %v3194_v27  ;;  %vm1209_vm9 = vcmask 523264  }
  0x72   :  { %v136_v16 = vpack.c.bf16 %v121_v14, %v120_v13  ;;  %v124_v19 = vld [vmem:[#allocation2 + $0x60] sm:$0xff]  ;;  %v125_v20 = vld [vmem:[#allocation2 + $0x68] sm:$0xff]  ;;  %v137_v21 = vpack.c.bf16 %v123_v18, %v122_v17  ;;  %v126_v23 = vld [vmem:[#allocation2 + $0x70] sm:$0xff] }
  0x73   :  { %2666 = vmatpush3.bf16.msra.mxu0 %v2768_v1  ;;  %v138_v22 = vpack.c.bf16 %v125_v20, %v124_v19  ;;  %v127_v24 = vld [vmem:[#allocation2 + $0x78] sm:$0xff]  ;;  %v3202_v29 = vld [vmem:[%s4496_s6] sm:$0xff] }
  0x74   :  { %v139_v25 = vpack.c.bf16 %v127_v24, %v126_v23  ;;  %v3206_v30 = vrot.slane %v3202_v29, %v3197_v28 }
  0x76   :  { %2668 = vmatmul.mubr.msk.bf16.vlgmr.msra.gmra.mrb[0].mxu0 %vm152_vm0, %v133_v9 }
  0x77   :  { %2671 = vmatprep.mubr.msk.bf16.mxu0 %vm152_vm0, %v134_v10 }
  0x7e   :  { %2672 = vmatmul.mubr.msk.bf16.gmra.mrb[4].mxu0 %vm152_vm0, %v135_v15 }
  0x7f   :  { %2675 = vmatprep.mubr.msk.bf16.mxu0 %vm152_vm0, %v136_v16 }
  0x86   :  { %2676 = vmatmul.mubr.msk.bf16.gmra.mrb[8].mxu0 %vm152_vm0, %v137_v21 }
  0x87   :  { %2679 = vmatprep.mubr.msk.bf16.mxu0 %vm152_vm0, %v138_v22 }
  0x8e   :  { %2680 = vmatmul.mubr.msk.bf16.gmra.mrb[12].mxu0 %vm152_vm0, %v139_v25 }
 0x149   :  { %v2669_v31 = vpop.f32.mrb[0].mxu0 }
 0x14a   :  { %v3209_v32 = vadd.f32 %v2669_v31, %v3206_v30  ;;  %v211_v33 = vpop.f32.mrb[1].mxu0 }
 0x14b   :  { %v2670_v34 = vpop.f32.mrb[2].mxu0  ;;  %v3212_v35 = vadd.f32 %v3206_v30, %v211_v33 }
 0x14c   :  { %v214_v36 = vpop.f32.mrb[3].mxu0  ;;  %v300_v37 = vsel %vm152_vm0, %v3209_v32, 0.0  ;;  %v3222_v40 = vadd.f32 %v2670_v34, %v3206_v30  ;;  %v360_v48 = vmul.f32 %v3209_v32, %v3209_v32 }
 0x14d   :  { %v3217_v38 = vadd.f32 %v3206_v30, %v214_v36  ;;  %301 = vadd.xlane.f32.xlu0 %v300_v37  ;;  %v294_v41 = vsel %vm152_vm0, %v3212_v35, 0.0  ;;  %v358_v58 = vmul.f32 %v3212_v35, %v3212_v35 }
 0x14e   :  { %v303_v47 = vsel %vm152_vm0, %v3222_v40, 0.0  ;;  %v380_v49 = vsel %vm152_vm0, %v360_v48, 0.0  ;;  %v361_v62 = vmul.f32 %v3222_v40, %v3222_v40 }
 0x14f   :  { %v359_v39 = vmul.f32 %v3217_v38, %v3217_v38  ;;  %v297_v57 = vsel %vm152_vm0, %v3217_v38, 0.0  ;;  %v374_v61 = vsel %vm152_vm0, %v358_v58, 0.0  ;;  %v2771_v58 = vld [vmem:[#allocation7] sm:$0xff]  }
 0x150   :  { %v383_v4 = vsel %vm152_vm0, %v361_v62, 0.0 }
 0x151   :  { %v2673_v42 = vpop.f32.mrb[4].mxu0  ;;  %295 = vadd.xlane.f32.xlu0 %v294_v41  ;;  %v377_v43 = vsel %vm152_vm0, %v359_v39, 0.0 }
 0x152   :  { %v227_v44 = vpop.f32.mrb[5].mxu0  ;;  %378 = vadd.xlane.f32.xlu1 %v377_v43  ;;  %v3253_v2 = vadd.f32 %v2673_v42, %v3206_v30 }
 0x153   :  { %v2674_v45 = vpop.f32.mrb[6].mxu0  ;;  %v3261_v7 = vadd.f32 %v3206_v30, %v227_v44 }
 0x154   :  { %v230_v46 = vpop.f32.mrb[7].mxu0  ;;  %v312_v10 = vsel %vm152_vm0, %v3253_v2, 0.0  ;;  %v3270_v11 = vadd.f32 %v2674_v45, %v3206_v30  ;;  %v364_v42 = vmul.f32 %v3253_v2, %v3253_v2 }
 0x155   :  { %304 = vadd.xlane.f32.xlu0 %v303_v47  ;;  %v306_v13 = vsel %vm152_vm0, %v3261_v7, 0.0  ;;  %v3279_v15 = vadd.f32 %v3206_v30, %v230_v46  ;;  %v362_v22 = vmul.f32 %v3261_v7, %v3261_v7  ;;  %v3324_v47 = vld [vmem:[#allocation8] sm:$0xff]  }
 0x156   :  { %v315_v17 = vsel %vm152_vm0, %v3270_v11, 0.0  ;;  %v392_v45 = vsel %vm152_vm0, %v364_v42, 0.0  ;;  %v365_v46 = vmul.f32 %v3270_v11, %v3270_v11  ;;  %2691 = vmatprep.subr.bf16.mxu0 %v3324_v47 }
 0x157   :  { %v309_v21 = vsel %vm152_vm0, %v3279_v15, 0.0  ;;  %v386_v25 = vsel %vm152_vm0, %v362_v22, 0.0  ;;  %v363_v26 = vmul.f32 %v3279_v15, %v3279_v15  ;;  %2692 = vmatpush3.bf16.msra.mxu0 %v3324_v47 }
 0x159   :  { %v2677_v50 = vpop.f32.mrb[8].mxu0  ;;  %381 = vadd.xlane.f32.xlu0 %v380_v49  ;;  %v389_v34 = vsel %vm152_vm0, %v363_v26, 0.0  ;;  %v395_v49 = vsel %vm152_vm0, %v365_v46, 0.0 }
 0x15a   :  { %v3233_v51 = vadd.f32 %v2677_v50, %v3206_v30  ;;  %v243_v52 = vpop.f32.mrb[9].mxu0  ;;  %v3333_v50 = vld [vmem:[#allocation8 + $0x8] sm:$0xff]  }
 0x15b   :  { %v2678_v53 = vpop.f32.mrb[10].mxu0  ;;  %v3236_v54 = vadd.f32 %v3206_v30, %v243_v52  ;;  %2693 = vmatprep.subr.bf16.mxu0 %v3333_v50 }
 0x15c   :  { %v246_v55 = vpop.f32.mrb[11].mxu0  ;;  %v324_v56 = vsel %vm152_vm0, %v3233_v51, 0.0  ;;  %v3245_v59 = vadd.f32 %v2678_v53, %v3206_v30  ;;  %v368_v5 = vmul.f32 %v3233_v51, %v3233_v51  ;;  %2694 = vmatpush3.bf16.msra.mxu0 %v3333_v50 }
 0x15d   :  { %325 = vadd.xlane.f32.xlu1 %v324_v56  ;;  %298 = vadd.xlane.f32.xlu0 %v297_v57  ;;  %v318_v60 = vsel %vm152_vm0, %v3236_v54, 0.0  ;;  %v3264_v8 = vadd.f32 %v3206_v30, %v246_v55  ;;  %v366_v36 = vmul.f32 %v3236_v54, %v3236_v54 }
 0x15e   :  { %v327_v3 = vsel %vm152_vm0, %v3245_v59, 0.0  ;;  %v404_v9 = vsel %vm152_vm0, %v368_v5, 0.0  ;;  %v369_v14 = vmul.f32 %v3245_v59, %v3245_v59 }
 0x15f   :  { %v321_v12 = vsel %vm152_vm0, %v3264_v8, 0.0  ;;  %v367_v18 = vmul.f32 %v3264_v8, %v3264_v8  ;;  %v398_v39 = vsel %vm152_vm0, %v366_v36, 0.0 }
 0x160   :  { %v407_v16 = vsel %vm152_vm0, %v369_v14, 0.0 }
 0x161   :  { %319 = vadd.xlane.f32.xlu1 %v318_v60  ;;  %375 = vadd.xlane.f32.xlu0 %v374_v61  ;;  %v2681_v63 = vpop.f32.mrb[12].mxu0  ;;  %v401_v20 = vsel %vm152_vm0, %v367_v18, 0.0  ;;  %v4500_v60 = vmov 0.0   ;;  %v2772_v61 = vld [vmem:[#allocation7 + $0x8] sm:$0xff]  }
 0x162   :  { %v259_v0 = vpop.f32.mrb[13].mxu0  ;;  %v3287_v19 = vadd.f32 %v2681_v63, %v3206_v30  ;;  %2683 = vmatprep.subr.bf16.mxu1 %v4500_v60  ;;  %2687 = vmatprep.mubr.msk.bf16.mxu1 %vm3054_vm1, %v4500_v60 }
 0x163   :  { %v2682_v1 = vpop.f32.mrb[14].mxu0  ;;  %v3297_v24 = vadd.f32 %v3206_v30, %v259_v0  ;;  %2684 = vmatpush3.bf16.msra.mxu1 %v2771_v58  ;;  %2711 = vmatprep.subr.bf16.mxu0 %v4500_v60 }
 0x164   :  { %v262_v6 = vpop.f32.mrb[15].mxu0  ;;  %v336_v23 = vsel %vm152_vm0, %v3287_v19, 0.0  ;;  %v3303_v31 = vadd.f32 %v2682_v1, %v3206_v30  ;;  %v372_v41 = vmul.f32 %v3287_v19, %v3287_v19  ;;  %2685 = vmatprep.subr.bf16.mxu1 %v4500_v60 }
 0x165   :  { %328 = vadd.xlane.f32.xlu1 %v327_v3  ;;  %384 = vadd.xlane.f32.xlu0 %v383_v4  ;;  %v330_v33 = vsel %vm152_vm0, %v3297_v24, 0.0  ;;  %v3318_v43 = vadd.f32 %v3206_v30, %v262_v6  ;;  %v370_v30 = vmul.f32 %v3297_v24, %v3297_v24 }
 0x166   :  { %v339_v37 = vsel %vm152_vm0, %v3303_v31, 0.0  ;;  %v416_v44 = vsel %vm152_vm0, %v372_v41, 0.0  ;;  %v373_v56 = vmul.f32 %v3303_v31, %v3303_v31 }
 0x167   :  { %v333_v48 = vsel %vm152_vm0, %v3318_v43, 0.0  ;;  %v410_v52 = vsel %vm152_vm0, %v370_v30, 0.0  ;;  %v371_v53 = vmul.f32 %v3318_v43, %v3318_v43  ;;  %2686 = vmatpush3.bf16.msra.mxu1 %v2772_v61 }
 0x168   :  { %v419_v57 = vsel %vm152_vm0, %v373_v56, 0.0  ;;  %2747 = vmatprep.subr.bf16.mxu1 %v3324_v47 }
 0x169   :  { %405 = vadd.xlane.f32.xlu1 %v404_v9  ;;  %313 = vadd.xlane.f32.xlu0 %v312_v10  ;;  %v413_v55 = vsel %vm152_vm0, %v371_v53, 0.0 }
 0x16d   :  { %322 = vadd.xlane.f32.xlu1 %v321_v12  ;;  %307 = vadd.xlane.f32.xlu0 %v306_v13 }
 0x171   :  { %408 = vadd.xlane.f32.xlu1 %v407_v16  ;;  %316 = vadd.xlane.f32.xlu0 %v315_v17 }
 0x175   :  { %402 = vadd.xlane.f32.xlu1 %v401_v20  ;;  %310 = vadd.xlane.f32.xlu0 %v309_v21 }
 0x179   :  { %337 = vadd.xlane.f32.xlu1 %v336_v23  ;;  %387 = vadd.xlane.f32.xlu0 %v386_v25 }
 0x17d   :  { %331 = vadd.xlane.f32.xlu1 %v330_v33  ;;  %390 = vadd.xlane.f32.xlu0 %v389_v34 }
 0x181   :  { %340 = vadd.xlane.f32.xlu1 %v339_v37  ;;  %399 = vadd.xlane.f32.xlu0 %v398_v39 }
 0x185   :  { %417 = vadd.xlane.f32.xlu1 %v416_v44  ;;  %393 = vadd.xlane.f32.xlu0 %v392_v45 }
 0x189   :  { %334 = vadd.xlane.f32.xlu1 %v333_v48  ;;  %396 = vadd.xlane.f32.xlu0 %v395_v49  ;;  %v552_v49 = vsub.s32 1, %v3194_v27 }
 0x18d   :  { %411 = vadd.xlane.f32.xlu1 %v410_v52 }
 0x191   :  { %414 = vadd.xlane.f32.xlu1 %v413_v55 }
 0x195   :  { %420 = vadd.xlane.f32.xlu1 %v419_v57 }
 0x1da   :  { %v302_v62 = vpop.xlane.xlu0 %301 }
 0x1db   :  { %v344_v1 = vmul.f32 0.03125, %v302_v62 }
 0x1dd   :  { %v440_v5 = vmul.f32 %v344_v1, %v344_v1  ;;  %v488_v57 = vsub.f32 %v3209_v32, %v344_v1 }
 0x1de   :  { %v296_v63 = vpop.xlane.xlu0 %295 }
 0x1df   :  { %v379_v3 = vpop.xlane.xlu1 %378  ;;  %v3350_v13 = vmul.f32 0.03125, %v296_v63  ;;  %v3365_v63 = vrot.slane %v3202_v29, %v552_v49 }
 0x1e0   :  { %v423_v17 = vmul.f32 0.03125, %v379_v3 }
 0x1e1   :  { %v438_v23 = vmul.f32 %v3350_v13, %v3350_v13 }
 0x1e2   :  { %v305_v0 = vpop.xlane.xlu0 %304 }
 0x1e3   :  { %v3354_v33 = vmul.f32 0.03125, %v305_v0  ;;  %v572_v0 = vsub.s32 2, %v3194_v27 }
 0x1e5   :  { %v441_v46 = vmul.f32 %v3354_v33, %v3354_v33 }
 0x1e6   :  { %v382_v4 = vpop.xlane.xlu0 %381 }
 0x1e7   :  { %v424_v6 = vmul.f32 0.03125, %v382_v4 }
 0x1e9   :  { %v456_v9 = vsub.f32 %v424_v6, %v440_v5 }
 0x1ea   :  { %v326_v10 = vpop.xlane.xlu1 %325  ;;  %v299_v12 = vpop.xlane.xlu0 %298 }
 0x1eb   :  { %v472_v14 = vmax.f32 %v456_v9, 0.0  ;;  %v343_v16 = vmul.f32 0.03125, %v299_v12  ;;  %v3356_v41 = vmul.f32 0.03125, %v326_v10 }
 0x1ed   :  { %v504_v18 = vadd.f32 1e-05, %v472_v14  ;;  %v439_v20 = vmul.f32 %v343_v16, %v343_v16  ;;  %v448_v55 = vmul.f32 %v3356_v41, %v3356_v41  ;;  %v3371_v14 = vrot.slane %v3202_v29, %v572_v0 }
 0x1ee   :  { %v320_v21 = vpop.xlane.xlu1 %319  ;;  %v376_v22 = vpop.xlane.xlu0 %375  ;;  %v487_v1 = vsub.f32 %v3217_v38, %v343_v16  ;;  %v489_v38 = vsub.f32 %v3222_v40, %v3354_v33 }
 0x1ef   :  { %2781 = vrsqrt.f32 %v504_v18  ;;  %v455_v25 = vsub.f32 %v423_v17, %v439_v20  ;;  %v422_v26 = vmul.f32 0.03125, %v376_v22 }
 0x1f1   :  { %v471_v34 = vmax.f32 %v455_v25, 0.0  ;;  %v454_v36 = vsub.f32 %v422_v26, %v438_v23  ;;  %v486_v26 = vsub.f32 %v3212_v35, %v3350_v13 }
 0x1f2   :  { %v329_v37 = vpop.xlane.xlu1 %328  ;;  %v385_v39 = vpop.xlane.xlu0 %384 }
 0x1f3   :  { %v503_v42 = vadd.f32 1e-05, %v471_v34  ;;  %v470_v44 = vmax.f32 %v454_v36, 0.0  ;;  %v425_v45 = vmul.f32 0.03125, %v385_v39  ;;  %v3368_v9 = vmul.f32 0.03125, %v329_v37 }
 0x1f4   :  { %v3383_v34 = vmul.f32 0.03125, %v320_v21 }
 0x1f5   :  { %2783 = vrsqrt.f32 %v503_v42  ;;  %v502_v48 = vadd.f32 1e-05, %v470_v44  ;;  %v457_v30 = vsub.f32 %v425_v45, %v441_v46  ;;  %v449_v22 = vmul.f32 %v3368_v9, %v3368_v9 }
 0x1f6   :  { %v406_v52 = vpop.xlane.xlu1 %405  ;;  %v314_v53 = vpop.xlane.xlu0 %313  ;;  %v496_v46 = vsub.f32 %v3233_v51, %v3356_v41  ;;  %v3398_v40 = vmul.f32 %v3383_v34, %v3383_v34 }
 0x1f7   :  { %2785 = vrsqrt.f32 %v502_v48  ;;  %v432_v56 = vmul.f32 0.03125, %v406_v52  ;;  %v473_v58 = vmax.f32 %v457_v30, 0.0  ;;  %v494_v30 = vsub.f32 %v3236_v54, %v3383_v34 }
 0x1f8   :  { %v3405_v52 = vmul.f32 0.03125, %v314_v53 }
 0x1f9   :  { %v2782_v61 = vpop.eup %2781  ;;  %v464_v62 = vsub.f32 %v432_v56, %v448_v55  ;;  %v505_v4 = vadd.f32 1e-05, %v473_v58 }
 0x1fa   :  { %v536_v3 = vmul.f32 %v2782_v61, %v488_v57  ;;  %v323_v5 = vpop.xlane.xlu1 %322  ;;  %v308_v6 = vpop.xlane.xlu0 %307  ;;  %v497_v57 = vsub.f32 %v3245_v59, %v3368_v9 }
 0x1fb   :  { %v480_v10 = vmax.f32 %v464_v62, 0.0  ;;  %2787 = vrsqrt.f32 %v505_v4  ;;  %v3379_v23 = vmul.f32 0.03125, %v323_v5  ;;  %v3400_v33 = vmul.f32 0.03125, %v308_v6 }
 0x1fc   :  { %v556_v32 = vmul.f32 %v3365_v63, %v536_v3 }
 0x1fd   :  { %v512_v12 = vadd.f32 1e-05, %v480_v10  ;;  %v447_v35 = vmul.f32 %v3379_v23, %v3379_v23  ;;  %v442_v6 = vmul.f32 %v3400_v33, %v3400_v33 }
 0x1fe   :  { %v409_v17 = vpop.xlane.xlu1 %408  ;;  %v3375_v18 = vpop.xlane.xlu0 %316  ;;  %v3388_v16 = vadd.f32 %v3371_v14, %v556_v32 }
 0x1ff   :  { %v2784_v20 = vpop.eup %2783  ;;  %2789 = vrsqrt.f32 %v512_v12  ;;  %v433_v25 = vmul.f32 0.03125, %v409_v17 }
 0x200   :  { %v535_v29 = vmul.f32 %v2784_v20, %v487_v1  ;;  %v592_v0 = vmax.f32 %v3388_v16, 0.0  ;;  %v3419_v1 = vmul.f32 %v3405_v52, %v3405_v52 }
 0x201   :  { %v2786_v36 = vpop.eup %2785  ;;  %v465_v37 = vsub.f32 %v433_v25, %v449_v22 }
 0x202   :  { %v555_v39 = vmul.f32 %v3365_v63, %v535_v29  ;;  %v403_v42 = vpop.xlane.xlu1 %402  ;;  %v311_v44 = vpop.xlane.xlu0 %310  ;;  %v534_v45 = vmul.f32 %v2786_v36, %v486_v26  ;;  %v620_v36 = vsel %vm152_vm0, %v592_v0, -inf }
 0x203   :  { %v481_v13 = vmax.f32 %v465_v37, 0.0  ;;  %v431_v21 = vmul.f32 0.03125, %v403_v42  ;;  %v3411_v5 = vmul.f32 0.03125, %v311_v44 }
 0x204   :  { %v575_v48 = vadd.f32 %v3371_v14, %v555_v39  ;;  %v554_v49 = vmul.f32 %v3365_v63, %v534_v45 }
 0x205   :  { %v513_v51 = vadd.f32 1e-05, %v481_v13  ;;  %v463_v41 = vsub.f32 %v431_v21, %v447_v35  ;;  %v2788_v55 = vpop.eup %2787  ;;  %v443_v39 = vmul.f32 %v3411_v5, %v3411_v5  ;;  %v3430_v13 = vmul.f32 0.03125, %v3375_v18 }
 0x206   :  { %v591_v56 = vmax.f32 %v575_v48, 0.0  ;;  %v338_v58 = vpop.xlane.xlu1 %337  ;;  %v388_v61 = vpop.xlane.xlu0 %387  ;;  %v574_v62 = vadd.f32 %v3371_v14, %v554_v49  ;;  %v537_v3 = vmul.f32 %v2788_v55, %v489_v38  ;;  %v621_v48 = vrot.slane %v620_v36, 4 }
 0x207   :  { %2791 = vrsqrt.f32 %v513_v51  ;;  %v479_v4 = vmax.f32 %v463_v41, 0.0  ;;  %v426_v10 = vmul.f32 0.03125, %v388_v61 }
 0x208   :  { %v613_v53 = vsel %vm152_vm0, %v591_v56, -inf  ;;  %v590_v12 = vmax.f32 %v574_v62, 0.0  ;;  %v557_v9 = vmul.f32 %v3365_v63, %v537_v3 }
 0x209   :  { %v2790_v32 = vpop.eup %2789  ;;  %v614_v59 = vrot.slane %v613_v53, 4  ;;  %v511_v17 = vadd.f32 1e-05, %v479_v4  ;;  %v458_v22 = vsub.f32 %v426_v10, %v442_v6  ;;  %v492_v4 = vsub.f32 %v3253_v2, %v3405_v52 }
 0x20a   :  { %v544_v20 = vmul.f32 %v2790_v32, %v496_v46  ;;  %v332_v25 = vpop.xlane.xlu1 %331  ;;  %v391_v26 = vpop.xlane.xlu0 %390  ;;  %v606_v29 = vsel %vm152_vm0, %v590_v12, -inf  ;;  %v577_v38 = vadd.f32 %v3371_v14, %v557_v9  ;;  %v852_v21 = vpack.c.bf16 %v591_v56, %v590_v12 }
 0x20b   :  { %v615_v37 = vmax.f32 %v613_v53, %v614_v59  ;;  %2793 = vrsqrt.f32 %v511_v17  ;;  %v474_v44 = vmax.f32 %v458_v22, 0.0  ;;  %v427_v45 = vmul.f32 0.03125, %v391_v26 }
 0x20c   :  { %v564_v42 = vmul.f32 %v3365_v63, %v544_v20  ;;  %v607_v46 = vrot.slane %v606_v29, 4  ;;  %v495_v53 = vsub.f32 %v3264_v8, %v3379_v23  ;;  %2695 = vmatprep.mubr.msk.bf16.mxu0 %vm152_vm0, %v852_v21  ;;  %v593_v12 = vmax.f32 %v577_v38, 0.0 }
 0x20d   :  { %v616_v35 = vrot.slane %v615_v37, 2  ;;  %v506_v51 = vadd.f32 1e-05, %v474_v44  ;;  %v459_v41 = vsub.f32 %v427_v45, %v443_v39  ;;  %v490_v59 = vsub.f32 %v3261_v7, %v3400_v33 }
 0x20e   :  { %v3433_v49 = vadd.f32 %v3371_v14, %v564_v42  ;;  %v608_v55 = vmax.f32 %v606_v29, %v607_v46  ;;  %v341_v61 = vpop.xlane.xlu1 %340  ;;  %v400_v62 = vpop.xlane.xlu0 %399  ;;  %v3445_v9 = vmul.f32 %v3430_v13, %v3430_v13  ;;  %v622_v22 = vmax.f32 %v620_v36, %v621_v48 }
 0x20f   :  { %v617_v3 = vmax.f32 %v615_v37, %v616_v35  ;;  %v430_v18 = vmul.f32 0.03125, %v400_v62  ;;  %v475_v6 = vmax.f32 %v459_v41, 0.0  ;;  %2795 = vrsqrt.f32 %v506_v51 }
 0x210   :  { %v4498_v56 = vmax.f32 %v3433_v49, 0.0  ;;  %v609_v10 = vrot.slane %v608_v55, 2  ;;  %v3451_v37 = vmul.f32 0.03125, %v338_v58  ;;  %v627_v45 = vsel %vm152_vm0, %v593_v12, -inf }
 0x211   :  { %v2792_v32 = vpop.eup %2791  ;;  %v462_v17 = vsub.f32 %v430_v18, %v3398_v40  ;;  %v507_v20 = vadd.f32 1e-05, %v475_v6  ;;  %v618_v29 = vrot.slane %v617_v3, 1  ;;  %v493_v35 = vsub.f32 %v3270_v11, %v3430_v13 }
 0x212   :  { %v676_v8 = vsel %vm152_vm0, %v4498_v56, -inf  ;;  %v545_v23 = vmul.f32 %v2792_v32, %v497_v57  ;;  %v418_v26 = vpop.xlane.xlu1 %417  ;;  %v610_v38 = vmax.f32 %v608_v55, %v609_v10  ;;  %v394_v40 = vpop.xlane.xlu0 %393  ;;  %v491_v57 = vsub.f32 %v3279_v15, %v3411_v5 }
 0x213   :  { %v478_v39 = vmax.f32 %v462_v17, 0.0  ;;  %v677_v42 = vrot.slane %v676_v8, 4  ;;  %2797 = vrsqrt.f32 %v507_v20  ;;  %v3459_v36 = vmul.f32 0.03125, %v332_v25 }
 0x214   :  { %v565_v44 = vmul.f32 %v3365_v63, %v545_v23  ;;  %v3464_v51 = vmul.f32 0.03125, %v341_v61  ;;  %v623_v41 = vrot.slane %v622_v22, 2  ;;  %v452_v62 = vmul.f32 %v3451_v37, %v3451_v37 }
 0x215   :  { %v2794_v46 = vpop.eup %2793  ;;  %v510_v58 = vadd.f32 1e-05, %v478_v39  ;;  %v628_v18 = vrot.slane %v627_v45, 4  ;;  %v853_v6 = vpack.c.bf16 %v593_v12, %v592_v0  ;;  %v3470_v15 = vmax.f32 %v617_v3, %v618_v29 }
 0x216   :  { %v3462_v21 = vadd.f32 %v3371_v14, %v565_v44  ;;  %v543_v48 = vmul.f32 %v2794_v46, %v495_v53  ;;  %v335_v55 = vpop.xlane.xlu1 %334  ;;  %v3472_v5 = vmax.f32 %v676_v8, %v677_v42  ;;  %v611_v10 = vrot.slane %v610_v38, 1  ;;  %v397_v8 = vpop.xlane.xlu0 %396 }
 0x217   :  { %2799 = vrsqrt.f32 %v510_v58  ;;  %v500_v61 = vsub.f32 %v3287_v19, %v3451_v37  ;;  %v450_v53 = vmul.f32 %v3459_v36, %v3459_v36  ;;  %2696 = vmatmul.mubr.msk.bf16.vlgmr.msra.gmra.mrb[16].mxu0 %vm152_vm0, %v853_v6  ;;  %v436_v32 = vmul.f32 0.03125, %v418_v26 }
 0x218   :  { %v563_v25 = vmul.f32 %v3365_v63, %v543_v48  ;;  %v428_v17 = vmul.f32 0.03125, %v394_v40  ;;  %v4499_v16 = vmax.f32 %v3462_v21, 0.0  ;;  %v498_v3 = vsub.f32 %v3297_v24, %v3459_v36 }
 0x219   :  { %v453_v12 = vmul.f32 %v3464_v51, %v3464_v51  ;;  %v2796_v20 = vpop.eup %2795  ;;  %v3488_v29 = vmax.f32 %v622_v22, %v623_v41  ;;  %v629_v39 = vmax.f32 %v627_v45, %v628_v18  ;;  %v468_v42 = vsub.f32 %v436_v32, %v452_v62 }
 0x21a   :  { %v3482_v0 = vadd.f32 %v3371_v14, %v563_v25  ;;  %v412_v23 = vpop.xlane.xlu1 %411  ;;  %v460_v26 = vsub.f32 %v428_v17, %v3419_v1  ;;  %v723_v44 = vpack.c.bf16 %v3470_v15, %v3470_v15  ;;  %v679_v40 = vrot.slane %v3472_v5, 2 }
 0x21b   :  { %v3495_v58 = vmax.f32 %v610_v38, %v611_v10  ;;  %v484_v48 = vmax.f32 %v468_v42, 0.0  ;;  %v3497_v25 = vmul.f32 0.03125, %v335_v55  ;;  %v429_v56 = vmul.f32 0.03125, %v397_v8 }
 0x21c   :  { %v4502_v46 = vmax.f32 %v3482_v0, 0.0  ;;  %v476_v6 = vmax.f32 %v460_v26, 0.0  ;;  %v683_v45 = vsel %vm152_vm0, %v4499_v16, -inf  ;;  %v434_v41 = vmul.f32 0.03125, %v412_v23 }
 0x21d   :  { %v2798_v22 = vpop.eup %2797  ;;  %v538_v38 = vmul.f32 %v2796_v20, %v490_v59  ;;  %v630_v10 = vrot.slane %v629_v39, 2  ;;  %v516_v55 = vadd.f32 1e-05, %v484_v48  ;;  %v461_v17 = vsub.f32 %v429_v56, %v3445_v9 }
 0x21e   :  { %v669_v1 = vsel %vm152_vm0, %v4502_v46, -inf  ;;  %v415_v62 = vpop.xlane.xlu1 %414  ;;  %v508_v32 = vadd.f32 1e-05, %v476_v6  ;;  %v466_v8 = vsub.f32 %v434_v41, %v450_v53  ;;  %v539_v26 = vmul.f32 %v2798_v22, %v491_v57 }
 0x21f   :  { %v670_v18 = vrot.slane %v669_v1, 4  ;;  %v435_v42 = vmul.f32 0.03125, %v415_v62  ;;  %2801 = vrsqrt.f32 %v516_v55  ;;  %v451_v23 = vmul.f32 %v3497_v25, %v3497_v25 }
 0x220   :  { %v558_v46 = vmul.f32 %v3365_v63, %v538_v38  ;;  %2803 = vrsqrt.f32 %v508_v32  ;;  %v477_v33 = vmax.f32 %v461_v17, 0.0  ;;  %v482_v59 = vmax.f32 %v466_v8, 0.0 }
 0x221   :  { %v2800_v16 = vpop.eup %2799  ;;  %v671_v60 = vmax.f32 %v669_v1, %v670_v18  ;;  %v684_v56 = vrot.slane %v683_v45, 4  ;;  %v467_v9 = vsub.f32 %v435_v42, %v451_v23  ;;  %v559_v57 = vmul.f32 %v3365_v63, %v539_v26 }
 0x222   :  { %v542_v7 = vmul.f32 %v2800_v16, %v494_v30  ;;  %v421_v20 = vpop.xlane.xlu1 %420  ;;  %v509_v6 = vadd.f32 1e-05, %v477_v33  ;;  %v514_v22 = vadd.f32 1e-05, %v482_v59  ;;  %v578_v1 = vadd.f32 %v3371_v14, %v558_v46 }
 0x223   :  { %v437_v53 = vmul.f32 0.03125, %v421_v20  ;;  %v672_v41 = vrot.slane %v671_v60, 2  ;;  %v483_v62 = vmax.f32 %v467_v9, 0.0  ;;  %v579_v54 = vadd.f32 %v3371_v14, %v559_v57 }
 0x224   :  { %v562_v48 = vmul.f32 %v3365_v63, %v542_v7  ;;  %v722_v34 = vpack.c.bf16 %v3495_v58, %v3495_v58  ;;  %2805 = vrsqrt.f32 %v509_v6  ;;  %v594_v16 = vmax.f32 %v578_v1, 0.0 }
 0x225   :  { %v469_v38 = vsub.f32 %v437_v53, %v453_v12  ;;  %v685_v18 = vmax.f32 %v683_v45, %v684_v56  ;;  %2807 = vrsqrt.f32 %v514_v22  ;;  %v515_v55 = vadd.f32 1e-05, %v483_v62 }
 0x226   :  { %v3522_v30 = vadd.f32 %v3371_v14, %v562_v48  ;;  %v631_v46 = vmax.f32 %v629_v39, %v630_v10  ;;  %v595_v8 = vmax.f32 %v579_v54, 0.0  ;;  %v634_v12 = vsel %vm152_vm0, %v594_v16, -inf }
 0x227   :  { %v485_v32 = vmax.f32 %v469_v38, 0.0  ;;  %v673_v42 = vmax.f32 %v671_v60, %v672_v41  ;;  %2809 = vrsqrt.f32 %v515_v55  ;;  %v635_v23 = vrot.slane %v634_v12, 4 }
 0x228   :  { %v598_v17 = vmax.f32 %v3522_v30, 0.0  ;;  %v680_v58 = vmax.f32 %v3472_v5, %v679_v40  ;;  %v641_v45 = vsel %vm152_vm0, %v595_v8, -inf  ;;  %v854_v33 = vpack.c.bf16 %v595_v8, %v594_v16 }
 0x229   :  { %v517_v26 = vadd.f32 1e-05, %v485_v32  ;;  %v2802_v59 = vpop.eup %2801  ;;  %v686_v20 = vrot.slane %v685_v18, 2  ;;  %v636_v39 = vmax.f32 %v634_v12, %v635_v23  ;;  %v501_v60 = vsub.f32 %v3303_v31, %v3464_v51 }
 0x22a   :  { %v662_v7 = vsel %vm152_vm0, %v598_v17, -inf  ;;  %v2804_v10 = vpop.eup %2803  ;;  %v625_v9 = vrot.slane %v3488_v29, 1  ;;  %v548_v5 = vmul.f32 %v2802_v59, %v500_v61  ;;  %2699 = vmatprep.mubr.msk.bf16.mxu0 %vm152_vm0, %v854_v33  ;;  %v632_v40 = vrot.slane %v631_v46, 1 }
 0x22b   :  { %v663_v56 = vrot.slane %v662_v7, 4  ;;  %2811 = vrsqrt.f32 %v517_v26  ;;  %v674_v53 = vrot.slane %v673_v42, 1  ;;  %v642_v48 = vrot.slane %v641_v45, 4 }
 0x22c   :  { %v540_v6 = vmul.f32 %v2804_v10, %v492_v4  ;;  %v3544_v31 = vunpack.c.l.b16 %v723_v44  ;;  %v681_v51 = vrot.slane %v680_v58, 1  ;;  %v3546_v22 = vunpack.c.l.b16 %v722_v34 }
 0x22d   :  { %v664_v57 = vmax.f32 %v662_v7, %v663_v56  ;;  %v568_v19 = vmul.f32 %v3365_v63, %v548_v5  ;;  %v3549_v37 = vmax.f32 %v685_v18, %v686_v20  ;;  %v637_v1 = vrot.slane %v636_v39, 2 }
 0x22e   :  { %v560_v41 = vmul.f32 %v3365_v63, %v540_v6  ;;  %v2806_v62 = vpop.eup %2805  ;;  %v499_v52 = vsub.f32 %v3318_v43, %v3497_v25  ;;  %v3558_v4 = vmax.f32 %v3488_v29, %v625_v9  ;;  %v3560_v15 = vmax.f32 %v631_v46, %v632_v40 }
 0x22f   :  { %v665_v61 = vrot.slane %v664_v57, 2  ;;  %v3553_v2 = vadd.f32 %v3371_v14, %v568_v19  ;;  %v2808_v44 = vpop.eup %2807  ;;  %v3562_v38 = vmax.f32 %v673_v42, %v674_v53  ;;  %v643_v34 = vmax.f32 %v641_v45, %v642_v48 }
 0x230   :  { %v541_v16 = vmul.f32 %v2806_v62, %v493_v35  ;;  %v546_v43 = vmul.f32 %v2808_v44, %v498_v3  ;;  %v580_v29 = vadd.f32 %v3371_v14, %v560_v41  ;;  %v3572_v25 = vmax.f32 %v680_v58, %v681_v51 }
 0x231   :  { %v666_v54 = vmax.f32 %v664_v57, %v665_v61  ;;  %v604_v18 = vmax.f32 %v3553_v2, 0.0  ;;  %v2810_v55 = vpop.eup %2809  ;;  %v638_v46 = vmax.f32 %v636_v39, %v637_v1  ;;  %v688_v12 = vrot.slane %v3549_v37, 1 }
 0x232   :  { %v561_v8 = vmul.f32 %v3365_v63, %v541_v16  ;;  %v566_v11 = vmul.f32 %v3365_v63, %v546_v43  ;;  %v547_v13 = vmul.f32 %v2810_v55, %v499_v52  ;;  %v596_v35 = vmax.f32 %v580_v29, 0.0 }
 0x233   :  { %v667_v32 = vrot.slane %v666_v54, 1  ;;  %v724_v42 = vpack.c.bf16 %v3558_v4, %v3558_v4  ;;  %v644_v36 = vrot.slane %v643_v34, 2  ;;  %v704_v26 = vsel %vm152_vm0, %v604_v18, -inf }
 0x234   :  { %v581_v3 = vadd.f32 %v3371_v14, %v561_v8  ;;  %v725_v23 = vpack.c.bf16 %v3560_v15, %v3560_v15  ;;  %v3586_v58 = vadd.f32 %v3371_v14, %v566_v11  ;;  %v567_v7 = vmul.f32 %v3365_v63, %v547_v13 }
 0x235   :  { %v2812_v24 = vpop.eup %2811  ;;  %v648_v33 = vsel %vm152_vm0, %v596_v35, -inf  ;;  %v668_v59 = vmax.f32 %v666_v54, %v667_v32  ;;  %v639_v20 = vrot.slane %v638_v46, 1  ;;  %v705_v40 = vrot.slane %v704_v26, 4 }
 0x236   :  { %v549_v45 = vmul.f32 %v2812_v24, %v501_v60  ;;  %v597_v56 = vmax.f32 %v581_v3, 0.0  ;;  %v649_v39 = vrot.slane %v648_v33, 4  ;;  %v602_v10 = vmax.f32 %v3586_v58, 0.0 }
 0x237   :  { %v3592_v9 = vadd.f32 %v3371_v14, %v567_v7  ;;  %v645_v53 = vmax.f32 %v643_v34, %v644_v36  ;;  %v731_v62 = vpack.c.bf16 %v3562_v38, %v3562_v38  ;;  %v730_v34 = vpack.c.bf16 %v668_v59, %v668_v59 }
 0x238   :  { %v569_v5 = vmul.f32 %v3365_v63, %v549_v45  ;;  %v650_v57 = vmax.f32 %v648_v33, %v649_v39  ;;  %v655_v48 = vsel %vm152_vm0, %v597_v56, -inf  ;;  %v855_v6 = vpack.c.bf16 %v597_v56, %v596_v35 }
 0x239   :  { %v690_v60 = vsel %vm152_vm0, %v602_v10, -inf  ;;  %v603_v51 = vmax.f32 %v3592_v9, 0.0  ;;  %v656_v61 = vrot.slane %v655_v48, 4  ;;  %v706_v63 = vmax.f32 %v704_v26, %v705_v40 }
 0x23a   :  { %v3601_v19 = vadd.f32 %v3371_v14, %v569_v5  ;;  %v691_v1 = vrot.slane %v690_v60, 4  ;;  %v651_v41 = vrot.slane %v650_v57, 2  ;;  %2700 = vmatmul.mubr.msk.bf16.gmra.mrb[20].mxu0 %vm152_vm0, %v855_v6  ;;  %v4503_v14 = vmov 0.0  }
 0x23b   :  { %v697_v52 = vsel %vm152_vm0, %v603_v51, -inf  ;;  %v657_v54 = vmax.f32 %v655_v48, %v656_v61  ;;  %2719 = vmatprep.mubr.msk.bf16.mxu0 %vm3054_vm1, %v4503_v14  ;;  %v707_v55 = vrot.slane %v706_v63, 2  ;;  %v640_v32 = vmax.f32 %v638_v46, %v639_v20 }
 0x23c   :  { %v605_v44 = vmax.f32 %v3601_v19, 0.0  ;;  %v692_v16 = vmax.f32 %v690_v60, %v691_v1  ;;  %v698_v43 = vrot.slane %v697_v52, 4  ;;  %v652_v29 = vmax.f32 %v650_v57, %v651_v41 }
 0x23d   :  { %v646_v8 = vrot.slane %v645_v53, 1  ;;  %v658_v11 = vrot.slane %v657_v54, 2  ;;  %v708_v36 = vmax.f32 %v706_v63, %v707_v55  ;;  %v689_v26 = vmax.f32 %v3549_v37, %v688_v12 }
 0x23e   :  { %v711_v38 = vsel %vm152_vm0, %v605_v44, -inf  ;;  %v693_v13 = vrot.slane %v692_v16, 2  ;;  %v653_v35 = vrot.slane %v652_v29, 1  ;;  %v699_v24 = vmax.f32 %v697_v52, %v698_v43 }
 0x23f   :  { %v659_v3 = vmax.f32 %v657_v54, %v658_v11  ;;  %v712_v7 = vrot.slane %v711_v38, 4  ;;  %v732_v45 = vpack.c.bf16 %v3572_v25, %v3572_v25  ;;  %v709_v59 = vrot.slane %v708_v36, 1 }
 0x240   :  { %v694_v33 = vmax.f32 %v692_v16, %v693_v13  ;;  %v700_v46 = vrot.slane %v699_v24, 2  ;;  %v762_v20 = vunpack.c.l.b16 %v730_v34  ;;  %v647_v56 = vmax.f32 %v645_v53, %v646_v8 }
 0x241   :  { %v660_v39 = vrot.slane %v659_v3, 1  ;;  %v713_v5 = vmax.f32 %v711_v38, %v712_v7  ;;  %v763_v40 = vunpack.c.l.b16 %v731_v62  ;;  %v726_v57 = vpack.c.bf16 %v640_v32, %v640_v32 }
 0x242   :  { %v654_v48 = vmax.f32 %v652_v29, %v653_v35  ;;  %v695_v6 = vrot.slane %v694_v33, 1  ;;  %v701_v60 = vmax.f32 %v699_v24, %v700_v46  ;;  %v733_v12 = vpack.c.bf16 %v689_v26, %v689_v26 }
 0x243   :  { %v661_v61 = vmax.f32 %v659_v3, %v660_v39  ;;  %v714_v37 = vrot.slane %v713_v5, 2  ;;  %v756_v25 = vunpack.c.l.b16 %v724_v42  ;;  %v710_v63 = vmax.f32 %v708_v36, %v709_v59 }
 0x244   :  { %v696_v1 = vmax.f32 %v694_v33, %v695_v6  ;;  %v702_v41 = vrot.slane %v701_v60, 1  ;;  %v784_v53 = vsel %vm770_vm2, %v763_v40, %v762_v20  ;;  %v727_v52 = vpack.c.bf16 %v647_v56, %v647_v56 }
 0x245   :  { %v715_v54 = vmax.f32 %v713_v5, %v714_v37  ;;  %v757_v62 = vunpack.c.l.b16 %v725_v23  ;;  %v764_v34 = vunpack.c.l.b16 %v732_v45  ;;  %v758_v16 = vunpack.c.l.b16 %v726_v57 }
 0x246   :  { %v703_v43 = vmax.f32 %v701_v60, %v702_v41  ;;  %v728_v29 = vpack.c.bf16 %v654_v48, %v654_v48  ;;  %v734_v55 = vpack.c.bf16 %v696_v1, %v696_v1  ;;  %v729_v8 = vpack.c.bf16 %v661_v61, %v661_v61 }
 0x247   :  { %v716_v32 = vrot.slane %v715_v54, 1  ;;  %v771_v4 = vsel %vm770_vm2, %v3544_v31, %v3546_v22  ;;  %v785_v42 = vsel %vm772_vm3, %v764_v34, %v784_v53  ;;  %v736_v38 = vpack.c.bf16 %v710_v63, %v710_v63 }
 0x248   :  { %v735_v11 = vpack.c.bf16 %v703_v43, %v703_v43  ;;  %v765_v13 = vunpack.c.l.b16 %v733_v12  ;;  %v766_v35 = vunpack.c.l.b16 %v734_v55  ;;  %v759_v15 = vunpack.c.l.b16 %v727_v52 }
 0x249   :  { %v717_v24 = vmax.f32 %v715_v54, %v716_v32  ;;  %v760_v23 = vunpack.c.l.b16 %v728_v29  ;;  %v773_v3 = vsel %vm772_vm3, %v756_v25, %v771_v4  ;;  %v761_v45 = vunpack.c.l.b16 %v729_v8 }
 0x24a   :  { %v767_v36 = vunpack.c.l.b16 %v735_v11  ;;  %v786_v26 = vsel %vm774_vm4, %v765_v13, %v785_v42  ;;  %v775_v31 = vsel %vm774_vm4, %v757_v62, %v773_v3  ;;  %v768_v33 = vunpack.c.l.b16 %v736_v38  ;;  %v3693_v38 = vld [vmem:[%s4496_s6] sm:$0xff] }
 0x24b   :  { %v737_v7 = vpack.c.bf16 %v717_v24, %v717_v24  ;;  %v787_v22 = vsel %vm776_vm5, %v766_v35, %v786_v26  ;;  %v777_v46 = vsel %vm776_vm5, %v758_v16, %v775_v31  ;;  %v4504_v6 = vmax.f32 %v3482_v0, 0.0 }
 0x24c   :  { %v788_v59 = vsel %vm778_vm6, %v767_v36, %v787_v22  ;;  %v779_v56 = vsel %vm778_vm6, %v759_v15, %v777_v46  ;;  %v4505_v61 = vmax.f32 %v3433_v49, 0.0  ;;  %v4506_v37 = vmax.f32 %v3462_v21, 0.0 }
 0x24d   :  { %v769_v20 = vunpack.c.l.b16 %v737_v7  ;;  %v781_v39 = vsel %vm780_vm7, %v760_v23, %v779_v56  ;;  %v789_v5 = vsel %vm780_vm7, %v768_v33, %v788_v59  ;;  %v856_v60 = vpack.c.bf16 %v4504_v6, %v598_v17 }
 0x24e   :  { %v783_v40 = vsel %vm782_vm8, %v761_v45, %v781_v39  ;;  %v857_v12 = vpack.c.bf16 %v4506_v37, %v4505_v61  ;;  %v858_v0 = vpack.c.bf16 %v603_v51, %v602_v10  ;;  %v3055_v51 = vmov 1966171168  }
 0x24f   :  { %v790_v57 = vsel %vm782_vm8, %v769_v20, %v789_v5  ;;  %v997_v2 = vunpack.c.l.s4 %v3055_v51  ;;  %v1191_v34 = vsub.s32 3, %v3194_v27 }
 0x250   :  { %v791_v48 = vpack.c.b16 %v790_v57, %v783_v40 }
 0x251   :  { %v998_v25 = vunpack.c.0.s8 %v997_v2  ;;  %v3696_v13 = vrot.slane %v3693_v38, %v1191_v34 }
 0x252   :  { %2688 = vmatmul.mubr.msk.bf16.vlgmr.msra.gmra.mrb[0].mxu1 %vm152_vm0, %v791_v48 }
 0x253   :  { %2749 = vmatpush3.bf16.msra.mxu1 %v3324_v47  ;;  %2703 = vmatprep.mubr.msk.bf16.mxu1 %vm152_vm0, %v856_v60  ;;  %v859_v47 = vpack.c.bf16 %v605_v44, %v604_v18  ;;  %v3675_v18 = vsub.s32 %v998_v25, %v3194_v27 }
 0x254   :  { %2748 = vmatprep.subr.bf16.mxu1 %v3333_v50 }
 0x257   :  { %2750 = vmatpush3.bf16.msra.mxu1 %v3333_v50 }
 0x25a   :  { %2704 = vmatmul.mubr.msk.bf16.vlgmr.msra.gmra.mrb[4].mxu1 %vm152_vm0, %v857_v12 }
 0x25b   :  { %2707 = vmatprep.mubr.msk.bf16.mxu1 %vm152_vm0, %v858_v0 }
 0x262   :  { %2708 = vmatmul.mubr.msk.bf16.gmra.mrb[8].mxu1 %vm152_vm0, %v859_v47 }
 0x2ea   :  { %v2697_v50 = vpop.f32.mrb[16].mxu0 }
 0x2eb   :  { %v930_v49 = vpop.f32.mrb[17].mxu0 }
 0x2ec   :  { %v3664_v21 = vpop.f32.mrb[18].mxu0 }
 0x2ed   :  { %v933_v30 = vpop.f32.mrb[19].mxu0 }
 0x30d   :  { %v3666_v17 = vpop.f32.mrb[20].mxu0 }
 0x30e   :  { %v3668_v58 = vpop.f32.mrb[21].mxu0 }
 0x30f   :  { %v3670_v10 = vpop.f32.mrb[22].mxu0 }
 0x310   :  { %v3672_v9 = vpop.f32.mrb[23].mxu0 }
 0x325   :  { %v841_v19 = vpop.f32.mrb[0].mxu1 }
 0x326   :  { %v995_v44 = vcombine.high %v841_v19, %v841_v19  ;;  %v1002_v1 = vrot.slane %v841_v19, %v3675_v18  ;;  %v2689_v41 = vpop.f32.mrb[1].mxu1 }
 0x327   :  { %v844_v63 = vpop.f32.mrb[2].mxu1 }
 0x328   :  { %v1010_v53 = vcombine.high %v1002_v1, %v1002_v1  ;;  %v1018_v52 = vrot.slane %v1002_v1, %v3675_v18  ;;  %v1044_v54 = vcombine.high %v844_v63, %v844_v63  ;;  %v2690_v62 = vpop.f32.mrb[3].mxu1  ;;  %v1009_v16 = vrot.slane %v995_v44, %v3675_v18 }
 0x329   :  { %v1051_v43 = vrot.slane %v844_v63, %v3675_v18 }
 0x32a   :  { %v3683_v29 = vrot.slane %v1010_v53, %v3675_v18  ;;  %v1040_v55 = vcombine.high %v1018_v52, %v1018_v52  ;;  %v1096_v32 = vrot.slane %v1018_v52, %v3197_v28  ;;  %v1058_v8 = vrot.slane %v1044_v54, %v3675_v18 }
 0x32b   :  { %v1059_v4 = vcombine.high %v1051_v43, %v1051_v43  ;;  %v1067_v42 = vrot.slane %v1051_v43, %v3675_v18  ;;  %v3699_v35 = vrot.slane %v1009_v16, %v3675_v18  ;;  %v1011_v36 = vcombine.high %v1009_v16, %v1009_v16 }
 0x32c   :  { %v1100_v11 = vrot.slane %v3683_v29, %v3197_v28  ;;  %v1104_v24 = vrot.slane %v1040_v55, %v3197_v28  ;;  %v1074_v15 = vrot.slane %v1058_v8, %v3675_v18  ;;  %v1173_v22 = vadd.f32 %v1096_v32, %v930_v49 }
 0x32d   :  { %v2705_v23 = vpop.f32.mrb[4].mxu1  ;;  %v1081_v3 = vrot.slane %v1059_v4, %v3675_v18  ;;  %v1089_v26 = vcombine.high %v1067_v42, %v1067_v42  ;;  %v1128_v45 = vrot.slane %v1067_v42, %v3197_v28  ;;  %v1112_v57 = vrot.slane %v3699_v35, %v3197_v28 }
 0x32e   :  { %v962_v7 = vpop.f32.mrb[5].mxu1  ;;  %v1174_v33 = vadd.f32 %v1100_v11, %v933_v30  ;;  %v1175_v46 = vadd.f32 %v2697_v50, %v1104_v24  ;;  %v1090_v59 = vcombine.high %v1074_v15, %v1074_v15  ;;  %v1060_v48 = vcombine.high %v1058_v8, %v1058_v8 }
 0x32f   :  { %v2706_v31 = vpop.f32.mrb[6].mxu1  ;;  %v1136_v20 = vrot.slane %v1089_v26, %v3197_v28  ;;  %v1181_v56 = vadd.f32 %v1128_v45, %v962_v7  ;;  %v1091_v39 = vcombine.high %v1081_v3, %v1081_v3  ;;  %v1132_v40 = vrot.slane %v1081_v3, %v3197_v28 }
 0x330   :  { %v965_v5 = vpop.f32.mrb[7].mxu1  ;;  %v3710_v6 = vadd.f32 %v3696_v13, %v1173_v22  ;;  %v3713_v60 = vadd.f32 %v3696_v13, %v1174_v33  ;;  %v3717_v0 = vadd.f32 %v3696_v13, %v1175_v46  ;;  %v1039_v47 = vrot.slane %v1011_v36, %v3675_v18 }
 0x331   :  { %v1183_v61 = vadd.f32 %v2705_v23, %v1136_v20  ;;  %v1140_v37 = vrot.slane %v1091_v39, %v3197_v28  ;;  %v1182_v12 = vadd.f32 %v1132_v40, %v965_v5  ;;  %v1152_v2 = vrot.slane %v1090_v59, %v3197_v28 }
 0x332   :  { %v1210_v50 = vsel %vm1209_vm9, %v3710_v6, 0.0  ;;  %v1213_v49 = vsel %vm1209_vm9, %v3713_v60, 0.0  ;;  %v1042_v25 = vcombine.high %v3683_v29, %v3683_v29  ;;  %v1144_v44 = vrot.slane %v1074_v15, %v3197_v28 }
 0x333   :  { %v3725_v30 = vadd.f32 %v3696_v13, %v1183_v61  ;;  %v1184_v51 = vadd.f32 %v2706_v31, %v1140_v37  ;;  %1211 = vadd.xlane.f32.xlu0 %v1210_v50  ;;  %1214 = vadd.xlane.f32.xlu1 %v1213_v49  ;;  %v1088_v1 = vrot.slane %v1060_v48, %v3675_v18  ;;  %v1216_v63 = vsel %vm1209_vm9, %v3717_v0, 0.0 }
 0x334   :  { %v1177_v41 = vadd.f32 %v1112_v57, %v3668_v58  ;;  %v1274_v54 = vmul.f32 %v3710_v6, %v3710_v6  ;;  %v1275_v62 = vmul.f32 %v3713_v60, %v3713_v60  ;;  %v1041_v32 = vcombine.high %v3699_v35, %v3699_v35 }
 0x335   :  { %v2709_v19 = vpop.f32.mrb[8].mxu1  ;;  %v1240_v16 = vsel %vm1209_vm9, %v3725_v30, 0.0  ;;  %v1092_v29 = vcombine.high %v1088_v1, %v1088_v1  ;;  %v1148_v55 = vrot.slane %v1088_v1, %v3197_v28  ;;  %v1108_v42 = vrot.slane %v1042_v25, %v3197_v28 }
 0x336   :  { %v1187_v53 = vadd.f32 %v2709_v19, %v1152_v2  ;;  %v978_v52 = vpop.f32.mrb[9].mxu1  ;;  %v3749_v11 = vadd.f32 %v3696_v13, %v1182_v12  ;;  %v1290_v24 = vsel %vm1209_vm9, %v1274_v54, 0.0  ;;  %v1293_v15 = vsel %vm1209_vm9, %v1275_v62, 0.0 }
 0x337   :  { %v1185_v34 = vadd.f32 %v1144_v44, %v978_v52  ;;  %v2710_v43 = vpop.f32.mrb[10].mxu1  ;;  %1217 = vadd.xlane.f32.xlu0 %v1216_v63  ;;  %1241 = vadd.xlane.f32.xlu1 %v1240_v16  ;;  %v1156_v8 = vrot.slane %v1092_v29, %v3197_v28  ;;  %v3754_v36 = vadd.f32 %v3696_v13, %v1177_v41 }
 0x338   :  { %v981_v58 = vpop.f32.mrb[11].mxu1  ;;  %v1176_v3 = vadd.f32 %v3664_v21, %v1108_v42  ;;  %v1116_v35 = vrot.slane %v1039_v47, %v3197_v28  ;;  %v1043_v26 = vcombine.high %v1039_v47, %v1039_v47  ;;  %v1120_v45 = vrot.slane %v1041_v32, %v3197_v28 }
 0x339   :  { %v3745_v4 = vadd.f32 %v1148_v55, %v981_v58  ;;  %v1188_v23 = vadd.f32 %v2710_v43, %v1156_v8  ;;  %v3761_v31 = vadd.f32 %v3696_v13, %v1181_v56  ;;  %v3764_v22 = vadd.f32 %v3696_v13, %v1184_v51 }
 0x33a   :  { %v1178_v7 = vadd.f32 %v1116_v35, %v3672_v9  ;;  %v1222_v33 = vsel %vm1209_vm9, %v3754_v36, 0.0  ;;  %v1237_v21 = vsel %vm1209_vm9, %v3749_v11, 0.0  ;;  %v1179_v46 = vadd.f32 %v3666_v17, %v1120_v45 }
 0x33b   :  { %1291 = vadd.xlane.f32.xlu0 %v1290_v24  ;;  %1294 = vadd.xlane.f32.xlu1 %v1293_v15  ;;  %v1124_v9 = vrot.slane %v1043_v26, %v3197_v28  ;;  %v1234_v59 = vsel %vm1209_vm9, %v3761_v31, 0.0  ;;  %v1243_v20 = vsel %vm1209_vm9, %v3764_v22, 0.0  ;;  %v3777_v56 = vadd.f32 %v3696_v13, %v1176_v3 }
 0x33c   :  { %v1284_v39 = vmul.f32 %v3725_v30, %v3725_v30  ;;  %v1276_v57 = vmul.f32 %v3717_v0, %v3717_v0  ;;  %v1283_v48 = vmul.f32 %v3749_v11, %v3749_v11  ;;  %v1285_v12 = vmul.f32 %v3764_v22, %v3764_v22 }
 0x33d   :  { %v1180_v5 = vadd.f32 %v3670_v10, %v1124_v9  ;;  %v1219_v17 = vsel %vm1209_vm9, %v3777_v56, 0.0  ;;  %v3792_v10 = vadd.f32 %v3696_v13, %v1178_v7  ;;  %v3797_v47 = vadd.f32 %v3696_v13, %v1187_v53  ;;  %v2776_v9 = vld [vmem:[#allocation11 + $0x18] sm:$0xff]  }
 0x33e   :  { %v1320_v40 = vsel %vm1209_vm9, %v1284_v39, 0.0  ;;  %v1296_v61 = vsel %vm1209_vm9, %v1276_v57, 0.0  ;;  %v1317_v37 = vsel %vm1209_vm9, %v1283_v48, 0.0  ;;  %v1323_v49 = vsel %vm1209_vm9, %v1285_v12, 0.0  ;;  %v2779_v39 = vld [vmem:[#allocation10 + $0x10] sm:$0xff]  }
 0x33f   :  { %1223 = vadd.xlane.f32.xlu0 %v1222_v33  ;;  %1238 = vadd.xlane.f32.xlu1 %v1237_v21  ;;  %v1225_v50 = vsel %vm1209_vm9, %v3792_v10, 0.0  ;;  %v3803_v51 = vadd.f32 %v3696_v13, %v1179_v46  ;;  %v3806_v2 = vadd.f32 %v3696_v13, %v1185_v34  ;;  %v1252_v19 = vsel %vm1209_vm9, %v3797_v47, 0.0  ;;  %v2773_v33 = vld [vmem:[#allocation11] sm:$0xff]   ;;  %v2774_v21 = vld [vmem:[#allocation11 + $0x8] sm:$0xff]   ;;  %v2775_v46 = vld [vmem:[#allocation11 + $0x10] sm:$0xff]  }
 0x340   :  { %v1278_v44 = vmul.f32 %v3754_v36, %v3754_v36  ;;  %v3815_v1 = vadd.f32 %v3696_v13, %v1188_v23  ;;  %v1282_v53 = vmul.f32 %v3761_v31, %v3761_v31  ;;  %v1277_v62 = vmul.f32 %v3777_v56, %v3777_v56  ;;  %2723 = vmatprep.subr.bf16.mxu1 %v2773_v33 }
 0x341   :  { %v1228_v25 = vsel %vm1209_vm9, %v3803_v51, 0.0  ;;  %v1246_v63 = vsel %vm1209_vm9, %v3806_v2, 0.0  ;;  %v1288_v34 = vmul.f32 %v3797_v47, %v3797_v47  ;;  %v3831_v16 = vadd.f32 %v3696_v13, %v3745_v4  ;;  %2724 = vmatpush3.bf16.msra.mxu1 %v2773_v33 }
 0x342   :  { %v1302_v41 = vsel %vm1209_vm9, %v1278_v44, 0.0  ;;  %v1314_v52 = vsel %vm1209_vm9, %v1282_v53, 0.0  ;;  %v1255_v54 = vsel %vm1209_vm9, %v3815_v1, 0.0  ;;  %v1299_v43 = vsel %vm1209_vm9, %v1277_v62, 0.0  ;;  %2725 = vmatprep.subr.bf16.mxu1 %v2774_v21 }
 0x343   :  { %1235 = vadd.xlane.f32.xlu0 %v1234_v59  ;;  %1244 = vadd.xlane.f32.xlu1 %v1243_v20  ;;  %v1332_v29 = vsel %vm1209_vm9, %v1288_v34, 0.0  ;;  %v3836_v55 = vadd.f32 %v3696_v13, %v1180_v5  ;;  %v1249_v32 = vsel %vm1209_vm9, %v3831_v16, 0.0  ;;  %v1279_v8 = vmul.f32 %v3792_v10, %v3792_v10  ;;  %v2777_v59 = vld [vmem:[#allocation10] sm:$0xff]   ;;  %v2778_v20 = vld [vmem:[#allocation10 + $0x8] sm:$0xff]   ;;  %v2780_v5 = vld [vmem:[#allocation10 + $0x18] sm:$0xff]  }
 0x344   :  { %v1286_v4 = vmul.f32 %v3806_v2, %v3806_v2  ;;  %v1280_v24 = vmul.f32 %v3803_v51, %v3803_v51  ;;  %v1287_v15 = vmul.f32 %v3831_v16, %v3831_v16  ;;  %v1289_v26 = vmul.f32 %v3815_v1, %v3815_v1  ;;  %2712 = vmatpush3.bf16.msra.mxu0 %v2777_v59 }
 0x345   :  { %v1231_v58 = vsel %vm1209_vm9, %v3836_v55, 0.0  ;;  %v1305_v42 = vsel %vm1209_vm9, %v1279_v8, 0.0  ;;  %v1281_v35 = vmul.f32 %v3836_v55, %v3836_v55  ;;  %2726 = vmatpush3.bf16.msra.mxu1 %v2774_v21  ;;  %2713 = vmatprep.subr.bf16.mxu0 %v4503_v14 }
 0x346   :  { %v1326_v13 = vsel %vm1209_vm9, %v1286_v4, 0.0  ;;  %v1308_v23 = vsel %vm1209_vm9, %v1280_v24, 0.0  ;;  %v1329_v3 = vsel %vm1209_vm9, %v1287_v15, 0.0  ;;  %v1335_v45 = vsel %vm1209_vm9, %v1289_v26, 0.0  ;;  %2727 = vmatprep.subr.bf16.mxu1 %v2775_v46 }
 0x347   :  { %1220 = vadd.xlane.f32.xlu0 %v1219_v17  ;;  %1321 = vadd.xlane.f32.xlu1 %v1320_v40  ;;  %v1311_v7 = vsel %vm1209_vm9, %v1281_v35, 0.0  ;;  %v1468_v15 = vsub.s32 4, %v3194_v27 }
 0x348   :  { %2714 = vmatpush3.bf16.msra.mxu0 %v2778_v20 }
 0x349   :  { %2728 = vmatpush3.bf16.msra.mxu1 %v2775_v46  ;;  %2715 = vmatprep.subr.bf16.mxu0 %v4503_v14 }
 0x34a   :  { %2729 = vmatprep.subr.bf16.mxu1 %v2776_v9 }
 0x34b   :  { %1297 = vadd.xlane.f32.xlu0 %v1296_v61  ;;  %1318 = vadd.xlane.f32.xlu1 %v1317_v37 }
 0x34c   :  { %2716 = vmatpush3.bf16.msra.mxu0 %v2779_v39 }
 0x34d   :  { %2730 = vmatpush3.bf16.msra.mxu1 %v2776_v9  ;;  %2717 = vmatprep.subr.bf16.mxu0 %v4503_v14  ;;  %v3879_v9 = vrot.slane %v3693_v38, %v1468_v15 }
 0x34f   :  { %1226 = vadd.xlane.f32.xlu0 %v1225_v50  ;;  %1324 = vadd.xlane.f32.xlu1 %v1323_v49 }
 0x350   :  { %2718 = vmatpush3.bf16.msra.mxu0 %v2780_v5 }
 0x353   :  { %1229 = vadd.xlane.f32.xlu0 %v1228_v25  ;;  %1253 = vadd.xlane.f32.xlu1 %v1252_v19 }
 0x357   :  { %1303 = vadd.xlane.f32.xlu0 %v1302_v41  ;;  %1247 = vadd.xlane.f32.xlu1 %v1246_v63 }
 0x35b   :  { %1315 = vadd.xlane.f32.xlu0 %v1314_v52  ;;  %1256 = vadd.xlane.f32.xlu1 %v1255_v54 }
 0x35f   :  { %1300 = vadd.xlane.f32.xlu0 %v1299_v43  ;;  %1333 = vadd.xlane.f32.xlu1 %v1332_v29 }
 0x363   :  { %1232 = vadd.xlane.f32.xlu0 %v1231_v58  ;;  %1250 = vadd.xlane.f32.xlu1 %v1249_v32 }
 0x367   :  { %1306 = vadd.xlane.f32.xlu0 %v1305_v42  ;;  %1327 = vadd.xlane.f32.xlu1 %v1326_v13 }
 0x36b   :  { %1309 = vadd.xlane.f32.xlu0 %v1308_v23  ;;  %1330 = vadd.xlane.f32.xlu1 %v1329_v3  ;;  %v1488_v3 = vsub.s32 5, %v3194_v27 }
 0x36f   :  { %1312 = vadd.xlane.f32.xlu0 %v1311_v7  ;;  %1336 = vadd.xlane.f32.xlu1 %v1335_v45 }
 0x3c0   :  { %v1212_v17 = vpop.xlane.xlu0 %1211  ;;  %v1215_v40 = vpop.xlane.xlu1 %1214 }
 0x3c1   :  { %v1258_v61 = vmul.f32 0.015625, %v1212_v17  ;;  %v1259_v37 = vmul.f32 0.015625, %v1215_v40 }
 0x3c3   :  { %v1354_v49 = vmul.f32 %v1258_v61, %v1258_v61  ;;  %v1355_v25 = vmul.f32 %v1259_v37, %v1259_v37  ;;  %v1402_v46 = vsub.f32 %v3710_v6, %v1258_v61  ;;  %v1403_v17 = vsub.f32 %v3713_v60, %v1259_v37 }
 0x3c4   :  { %v1218_v57 = vpop.xlane.xlu0 %1217  ;;  %v1242_v48 = vpop.xlane.xlu1 %1241 }
 0x3c5   :  { %v3863_v58 = vmul.f32 0.015625, %v1242_v48  ;;  %v3865_v4 = vmul.f32 0.015625, %v1218_v57  ;;  %v3883_v57 = vrot.slane %v3693_v38, %v1488_v3 }
 0x3c7   :  { %v1364_v24 = vmul.f32 %v3863_v58, %v3863_v58  ;;  %v1356_v7 = vmul.f32 %v3865_v4, %v3865_v4 }
 0x3c8   :  { %v1292_v12 = vpop.xlane.xlu0 %1291  ;;  %v1295_v50 = vpop.xlane.xlu1 %1294 }
 0x3c9   :  { %v1338_v19 = vmul.f32 0.015625, %v1292_v12  ;;  %v1339_v44 = vmul.f32 0.015625, %v1295_v50 }
 0x3cb   :  { %v1370_v41 = vsub.f32 %v1338_v19, %v1354_v49  ;;  %v1371_v63 = vsub.f32 %v1339_v44, %v1355_v25 }
 0x3cc   :  { %v1224_v53 = vpop.xlane.xlu0 %1223  ;;  %v1239_v52 = vpop.xlane.xlu1 %1238 }
 0x3cd   :  { %v1386_v54 = vmax.f32 %v1370_v41, 0.0  ;;  %v1387_v62 = vmax.f32 %v1371_v63, 0.0  ;;  %v3867_v42 = vmul.f32 0.015625, %v1239_v52 }
 0x3cf   :  { %v1418_v14 = vadd.f32 1e-05, %v1386_v54  ;;  %v1419_v34 = vadd.f32 1e-05, %v1387_v62  ;;  %v1363_v45 = vmul.f32 %v3867_v42, %v3867_v42  ;;  %v3892_v62 = vmul.f32 0.015625, %v1224_v53 }
 0x3d0   :  { %v1236_v43 = vpop.xlane.xlu0 %1235  ;;  %v1245_v29 = vpop.xlane.xlu1 %1244 }
 0x3d1   :  { %2813 = vrsqrt.f32 %v1418_v14  ;;  %v3885_v19 = vmul.f32 0.015625, %v1245_v29  ;;  %v3899_v3 = vmul.f32 0.015625, %v1236_v43  ;;  %v1404_v43 = vsub.f32 %v3717_v0, %v3865_v4 }
 0x3d2   :  { %2815 = vrsqrt.f32 %v1419_v34 }
 0x3d3   :  { %v1365_v14 = vmul.f32 %v3885_v19, %v3885_v19 }
 0x3d4   :  { %v1221_v32 = vpop.xlane.xlu0 %1220  ;;  %v1322_v8 = vpop.xlane.xlu1 %1321 }
 0x3d5   :  { %v1348_v13 = vmul.f32 0.015625, %v1322_v8 }
 0x3d7   :  { %v1380_v23 = vsub.f32 %v1348_v13, %v1364_v24 }
 0x3d8   :  { %v1298_v35 = vpop.xlane.xlu0 %1297  ;;  %v1319_v26 = vpop.xlane.xlu1 %1318 }
 0x3d9   :  { %v1340_v33 = vmul.f32 0.015625, %v1298_v35  ;;  %v1347_v21 = vmul.f32 0.015625, %v1319_v26  ;;  %v1396_v40 = vmax.f32 %v1380_v23, 0.0  ;;  %v1358_v23 = vmul.f32 %v3892_v62, %v3892_v62 }
 0x3db   :  { %v2814_v59 = vpop.eup %2813  ;;  %v1372_v20 = vsub.f32 %v1340_v33, %v1356_v7  ;;  %v1379_v39 = vsub.f32 %v1347_v21, %v1363_v45  ;;  %v1428_v63 = vadd.f32 1e-05, %v1396_v40  ;;  %v3902_v45 = vmul.f32 0.015625, %v1221_v32 }
 0x3dc   :  { %v2816_v5 = vpop.eup %2815  ;;  %v1227_v48 = vpop.xlane.xlu0 %1226  ;;  %v1450_v50 = vmul.f32 %v2814_v59, %v1402_v46  ;;  %v1362_v59 = vmul.f32 %v3899_v3, %v3899_v3  ;;  %v1412_v40 = vsub.f32 %v3725_v30, %v3863_v58  ;;  %v1406_v32 = vsub.f32 %v3754_v36, %v3892_v62 }
 0x3dd   :  { %v1325_v12 = vpop.xlane.xlu1 %1324  ;;  %v1388_v49 = vmax.f32 %v1372_v20, 0.0  ;;  %v1395_v25 = vmax.f32 %v1379_v39, 0.0  ;;  %v1451_v6 = vmul.f32 %v2816_v5, %v1403_v17 }
 0x3de   :  { %v1470_v61 = vmul.f32 %v3879_v9, %v1450_v50  ;;  %v1349_v52 = vmul.f32 0.015625, %v1325_v12 }
 0x3df   :  { %v1420_v44 = vadd.f32 1e-05, %v1388_v49  ;;  %v1427_v41 = vadd.f32 1e-05, %v1395_v25  ;;  %v1471_v38 = vmul.f32 %v3879_v9, %v1451_v6  ;;  %v1411_v49 = vsub.f32 %v3749_v11, %v3867_v42 }
 0x3e0   :  { %v1230_v54 = vpop.xlane.xlu0 %1229  ;;  %v1490_v37 = vadd.f32 %v3883_v57, %v1470_v61  ;;  %v1381_v8 = vsub.f32 %v1349_v52, %v1365_v14  ;;  %v1357_v25 = vmul.f32 %v3902_v45, %v3902_v45  ;;  %v1410_v52 = vsub.f32 %v3761_v31, %v3899_v3 }
 0x3e1   :  { %v3888_v60 = vpop.xlane.xlu1 %1253  ;;  %2817 = vrsqrt.f32 %v1420_v44  ;;  %v1491_v34 = vadd.f32 %v3883_v57, %v1471_v38  ;;  %v3923_v42 = vmul.f32 0.015625, %v1227_v48  ;;  %v3927_v14 = vmul.f32 0.015625, %v1230_v54 }
 0x3e2   :  { %2819 = vrsqrt.f32 %v1427_v41  ;;  %v1506_v29 = vmax.f32 %v1490_v37, 0.0  ;;  %v1397_v33 = vmax.f32 %v1381_v8, 0.0  ;;  %v1413_v37 = vsub.f32 %v3764_v22, %v3885_v19 }
 0x3e3   :  { %2821 = vrsqrt.f32 %v1428_v63  ;;  %v1507_v15 = vmax.f32 %v1491_v34, 0.0  ;;  %v1405_v48 = vsub.f32 %v3777_v56, %v3902_v45  ;;  %v1359_v54 = vmul.f32 %v3923_v42, %v3923_v42 }
 0x3e4   :  { %v1304_v13 = vpop.xlane.xlu0 %1303  ;;  %v1522_v7 = vsel %vm1209_vm9, %v1506_v29, -inf  ;;  %v1429_v61 = vadd.f32 1e-05, %v1397_v33 }
 0x3e5   :  { %v1248_v24 = vpop.xlane.xlu1 %1247  ;;  %v1342_v53 = vmul.f32 0.015625, %v1304_v13  ;;  %v1781_v35 = vpack.c.bf16 %v1507_v15, %v1506_v29  ;;  %v1523_v5 = vrot.slane %v1522_v7, 4  ;;  %v1529_v30 = vsel %vm1209_vm9, %v1507_v15, -inf }
 0x3e6   :  { %v1530_v13 = vrot.slane %v1529_v30, 4 }
 0x3e7   :  { %v1374_v26 = vsub.f32 %v1342_v53, %v1358_v23  ;;  %2731 = vmatprep.mubr.msk.bf16.mxu1 %vm1209_vm9, %v1781_v35  ;;  %v1524_v38 = vmax.f32 %v1522_v7, %v1523_v5  ;;  %v3937_v7 = vmul.f32 0.015625, %v3888_v60  ;;  %v1360_v5 = vmul.f32 %v3927_v14, %v3927_v14 }
 0x3e8   :  { %v1316_v21 = vpop.xlane.xlu0 %1315 }
 0x3e9   :  { %v1257_v46 = vpop.xlane.xlu1 %1256  ;;  %v1390_v20 = vmax.f32 %v1374_v26, 0.0  ;;  %v1346_v39 = vmul.f32 0.015625, %v1316_v21  ;;  %v1525_v33 = vrot.slane %v1524_v38, 2 }
 0x3eb   :  { %v2818_v17 = vpop.eup %2817  ;;  %v1422_v12 = vadd.f32 1e-05, %v1390_v20  ;;  %v1378_v50 = vsub.f32 %v1346_v39, %v1362_v59  ;;  %v3942_v20 = vmul.f32 0.015625, %v1248_v24  ;;  %v3944_v39 = vmul.f32 0.015625, %v1257_v46 }
 0x3ec   :  { %v1452_v6 = vmul.f32 %v2818_v17, %v1404_v43  ;;  %v1301_v44 = vpop.xlane.xlu0 %1300  ;;  %v2820_v4 = vpop.eup %2819 }
 0x3ed   :  { %v3917_v0 = vpop.xlane.xlu1 %1333  ;;  %2823 = vrsqrt.f32 %v1422_v12  ;;  %v1394_v58 = vmax.f32 %v1378_v50, 0.0  ;;  %v1341_v41 = vmul.f32 0.015625, %v1301_v44  ;;  %v2822_v63 = vpop.eup %2821  ;;  %v1459_v53 = vmul.f32 %v2820_v4, %v1411_v49 }
 0x3ee   :  { %v1472_v11 = vmul.f32 %v3879_v9, %v1452_v6  ;;  %2825 = vrsqrt.f32 %v1429_v61  ;;  %v1460_v26 = vmul.f32 %v2822_v63, %v1412_v40  ;;  %v1531_v40 = vmax.f32 %v1529_v30, %v1530_v13 }
 0x3ef   :  { %v1426_v34 = vadd.f32 1e-05, %v1394_v58  ;;  %v1373_v29 = vsub.f32 %v1341_v41, %v1357_v25  ;;  %v1479_v50 = vmul.f32 %v3879_v9, %v1459_v53  ;;  %v3957_v25 = vmul.f32 %v3937_v7, %v3937_v7 }
 0x3f0   :  { %v3930_v8 = vadd.f32 %v3883_v57, %v1472_v11  ;;  %v1233_v15 = vpop.xlane.xlu0 %1232  ;;  %v1480_v46 = vmul.f32 %v3879_v9, %v1460_v26  ;;  %v3959_v6 = vmax.f32 %v1524_v38, %v1525_v33  ;;  %v1366_v30 = vmul.f32 %v3942_v20, %v3942_v20 }
 0x3f1   :  { %v1251_v23 = vpop.xlane.xlu1 %1250  ;;  %2827 = vrsqrt.f32 %v1426_v34  ;;  %v1389_v35 = vmax.f32 %v1373_v29, 0.0  ;;  %v3965_v58 = vmul.f32 %v3944_v39, %v3944_v39  ;;  %v1532_v11 = vrot.slane %v1531_v40, 2 }
 0x3f2   :  { %v1508_v21 = vmax.f32 %v3930_v8, 0.0  ;;  %v3967_v41 = vmul.f32 0.015625, %v1251_v23  ;;  %v3969_v34 = vmul.f32 0.015625, %v1233_v15  ;;  %v3975_v53 = vadd.f32 %v3883_v57, %v1479_v50 }
 0x3f3   :  { %v1421_v43 = vadd.f32 1e-05, %v1389_v35  ;;  %v1352_v36 = vmul.f32 0.015625, %v3917_v0  ;;  %v1533_v3 = vmax.f32 %v1531_v40, %v1532_v11 }
 0x3f4   :  { %v1307_v60 = vpop.xlane.xlu0 %1306  ;;  %v1536_v24 = vsel %vm1209_vm9, %v1508_v21, -inf  ;;  %v1367_v62 = vmul.f32 %v3967_v41, %v3967_v41 }
 0x3f5   :  { %v1328_v12 = vpop.xlane.xlu1 %1327  ;;  %2829 = vrsqrt.f32 %v1421_v43  ;;  %v1343_v49 = vmul.f32 0.015625, %v1307_v60  ;;  %v1537_v44 = vrot.slane %v1536_v24, 4  ;;  %v3978_v43 = vadd.f32 %v3883_v57, %v1480_v46 }
 0x3f6   :  { %v1350_v61 = vmul.f32 0.015625, %v1328_v12 }
 0x3f7   :  { %v2824_v4 = vpop.eup %2823  ;;  %v1375_v63 = vsub.f32 %v1343_v49, %v1359_v54  ;;  %v1527_v54 = vrot.slane %v3959_v6, 1  ;;  %v1538_v60 = vmax.f32 %v1536_v24, %v1537_v44 }
 0x3f8   :  { %v1310_v29 = vpop.xlane.xlu0 %1309  ;;  %v1454_v38 = vmul.f32 %v2824_v4, %v1406_v32  ;;  %v2826_v23 = vpop.eup %2825  ;;  %v1382_v15 = vsub.f32 %v1350_v61, %v1366_v30  ;;  %v1361_v4 = vmul.f32 %v3969_v34, %v3969_v34  ;;  %v1515_v61 = vmax.f32 %v3975_v53, 0.0 }
 0x3f9   :  { %v1331_v13 = vpop.xlane.xlu1 %1330  ;;  %v1391_v35 = vmax.f32 %v1375_v63, 0.0  ;;  %v1344_v26 = vmul.f32 0.015625, %v1310_v29 }
 0x3fa   :  { %v1351_v33 = vmul.f32 0.015625, %v1331_v13  ;;  %v1474_v12 = vmul.f32 %v3879_v9, %v1454_v38  ;;  %v1398_v13 = vmax.f32 %v1382_v15, 0.0  ;;  %v1539_v38 = vrot.slane %v1538_v60, 2 }
 0x3fb   :  { %v2828_v49 = vpop.eup %2827  ;;  %v1423_v32 = vadd.f32 1e-05, %v1391_v35  ;;  %v1376_v50 = vsub.f32 %v1344_v26, %v1360_v5  ;;  %v1461_v35 = vmul.f32 %v2826_v23, %v1413_v37  ;;  %v1585_v15 = vsel %vm1209_vm9, %v1515_v61, -inf }
 0x3fc   :  { %v1313_v46 = vpop.xlane.xlu0 %1312  ;;  %v3988_v29 = vadd.f32 %v3883_v57, %v1474_v12  ;;  %v1458_v24 = vmul.f32 %v2828_v49, %v1410_v52  ;;  %v1383_v44 = vsub.f32 %v1351_v33, %v1367_v62  ;;  %v1384_v33 = vsub.f32 %v1352_v36, %v3957_v25 }
 0x3fd   :  { %v1337_v63 = vpop.xlane.xlu1 %1336  ;;  %2831 = vrsqrt.f32 %v1423_v32  ;;  %v1392_v0 = vmax.f32 %v1376_v50, 0.0  ;;  %v1345_v30 = vmul.f32 0.015625, %v1313_v46  ;;  %v1430_v49 = vadd.f32 1e-05, %v1398_v13 }
 0x3fe   :  { %v1353_v5 = vmul.f32 0.015625, %v1337_v63  ;;  %v1510_v59 = vmax.f32 %v3988_v29, 0.0  ;;  %v1478_v31 = vmul.f32 %v3879_v9, %v1458_v24  ;;  %v1399_v22 = vmax.f32 %v1383_v44, 0.0 }
 0x3ff   :  { %v2830_v26 = vpop.eup %2829  ;;  %v1424_v12 = vadd.f32 1e-05, %v1392_v0  ;;  %v1377_v17 = vsub.f32 %v1345_v30, %v1361_v4  ;;  %v1540_v40 = vmax.f32 %v1538_v60, %v1539_v38  ;;  %v1481_v11 = vmul.f32 %v3879_v9, %v1461_v35 }
 0x400   :  { %v1453_v52 = vmul.f32 %v2830_v26, %v1405_v48  ;;  %v4007_v37 = vadd.f32 %v3883_v57, %v1478_v31  ;;  %v1385_v45 = vsub.f32 %v1353_v5, %v3965_v58  ;;  %v1550_v48 = vsel %vm1209_vm9, %v1510_v59, -inf }
 0x401   :  { %2833 = vrsqrt.f32 %v1424_v12  ;;  %v1393_v19 = vmax.f32 %v1377_v17, 0.0  ;;  %v1416_v17 = vsub.f32 %v3797_v47, %v3937_v7  ;;  %v1534_v36 = vrot.slane %v1533_v3, 1 }
 0x402   :  { %v1473_v23 = vmul.f32 %v3879_v9, %v1453_v52  ;;  %v1514_v25 = vmax.f32 %v4007_v37, 0.0  ;;  %v1400_v32 = vmax.f32 %v1384_v33, 0.0  ;;  %v1431_v50 = vadd.f32 1e-05, %v1399_v22 }
 0x403   :  { %v1425_v56 = vadd.f32 1e-05, %v1393_v19  ;;  %v1586_v58 = vrot.slane %v1585_v15, 4  ;;  %v1551_v46 = vrot.slane %v1550_v48, 4  ;;  %v4023_v63 = vadd.f32 %v3883_v57, %v1481_v11 }
 0x404   :  { %v1493_v62 = vadd.f32 %v3883_v57, %v1473_v23  ;;  %v1578_v60 = vsel %vm1209_vm9, %v1514_v25, -inf  ;;  %v1528_v0 = vmax.f32 %v3959_v6, %v1527_v54  ;;  %v1401_v44 = vmax.f32 %v1385_v45, 0.0 }
 0x405   :  { %2835 = vrsqrt.f32 %v1425_v56  ;;  %v1541_v30 = vrot.slane %v1540_v40, 1  ;;  %v1516_v13 = vmax.f32 %v3978_v43, 0.0  ;;  %v1414_v5 = vsub.f32 %v3806_v2, %v3942_v20 }
 0x406   :  { %2837 = vrsqrt.f32 %v1430_v49  ;;  %v1509_v4 = vmax.f32 %v1493_v62, 0.0  ;;  %v4507_v35 = vsub.f32 %v3792_v10, %v3923_v42  ;;  %v1579_v12 = vrot.slane %v1578_v60, 4 }
 0x407   :  { %v2832_v24 = vpop.eup %2831  ;;  %v1535_v31 = vmax.f32 %v1533_v3, %v1534_v36  ;;  %v1432_v52 = vadd.f32 1e-05, %v1400_v32  ;;  %2839 = vrsqrt.f32 %v1431_v50  ;;  %v1587_v33 = vmax.f32 %v1585_v15, %v1586_v58 }
 0x408   :  { %v1782_v38 = vpack.c.bf16 %v1509_v4, %v1508_v21  ;;  %v1455_v26 = vmul.f32 %v2832_v24, %v4507_v35  ;;  %v1417_v6 = vsub.f32 %v3815_v1, %v3944_v39  ;;  %v1552_v2 = vmax.f32 %v1550_v48, %v1551_v46 }
 0x409   :  { %v1517_v8 = vmax.f32 %v4023_v63, 0.0  ;;  %v1642_v20 = vpack.c.bf16 %v1528_v0, %v1528_v0  ;;  %v1433_v22 = vadd.f32 1e-05, %v1401_v44  ;;  %v1542_v10 = vmax.f32 %v1540_v40, %v1541_v30 }
 0x40a   :  { %2732 = vmatmul.mubr.msk.bf16.vlgmr.msra.gmra.mrb[12].mxu1 %vm1209_vm9, %v1782_v38  ;;  %v1475_v54 = vmul.f32 %v3879_v9, %v1455_v26  ;;  %v1592_v42 = vsel %vm1209_vm9, %v1516_v13, -inf  ;;  %v1543_v3 = vsel %vm1209_vm9, %v1509_v4, -inf  ;;  %v4508_v19 = vsub.f32 %v3803_v51, %v3927_v14 }
 0x40b   :  { %v2834_v21 = vpop.eup %2833  ;;  %v1580_v49 = vmax.f32 %v1578_v60, %v1579_v12  ;;  %v1643_v11 = vpack.c.bf16 %v1535_v31, %v1535_v31  ;;  %2841 = vrsqrt.f32 %v1432_v52  ;;  %v1409_v56 = vsub.f32 %v3836_v55, %v3969_v34 }
 0x40c   :  { %v1495_v15 = vadd.f32 %v3883_v57, %v1475_v54  ;;  %v1456_v23 = vmul.f32 %v2834_v21, %v4508_v19  ;;  %v1588_v45 = vrot.slane %v1587_v33, 2  ;;  %v1553_v48 = vrot.slane %v1552_v2, 2 }
 0x40d   :  { %v1599_v62 = vsel %vm1209_vm9, %v1517_v8, -inf  ;;  %2843 = vrsqrt.f32 %v1433_v22  ;;  %v1544_v50 = vrot.slane %v1543_v3, 4  ;;  %v1644_v51 = vpack.c.bf16 %v1542_v10, %v1542_v10 }
 0x40e   :  { %v1511_v40 = vmax.f32 %v1495_v15, 0.0  ;;  %v1476_v36 = vmul.f32 %v3879_v9, %v1456_v23  ;;  %v1593_v14 = vrot.slane %v1592_v42, 4  ;;  %v1581_v34 = vrot.slane %v1580_v49, 2 }
 0x40f   :  { %v2836_v32 = vpop.eup %2835  ;;  %v1674_v46 = vunpack.c.l.b16 %v1642_v20  ;;  %v1675_v24 = vunpack.c.l.b16 %v1643_v11  ;;  %v1589_v0 = vmax.f32 %v1587_v33, %v1588_v45  ;;  %v1600_v44 = vrot.slane %v1599_v62, 4 }
 0x410   :  { %v2838_v60 = vpop.eup %2837  ;;  %v1783_v58 = vpack.c.bf16 %v1511_v40, %v1510_v59  ;;  %v1457_v4 = vmul.f32 %v2836_v32, %v1409_v56  ;;  %v1496_v55 = vadd.f32 %v3883_v57, %v1476_v36  ;;  %v1554_v30 = vmax.f32 %v1552_v2, %v1553_v48 }
 0x411   :  { %v1557_v38 = vsel %vm1209_vm9, %v1511_v40, -inf  ;;  %v2840_v12 = vpop.eup %2839  ;;  %v1545_v31 = vmax.f32 %v1543_v3, %v1544_v50  ;;  %v1676_v29 = vunpack.c.l.b16 %v1644_v51  ;;  %v1594_v59 = vmax.f32 %v1592_v42, %v1593_v14 }
 0x412   :  { %2735 = vmatprep.mubr.msk.bf16.mxu1 %vm1209_vm9, %v1783_v58  ;;  %v1477_v35 = vmul.f32 %v3879_v9, %v1457_v4  ;;  %v1512_v26 = vmax.f32 %v1496_v55, 0.0  ;;  %v1462_v52 = vmul.f32 %v2838_v60, %v1414_v5  ;;  %v1415_v54 = vsub.f32 %v3831_v16, %v3967_v41 }
 0x413   :  { %v1582_v2 = vmax.f32 %v1580_v49, %v1581_v34  ;;  %v1690_v20 = vsel %vm770_vm2, %v1675_v24, %v1674_v46  ;;  %v1558_v22 = vrot.slane %v1557_v38, 4  ;;  %v1590_v10 = vrot.slane %v1589_v0, 1 }
 0x414   :  { %v1497_v21 = vadd.f32 %v3883_v57, %v1477_v35  ;;  %v1564_v33 = vsel %vm1209_vm9, %v1512_v26, -inf  ;;  %v1601_v15 = vmax.f32 %v1599_v62, %v1600_v44  ;;  %v1555_v19 = vrot.slane %v1554_v30, 1 }
 0x415   :  { %v1565_v11 = vrot.slane %v1564_v33, 4  ;;  %v1463_v3 = vmul.f32 %v2840_v12, %v1415_v54  ;;  %v2842_v56 = vpop.eup %2841  ;;  %v1546_v42 = vrot.slane %v1545_v31, 2  ;;  %v4065_v5 = vsel %vm772_vm3, %v1676_v29, %v1690_v20 }
 0x416   :  { %v1513_v23 = vmax.f32 %v1497_v21, 0.0  ;;  %v1595_v16 = vrot.slane %v1594_v59, 2  ;;  %v1482_v41 = vmul.f32 %v3879_v9, %v1462_v52  ;;  %v1583_v40 = vrot.slane %v1582_v2, 1 }
 0x417   :  { %v1785_v48 = vpack.c.bf16 %v1515_v61, %v1514_v25  ;;  %v2844_v36 = vpop.eup %2843  ;;  %v1559_v62 = vmax.f32 %v1557_v38, %v1558_v22  ;;  %v4073_v50 = vmax.f32 %v1589_v0, %v1590_v10  ;;  %v1602_v51 = vrot.slane %v1601_v15, 2 }
 0x418   :  { %v1571_v45 = vsel %vm1209_vm9, %v1513_v23, -inf  ;;  %v1784_v49 = vpack.c.bf16 %v1513_v23, %v1512_v26  ;;  %v4075_v14 = vmax.f32 %v1554_v30, %v1555_v19  ;;  %v1566_v60 = vmax.f32 %v1564_v33, %v1565_v11 }
 0x419   :  { %v1572_v32 = vrot.slane %v1571_v45, 4  ;;  %v1786_v58 = vpack.c.bf16 %v1517_v8, %v1516_v13  ;;  %v1483_v37 = vmul.f32 %v3879_v9, %v1463_v3  ;;  %v1547_v53 = vmax.f32 %v1545_v31, %v1546_v42 }
 0x41a   :  { %2736 = vmatmul.mubr.msk.bf16.gmra.mrb[16].mxu1 %vm1209_vm9, %v1784_v49  ;;  %v1596_v25 = vmax.f32 %v1594_v59, %v1595_v16  ;;  %v1502_v4 = vadd.f32 %v3883_v57, %v1482_v41  ;;  %v1584_v55 = vmax.f32 %v1582_v2, %v1583_v40  ;;  %v1464_v46 = vmul.f32 %v2842_v56, %v1416_v17 }
 0x41b   :  { %v1573_v61 = vmax.f32 %v1571_v45, %v1572_v32  ;;  %2739 = vmatprep.mubr.msk.bf16.mxu1 %vm1209_vm9, %v1785_v48  ;;  %v1503_v34 = vadd.f32 %v3883_v57, %v1483_v37  ;;  %v1465_v43 = vmul.f32 %v2844_v36, %v1417_v6  ;;  %v1560_v63 = vrot.slane %v1559_v62, 2 }
 0x41c   :  { %v1651_v13 = vpack.c.bf16 %v4073_v50, %v4073_v50  ;;  %v1603_v8 = vmax.f32 %v1601_v15, %v1602_v51  ;;  %v1518_v24 = vmax.f32 %v1502_v4, 0.0  ;;  %v1567_v0 = vrot.slane %v1566_v60, 2 }
 0x41d   :  { %v1519_v44 = vmax.f32 %v1503_v34, 0.0  ;;  %v1484_v30 = vmul.f32 %v3879_v9, %v1464_v46  ;;  %v1485_v38 = vmul.f32 %v3879_v9, %v1465_v43  ;;  %v1548_v35 = vrot.slane %v1547_v53, 1 }
 0x41e   :  { %v1574_v26 = vrot.slane %v1573_v61, 2  ;;  %v1597_v47 = vrot.slane %v1596_v25, 1  ;;  %v1606_v7 = vsel %vm1209_vm9, %v1518_v24, -inf  ;;  %v1650_v17 = vpack.c.bf16 %v1584_v55, %v1584_v55 }
 0x41f   :  { %v1607_v1 = vrot.slane %v1606_v7, 4  ;;  %v1613_v39 = vsel %vm1209_vm9, %v1519_v44, -inf  ;;  %v1504_v6 = vadd.f32 %v3883_v57, %v1484_v30  ;;  %v1561_v12 = vmax.f32 %v1559_v62, %v1560_v63 }
 0x420   :  { %v1604_v31 = vrot.slane %v1603_v8, 1  ;;  %v1614_v29 = vrot.slane %v1613_v39, 4  ;;  %v1787_v59 = vpack.c.bf16 %v1519_v44, %v1518_v24  ;;  %v1568_v52 = vmax.f32 %v1566_v60, %v1567_v0 }
 0x421   :  { %v1608_v54 = vmax.f32 %v1606_v7, %v1607_v1  ;;  %v1505_v9 = vadd.f32 %v3883_v57, %v1485_v38  ;;  %v1520_v21 = vmax.f32 %v1504_v6, 0.0  ;;  %v1549_v33 = vmax.f32 %v1547_v53, %v1548_v35 }
 0x422   :  { %2740 = vmatmul.mubr.msk.bf16.gmra.mrb[20].mxu1 %vm1209_vm9, %v1786_v58  ;;  %v1575_v2 = vmax.f32 %v1573_v61, %v1574_v26  ;;  %v1598_v20 = vmax.f32 %v1596_v25, %v1597_v47  ;;  %v1615_v22 = vmax.f32 %v1613_v39, %v1614_v29  ;;  %v1682_v10 = vunpack.c.l.b16 %v1650_v17 }
 0x423   :  { %2743 = vmatprep.mubr.msk.bf16.mxu1 %vm1209_vm9, %v1787_v59  ;;  %v1609_v15 = vrot.slane %v1608_v54, 2  ;;  %v1521_v19 = vmax.f32 %v1505_v9, 0.0  ;;  %v1620_v23 = vsel %vm1209_vm9, %v1520_v21, -inf  ;;  %v1562_v11 = vrot.slane %v1561_v12, 1 }
 0x424   :  { %v1605_v3 = vmax.f32 %v1603_v8, %v1604_v31  ;;  %v1616_v56 = vrot.slane %v1615_v22, 2  ;;  %v1621_v42 = vrot.slane %v1620_v23, 4  ;;  %v1569_v16 = vrot.slane %v1568_v52, 1 }
 0x425   :  { %v1610_v41 = vmax.f32 %v1608_v54, %v1609_v15  ;;  %v1627_v57 = vsel %vm1209_vm9, %v1521_v19, -inf  ;;  %v1788_v45 = vpack.c.bf16 %v1521_v19, %v1520_v21  ;;  %v1576_v49 = vrot.slane %v1575_v2, 1 }
 0x426   :  { %v1617_v40 = vmax.f32 %v1615_v22, %v1616_v56  ;;  %v1622_v48 = vmax.f32 %v1620_v23, %v1621_v42  ;;  %v1628_v36 = vrot.slane %v1627_v57, 4  ;;  %v1645_v62 = vpack.c.bf16 %v1549_v33, %v1549_v33 }
 0x427   :  { %v1683_v32 = vunpack.c.l.b16 %v1651_v13  ;;  %v1652_v50 = vpack.c.bf16 %v1598_v20, %v1598_v20  ;;  %v1611_v51 = vrot.slane %v1610_v41, 1  ;;  %v1563_v60 = vmax.f32 %v1561_v12, %v1562_v11 }
 0x428   :  { %v1618_v58 = vrot.slane %v1617_v40, 1  ;;  %v1623_v37 = vrot.slane %v1622_v48, 2  ;;  %v1629_v53 = vmax.f32 %v1627_v57, %v1628_v36  ;;  %v1570_v61 = vmax.f32 %v1568_v52, %v1569_v16 }
 0x429   :  { %v1697_v25 = vsel %vm770_vm2, %v1683_v32, %v1682_v10  ;;  %v1653_v4 = vpack.c.bf16 %v1605_v3, %v1605_v3  ;;  %v1612_v55 = vmax.f32 %v1610_v41, %v1611_v51  ;;  %v1577_v34 = vmax.f32 %v1575_v2, %v1576_v49 }
 0x42a   :  { %2744 = vmatmul.mubr.msk.bf16.gmra.mrb[24].mxu1 %vm1209_vm9, %v1788_v45  ;;  %v1619_v46 = vmax.f32 %v1617_v40, %v1618_v58  ;;  %v1624_v43 = vmax.f32 %v1622_v48, %v1623_v37  ;;  %v1630_v63 = vrot.slane %v1629_v53, 2  ;;  %v1677_v8 = vunpack.c.l.b16 %v1645_v62 }
 0x42b   :  { %v1646_v13 = vpack.c.bf16 %v4075_v14, %v4075_v14  ;;  %v1684_v24 = vunpack.c.l.b16 %v1652_v50  ;;  %v1654_v0 = vpack.c.bf16 %v1612_v55, %v1612_v55  ;;  %v1647_v44 = vpack.c.bf16 %v1563_v60, %v1563_v60 }
 0x42c   :  { %v1655_v30 = vpack.c.bf16 %v1619_v46, %v1619_v46  ;;  %v1625_v38 = vrot.slane %v1624_v43, 1  ;;  %v1631_v35 = vmax.f32 %v1629_v53, %v1630_v63  ;;  %v1648_v26 = vpack.c.bf16 %v1570_v61, %v1570_v61 }
 0x42d   :  { %v1685_v47 = vunpack.c.l.b16 %v1653_v4  ;;  %v1698_v7 = vsel %vm772_vm3, %v1684_v24, %v1697_v25  ;;  %v1686_v17 = vunpack.c.l.b16 %v1654_v0  ;;  %v1649_v1 = vpack.c.bf16 %v1577_v34, %v1577_v34 }
 0x42e   :  { %v1687_v39 = vunpack.c.l.b16 %v1655_v30  ;;  %v1626_v6 = vmax.f32 %v1624_v43, %v1625_v38  ;;  %v1632_v12 = vrot.slane %v1631_v35, 1  ;;  %v1692_v31 = vsel %vm774_vm4, %v1677_v8, %v4065_v5 }
 0x42f   :  { %v1679_v29 = vunpack.c.l.b16 %v1647_v44  ;;  %v1699_v14 = vsel %vm774_vm4, %v1685_v47, %v1698_v7  ;;  %v1678_v54 = vunpack.c.l.b16 %v1646_v13  ;;  %v1680_v9 = vunpack.c.l.b16 %v1648_v26 }
 0x430   :  { %v1633_v59 = vmax.f32 %v1631_v35, %v1632_v12  ;;  %v1656_v52 = vpack.c.bf16 %v1626_v6, %v1626_v6  ;;  %v1700_v21 = vsel %vm776_vm5, %v1686_v17, %v1699_v14  ;;  %v1681_v33 = vunpack.c.l.b16 %v1649_v1  ;;  %v4153_v12 = vld [vmem:[%s4496_s6] sm:$0xff] }
 0x431   :  { %v1701_v2 = vsel %vm778_vm6, %v1687_v39, %v1700_v21  ;;  %v1693_v22 = vsel %vm776_vm5, %v1678_v54, %v1692_v31  ;;  %v2132_v24 = vsub.s32 6, %v3194_v27 }
 0x432   :  { %v1657_v20 = vpack.c.bf16 %v1633_v59, %v1633_v59  ;;  %v1688_v10 = vunpack.c.l.b16 %v1656_v52  ;;  %v1694_v15 = vsel %vm778_vm6, %v1679_v29, %v1693_v22 }
 0x433   :  { %v1695_v5 = vsel %vm780_vm7, %v1680_v9, %v1694_v15  ;;  %v4156_v31 = vrot.slane %v4153_v12, %v2132_v24 }
 0x434   :  { %v1689_v19 = vunpack.c.l.b16 %v1657_v20  ;;  %v1702_v23 = vsel %vm780_vm7, %v1688_v10, %v1701_v2  ;;  %v1696_v11 = vsel %vm782_vm8, %v1681_v33, %v1695_v5 }
 0x436   :  { %v1703_v3 = vsel %vm782_vm8, %v1689_v19, %v1702_v23 }
 0x437   :  { %v1704_v56 = vpack.c.b16 %v1703_v3, %v1696_v11 }
 0x439   :  { %2720 = vmatmul.mubr.msk.bf16.vlgmr.msra.gmra.mrb[24].mxu0 %vm1209_vm9, %v1704_v56 }
 0x4dd   :  { %v2733_v42 = vpop.f32.mrb[12].mxu1 }
 0x4de   :  { %v1871_v16 = vpop.f32.mrb[13].mxu1 }
 0x4df   :  { %v4121_v41 = vpop.f32.mrb[14].mxu1 }
 0x4e0   :  { %v1874_v57 = vpop.f32.mrb[15].mxu1 }
 0x4ed   :  { %v4123_v45 = vpop.f32.mrb[16].mxu1 }
 0x4ee   :  { %v1887_v49 = vpop.f32.mrb[17].mxu1 }
 0x4ef   :  { %v4125_v40 = vpop.f32.mrb[18].mxu1 }
 0x4f0   :  { %v4127_v48 = vpop.f32.mrb[19].mxu1 }
 0x4f5   :  { %v2741_v36 = vpop.f32.mrb[20].mxu1 }
 0x4f6   :  { %v1903_v62 = vpop.f32.mrb[21].mxu1 }
 0x4f7   :  { %v4129_v32 = vpop.f32.mrb[22].mxu1 }
 0x4f8   :  { %v1906_v50 = vpop.f32.mrb[23].mxu1 }
 0x4fd   :  { %v4131_v51 = vpop.f32.mrb[24].mxu1 }
 0x4fe   :  { %v1919_v60 = vpop.f32.mrb[25].mxu1 }
 0x4ff   :  { %v4133_v58 = vpop.f32.mrb[26].mxu1 }
 0x500   :  { %v4135_v37 = vpop.f32.mrb[27].mxu1 }
 0x50c   :  { %v1766_v53 = vpop.f32.mrb[24].mxu0 }
 0x50d   :  { %v1936_v61 = vcombine.high %v1766_v53, %v1766_v53  ;;  %v1943_v25 = vrot.slane %v1766_v53, %v3675_v18  ;;  %v2721_v4 = vpop.f32.mrb[25].mxu0 }
 0x50e   :  { %v1769_v55 = vpop.f32.mrb[26].mxu0 }
 0x50f   :  { %v1950_v34 = vrot.slane %v1936_v61, %v3675_v18  ;;  %v1951_v46 = vcombine.high %v1943_v25, %v1943_v25  ;;  %v1959_v43 = vrot.slane %v1943_v25, %v3675_v18  ;;  %v1985_v63 = vcombine.high %v1769_v55, %v1769_v55  ;;  %v2722_v8 = vpop.f32.mrb[27].mxu0 }
 0x510   :  { %v1992_v13 = vrot.slane %v1769_v55, %v3675_v18 }
 0x511   :  { %v1952_v0 = vcombine.high %v1950_v34, %v1950_v34  ;;  %v1966_v44 = vrot.slane %v1950_v34, %v3675_v18  ;;  %v1973_v30 = vrot.slane %v1951_v46, %v3675_v18  ;;  %v1981_v38 = vcombine.high %v1959_v43, %v1959_v43 }
 0x512   :  { %v2037_v35 = vrot.slane %v1959_v43, %v3197_v28  ;;  %v1999_v26 = vrot.slane %v1985_v63, %v3675_v18  ;;  %v2000_v47 = vcombine.high %v1992_v13, %v1992_v13  ;;  %v2008_v7 = vrot.slane %v1992_v13, %v3675_v18 }
 0x513   :  { %v2041_v17 = vrot.slane %v1973_v30, %v3197_v28  ;;  %v2045_v1 = vrot.slane %v1981_v38, %v3197_v28  ;;  %v2053_v29 = vrot.slane %v1966_v44, %v3197_v28  ;;  %v1980_v54 = vrot.slane %v1952_v0, %v3675_v18 }
 0x514   :  { %v2001_v39 = vcombine.high %v1999_v26, %v1999_v26  ;;  %v2015_v6 = vrot.slane %v1999_v26, %v3675_v18  ;;  %v2022_v14 = vrot.slane %v2000_v47, %v3675_v18  ;;  %v2030_v59 = vcombine.high %v2008_v7, %v2008_v7 }
 0x515   :  { %v2069_v52 = vrot.slane %v2008_v7, %v3197_v28  ;;  %v1983_v9 = vcombine.high %v1973_v30, %v1973_v30  ;;  %v2114_v33 = vadd.f32 %v2037_v35, %v1871_v16  ;;  %v2115_v10 = vadd.f32 %v2041_v17, %v1874_v57 }
 0x516   :  { %v2085_v21 = vrot.slane %v2015_v6, %v3197_v28  ;;  %v2029_v2 = vrot.slane %v2001_v39, %v3675_v18  ;;  %v2073_v20 = vrot.slane %v2022_v14, %v3197_v28  ;;  %v2077_v22 = vrot.slane %v2030_v59, %v3197_v28 }
 0x517   :  { %v2032_v15 = vcombine.high %v2022_v14, %v2022_v14  ;;  %v4167_v19 = vadd.f32 %v4156_v31, %v2114_v33  ;;  %v2122_v5 = vadd.f32 %v2069_v52, %v1903_v62  ;;  %v2116_v23 = vadd.f32 %v2733_v42, %v2045_v1 }
 0x518   :  { %v4170_v11 = vadd.f32 %v4156_v31, %v2115_v10  ;;  %v2123_v3 = vadd.f32 %v2073_v20, %v1906_v50  ;;  %v2124_v56 = vadd.f32 %v2741_v36, %v2077_v22  ;;  %v2118_v53 = vadd.f32 %v2053_v29, %v1887_v49 }
 0x519   :  { %v1982_v16 = vcombine.high %v1966_v44, %v1966_v44  ;;  %2150 = vadd.xlane.f32.xlu0 %v4167_v19  ;;  %v2126_v18 = vadd.f32 %v2085_v21, %v1919_v60  ;;  %v2031_v61 = vcombine.high %v2015_v6, %v2015_v6  ;;  %v4175_v57 = vadd.f32 %v4156_v31, %v2122_v5 }
 0x51a   :  { %2152 = vadd.xlane.f32.xlu1 %v4170_v11  ;;  %v2049_v25 = vrot.slane %v1983_v9, %v3197_v28  ;;  %v2081_v42 = vrot.slane %v2032_v15, %v3197_v28  ;;  %v1984_v62 = vcombine.high %v1980_v54, %v1980_v54  ;;  %v2033_v4 = vcombine.high %v2029_v2, %v2029_v2 }
 0x51b   :  { %v4180_v50 = vadd.f32 %v4156_v31, %v2123_v3  ;;  %v2057_v49 = vrot.slane %v1980_v54, %v3197_v28  ;;  %v2089_v55 = vrot.slane %v2029_v2, %v3197_v28  ;;  %v2061_v34 = vrot.slane %v1982_v16, %v3197_v28 }
 0x51c   :  { %v2117_v36 = vadd.f32 %v4121_v41, %v2049_v25  ;;  %v2125_v60 = vadd.f32 %v4129_v32, %v2081_v42  ;;  %v2093_v43 = vrot.slane %v2031_v61, %v3197_v28  ;;  %v4192_v63 = vadd.f32 %v4156_v31, %v2116_v23 }
 0x51d   :  { %2166 = vadd.xlane.f32.xlu0 %v4175_v57  ;;  %v2119_v46 = vadd.f32 %v2057_v49, %v4127_v48  ;;  %v2127_v8 = vadd.f32 %v2089_v55, %v4135_v37  ;;  %v2120_v13 = vadd.f32 %v4123_v45, %v2061_v34  ;;  %v4197_v41 = vadd.f32 %v4156_v31, %v2124_v56 }
 0x51e   :  { %2168 = vadd.xlane.f32.xlu1 %v4180_v50  ;;  %v2128_v32 = vadd.f32 %v4131_v51, %v2093_v43  ;;  %v2065_v24 = vrot.slane %v1984_v62, %v3197_v28  ;;  %v2097_v0 = vrot.slane %v2033_v4, %v3197_v28  ;;  %v2198_v45 = vmul.f32 %v4167_v19, %v4167_v19 }
 0x51f   :  { %v2199_v37 = vmul.f32 %v4170_v11, %v4170_v11  ;;  %v4211_v51 = vadd.f32 %v4156_v31, %v2118_v53  ;;  %v4214_v28 = vadd.f32 %v4156_v31, %v2126_v18  ;;  %v2206_v30 = vmul.f32 %v4175_v57, %v4175_v57 }
 0x520   :  { %v2121_v48 = vadd.f32 %v4125_v40, %v2065_v24  ;;  %v2129_v44 = vadd.f32 %v4133_v58, %v2097_v0  ;;  %v4219_v40 = vadd.f32 %v4156_v31, %v2117_v36  ;;  %v4222_v58 = vadd.f32 %v4156_v31, %v2125_v60 }
 0x521   :  { %2154 = vadd.xlane.f32.xlu0 %v4192_v63  ;;  %v2207_v38 = vmul.f32 %v4180_v50, %v4180_v50  ;;  %v2200_v35 = vmul.f32 %v4192_v63, %v4192_v63  ;;  %v2208_v26 = vmul.f32 %v4197_v41, %v4197_v41  ;;  %v4235_v47 = vadd.f32 %v4156_v31, %v2119_v46 }
 0x522   :  { %2170 = vadd.xlane.f32.xlu1 %v4197_v41  ;;  %v4238_v7 = vadd.f32 %v4156_v31, %v2127_v8  ;;  %v4243_v17 = vadd.f32 %v4156_v31, %v2120_v13  ;;  %v4246_v1 = vadd.f32 %v4156_v31, %v2128_v32  ;;  %v2202_v39 = vmul.f32 %v4211_v51, %v4211_v51 }
 0x523   :  { %v2210_v6 = vmul.f32 %v4214_v28, %v4214_v28  ;;  %v2201_v29 = vmul.f32 %v4219_v40, %v4219_v40  ;;  %v2209_v14 = vmul.f32 %v4222_v58, %v4222_v58  ;;  %v4259_v59 = vadd.f32 %v4156_v31, %v2121_v48 }
 0x524   :  { %v4262_v52 = vadd.f32 %v4156_v31, %v2129_v44  ;;  %v2203_v54 = vmul.f32 %v4235_v47, %v4235_v47  ;;  %v2211_v9 = vmul.f32 %v4238_v7, %v4238_v7  ;;  %v2204_v21 = vmul.f32 %v4243_v17, %v4243_v17 }
 0x525   :  { %2214 = vadd.xlane.f32.xlu0 %v2198_v45  ;;  %v2212_v33 = vmul.f32 %v4246_v1, %v4246_v1  ;;  %v2205_v31 = vmul.f32 %v4259_v59, %v4259_v59 }
 0x526   :  { %2216 = vadd.xlane.f32.xlu1 %v2199_v37  ;;  %v2213_v2 = vmul.f32 %v4262_v52, %v4262_v52 }
 0x529   :  { %2158 = vadd.xlane.f32.xlu0 %v4211_v51 }
 0x52a   :  { %2174 = vadd.xlane.f32.xlu1 %v4214_v28 }
 0x52d   :  { %2156 = vadd.xlane.f32.xlu0 %v4219_v40 }
 0x52e   :  { %2172 = vadd.xlane.f32.xlu1 %v4222_v58 }
 0x531   :  { %2230 = vadd.xlane.f32.xlu0 %v2206_v30 }
 0x532   :  { %2232 = vadd.xlane.f32.xlu1 %v2207_v38 }
 0x535   :  { %2218 = vadd.xlane.f32.xlu0 %v2200_v35 }
 0x536   :  { %2234 = vadd.xlane.f32.xlu1 %v2208_v26 }
 0x539   :  { %2160 = vadd.xlane.f32.xlu0 %v4235_v47 }
 0x53a   :  { %2176 = vadd.xlane.f32.xlu1 %v4238_v7 }
 0x53d   :  { %2162 = vadd.xlane.f32.xlu0 %v4243_v17 }
 0x53e   :  { %2178 = vadd.xlane.f32.xlu1 %v4246_v1 }
 0x541   :  { %2222 = vadd.xlane.f32.xlu0 %v2202_v39 }
 0x542   :  { %2238 = vadd.xlane.f32.xlu1 %v2210_v6 }
 0x545   :  { %2220 = vadd.xlane.f32.xlu0 %v2201_v29 }
 0x546   :  { %2236 = vadd.xlane.f32.xlu1 %v2209_v14 }
 0x549   :  { %2164 = vadd.xlane.f32.xlu0 %v4259_v59 }
 0x54a   :  { %2180 = vadd.xlane.f32.xlu1 %v4262_v52 }
 0x54d   :  { %2224 = vadd.xlane.f32.xlu0 %v2203_v54 }
 0x54e   :  { %2240 = vadd.xlane.f32.xlu1 %v2211_v9 }
 0x551   :  { %2226 = vadd.xlane.f32.xlu0 %v2204_v21 }
 0x552   :  { %2242 = vadd.xlane.f32.xlu1 %v2212_v33 }
 0x555   :  { %2228 = vadd.xlane.f32.xlu0 %v2205_v31 }
 0x556   :  { %2244 = vadd.xlane.f32.xlu1 %v2213_v2  ;;  %v2376_v2 = vsub.s32 7, %v3194_v27 }
 0x5a6   :  { %v2151_v20 = vpop.xlane.xlu0 %2150 }
 0x5a7   :  { %v2153_v22 = vpop.xlane.xlu1 %2152  ;;  %v2182_v23 = vmul.f32 0.0078125, %v2151_v20 }
 0x5a8   :  { %v2183_v56 = vmul.f32 0.0078125, %v2153_v22 }
 0x5a9   :  { %v2262_v16 = vmul.f32 %v2182_v23, %v2182_v23 }
 0x5aa   :  { %v2167_v10 = vpop.xlane.xlu0 %2166  ;;  %v2263_v25 = vmul.f32 %v2183_v56, %v2183_v56 }
 0x5ab   :  { %v2169_v15 = vpop.xlane.xlu1 %2168  ;;  %v4278_v8 = vmul.f32 0.0078125, %v2167_v10 }
 0x5ac   :  { %v4282_v32 = vmul.f32 0.0078125, %v2169_v15 }
 0x5ad   :  { %v2270_v0 = vmul.f32 %v4278_v8, %v4278_v8 }
 0x5ae   :  { %v2155_v5 = vpop.xlane.xlu0 %2154  ;;  %v2271_v37 = vmul.f32 %v4282_v32, %v4282_v32 }
 0x5af   :  { %v2171_v3 = vpop.xlane.xlu1 %2170  ;;  %v4286_v48 = vmul.f32 0.0078125, %v2155_v5 }
 0x5b0   :  { %v4290_v30 = vmul.f32 0.0078125, %v2171_v3 }
 0x5b1   :  { %v2264_v6 = vmul.f32 %v4286_v48, %v4286_v48 }
 0x5b2   :  { %v2215_v53 = vpop.xlane.xlu0 %2214  ;;  %v2272_v9 = vmul.f32 %v4290_v30, %v4290_v30 }
 0x5b3   :  { %v2246_v18 = vmul.f32 0.0078125, %v2215_v53  ;;  %v2217_v61 = vpop.xlane.xlu1 %2216  ;;  %v2310_v53 = vsub.f32 %v4167_v19, %v2182_v23 }
 0x5b4   :  { %v2247_v42 = vmul.f32 0.0078125, %v2217_v61 }
 0x5b5   :  { %v2278_v62 = vsub.f32 %v2246_v18, %v2262_v16  ;;  %v2311_v16 = vsub.f32 %v4170_v11, %v2183_v56 }
 0x5b6   :  { %v2279_v4 = vsub.f32 %v2247_v42, %v2263_v25  ;;  %v2159_v49 = vpop.xlane.xlu0 %2158  ;;  %v4302_v42 = vrot.slane %v4153_v12, %v2376_v2  ;;  %v4317_v12 = vld [vmem:[%s4496_s6 + $0x8] ss:$0 sm:$0xff]  ;;  %s3056_s6 = smov [#allocation13]  }
 0x5b7   :  { %v2294_v36 = vmax.f32 %v2278_v62, 0.0  ;;  %v2175_v60 = vpop.xlane.xlu1 %2174  ;;  %s2567_s8 = sshll.u32 %s3056_s6, 4  ;;  %s2568_s8 = int_to_ptr.vmem [resolvable:$true] %s2567_s8 }
 0x5b8   :  { %v2295_v55 = vmax.f32 %v2279_v4, 0.0  ;;  %v4310_v11 = vmul.f32 0.0078125, %v2175_v60  ;;  %s3011_s9 = scalar_lea.vmem %s2568_s8, 512  ;;  %p3016_p7 = scmp.lt.s32.totalorder %s2568_s8, %s2568_s8 }
 0x5b9   :  { %v2326_v34 = vadd.f32 1e-05, %v2294_v36  ;;  %p3012_p6 = scmp.ne.s32.totalorder %s2568_s8, %s3011_s9  ;;  %p3017_p8 = scmp.lt.s32.totalorder %s3011_s9, %s3011_s9 }
 0x5ba   :  { %v2327_v46 = vadd.f32 1e-05, %v2295_v55  ;;  %v2157_v43 = vpop.xlane.xlu0 %2156  ;;  %v4306_v55 = vmul.f32 0.0078125, %v2159_v49 }
 0x5bb   :  { %2845 = vrsqrt.f32 %v2326_v34  ;;  %v4280_v13 = vpop.xlane.xlu1 %2172  ;;  %p3018_p9 = por %p3017_p8, %p3016_p7 }
 0x5bc   :  { %2847 = vrsqrt.f32 %v2327_v46  ;;  %v2266_v49 = vmul.f32 %v4306_v55, %v4306_v55 }
 0x5bd   :  { %p3019_p10 = pnand %p3018_p9, %p3012_p6 }
 0x5be   :  { %v2231_v24 = vpop.xlane.xlu0 %2230 }
 0x5bf   :  { %v2254_v44 = vmul.f32 0.0078125, %v2231_v24  ;;  %v2233_v45 = vpop.xlane.xlu1 %2232  ;;  %v4321_v24 = vmul.f32 0.0078125, %v2157_v43  ;;  %v2319_v43 = vsub.f32 %v4180_v50, %v4282_v32 }
 0x5c0   :  { %v2255_v38 = vmul.f32 0.0078125, %v2233_v45  ;;  %v2274_v45 = vmul.f32 %v4310_v11, %v4310_v11 }
 0x5c1   :  { %v2286_v35 = vsub.f32 %v2254_v44, %v2270_v0  ;;  %v2318_v44 = vsub.f32 %v4175_v57, %v4278_v8  ;;  %v2265_v57 = vmul.f32 %v4321_v24, %v4321_v24 }
 0x5c2   :  { %v2287_v26 = vsub.f32 %v2255_v38, %v2271_v37  ;;  %v2219_v39 = vpop.xlane.xlu0 %2218 }
 0x5c3   :  { %v2302_v29 = vmax.f32 %v2286_v35, 0.0  ;;  %v2248_v14 = vmul.f32 0.0078125, %v2219_v39  ;;  %v2235_v54 = vpop.xlane.xlu1 %2234 }
 0x5c4   :  { %v2303_v21 = vmax.f32 %v2287_v26, 0.0  ;;  %v2256_v33 = vmul.f32 0.0078125, %v2235_v54 }
 0x5c5   :  { %v2846_v31 = vpop.eup %2845  ;;  %v2334_v20 = vadd.f32 1e-05, %v2302_v29  ;;  %v2280_v22 = vsub.f32 %v2248_v14, %v2264_v6 }
 0x5c6   :  { %v2848_v10 = vpop.eup %2847  ;;  %v2335_v15 = vadd.f32 1e-05, %v2303_v21  ;;  %v2288_v5 = vsub.f32 %v2256_v33, %v2272_v9  ;;  %v2161_v3 = vpop.xlane.xlu0 %2160  ;;  %v2358_v27 = vmul.f32 %v2846_v31, %v2310_v53  ;;  %v4334_v33 = vmul.f32 0.0078125, %v4280_v13 }
 0x5c7   :  { %2849 = vrsqrt.f32 %v2334_v20  ;;  %v2296_v18 = vmax.f32 %v2280_v22, 0.0  ;;  %v4299_v61 = vpop.xlane.xlu1 %2176  ;;  %v2359_v62 = vmul.f32 %v2848_v10, %v2311_v16  ;;  %v2312_v53 = vsub.f32 %v4192_v63, %v4286_v48 }
 0x5c8   :  { %2851 = vrsqrt.f32 %v2335_v15  ;;  %v2304_v25 = vmax.f32 %v2288_v5, 0.0  ;;  %v2378_v23 = vmul.f32 %v4302_v42, %v2358_v27  ;;  %v2320_v16 = vsub.f32 %v4197_v41, %v4290_v30 }
 0x5c9   :  { %v2328_v4 = vadd.f32 1e-05, %v2296_v18  ;;  %v2379_v56 = vmul.f32 %v4302_v42, %v2359_v62  ;;  %v2314_v13 = vsub.f32 %v4211_v51, %v4306_v55  ;;  %v2273_v27 = vmul.f32 %v4334_v33, %v4334_v33 }
 0x5ca   :  { %v4304_v36 = vpop.xlane.xlu0 %2162  ;;  %v2336_v34 = vadd.f32 1e-05, %v2304_v25  ;;  %v2398_v35 = vadd.f32 %v4317_v12, %v2378_v23  ;;  %v2322_v41 = vsub.f32 %v4214_v28, %v4310_v11  ;;  %v2313_v48 = vsub.f32 %v4219_v40, %v4321_v24 }
 0x5cb   :  { %v4308_v19 = vpop.xlane.xlu1 %2178  ;;  %2853 = vrsqrt.f32 %v2328_v4  ;;  %v2399_v26 = vadd.f32 %v4317_v12, %v2379_v56  ;;  %v4346_v4 = vmul.f32 0.0078125, %v2161_v3  ;;  %v2321_v3 = vsub.f32 %v4222_v58, %v4334_v33 }
 0x5cc   :  { %2855 = vrsqrt.f32 %v2336_v34  ;;  %v2414_v20 = vmax.f32 %v2398_v35, 0.0 }
 0x5cd   :  { %v2415_v22 = vmax.f32 %v2399_v26, 0.0 }
 0x5ce   :  { %v2223_v46 = vpop.xlane.xlu0 %2222  ;;  %v2430_v56 = vrot.slane %v2414_v20, 4 }
 0x5cf   :  { %v2250_v0 = vmul.f32 0.0078125, %v2223_v46  ;;  %v2239_v60 = vpop.xlane.xlu1 %2238  ;;  %v2436_v46 = vrot.slane %v2415_v22, 4 }
 0x5d0   :  { %v2258_v37 = vmul.f32 0.0078125, %v2239_v60 }
 0x5d1   :  { %v2850_v38 = vpop.eup %2849  ;;  %v2282_v39 = vsub.f32 %v2250_v0, %v2266_v49 }
 0x5d2   :  { %v2852_v6 = vpop.eup %2851  ;;  %v2366_v29 = vmul.f32 %v2850_v38, %v2318_v44  ;;  %v2290_v14 = vsub.f32 %v2258_v37, %v2274_v45  ;;  %v2221_v54 = vpop.xlane.xlu0 %2220  ;;  %v4356_v44 = vmul.f32 0.0078125, %v4299_v61  ;;  %v4364_v61 = vmul.f32 0.0078125, %v4304_v36 }
 0x5d3   :  { %v2298_v8 = vmax.f32 %v2282_v39, 0.0  ;;  %v2249_v9 = vmul.f32 0.0078125, %v2221_v54  ;;  %v2237_v21 = vpop.xlane.xlu1 %2236  ;;  %v2367_v31 = vmul.f32 %v2852_v6, %v2319_v43  ;;  %v2431_v39 = vmax.f32 %v2414_v20, %v2430_v56 }
 0x5d4   :  { %v2306_v2 = vmax.f32 %v2290_v14, 0.0  ;;  %v2386_v50 = vmul.f32 %v4302_v42, %v2366_v29  ;;  %v2257_v32 = vmul.f32 0.0078125, %v2237_v21  ;;  %v2437_v6 = vmax.f32 %v2415_v22, %v2436_v46 }
 0x5d5   :  { %v2330_v10 = vadd.f32 1e-05, %v2298_v8  ;;  %v2281_v15 = vsub.f32 %v2249_v9, %v2265_v57  ;;  %v2854_v25 = vpop.eup %2853  ;;  %v2387_v62 = vmul.f32 %v4302_v42, %v2367_v31  ;;  %v2267_v43 = vmul.f32 %v4346_v4, %v4346_v4 }
 0x5d6   :  { %v2165_v5 = vpop.xlane.xlu0 %2164  ;;  %v2338_v34 = vadd.f32 1e-05, %v2306_v2  ;;  %v2856_v23 = vpop.eup %2855  ;;  %v2406_v30 = vadd.f32 %v4317_v12, %v2386_v50  ;;  %v2289_v49 = vsub.f32 %v2257_v32, %v2273_v27  ;;  %v2360_v60 = vmul.f32 %v2854_v25, %v2312_v53 }
 0x5d7   :  { %v2181_v18 = vpop.xlane.xlu1 %2180  ;;  %2857 = vrsqrt.f32 %v2330_v10  ;;  %v2297_v63 = vmax.f32 %v2281_v15, 0.0  ;;  %v2407_v38 = vadd.f32 %v4317_v12, %v2387_v62  ;;  %v2368_v35 = vmul.f32 %v2856_v23, %v2320_v16 }
 0x5d8   :  { %2859 = vrsqrt.f32 %v2338_v34  ;;  %v2305_v26 = vmax.f32 %v2289_v49, 0.0  ;;  %v2422_v29 = vmax.f32 %v2406_v30, 0.0  ;;  %v2315_v14 = vsub.f32 %v4235_v47, %v4346_v4 }
 0x5d9   :  { %v2329_v45 = vadd.f32 1e-05, %v2297_v63  ;;  %v2380_v57 = vmul.f32 %v4302_v42, %v2360_v60  ;;  %v2275_v8 = vmul.f32 %v4356_v44, %v4356_v44  ;;  %v4370_v9 = vmul.f32 0.0078125, %v4308_v19 }
 0x5da   :  { %v2225_v0 = vpop.xlane.xlu0 %2224  ;;  %v2337_v54 = vadd.f32 1e-05, %v2305_v26  ;;  %v2423_v2 = vmax.f32 %v2407_v38, 0.0  ;;  %v2388_v20 = vmul.f32 %v4302_v42, %v2368_v35  ;;  %v2432_v10 = vrot.slane %v2431_v39, 2 }
 0x5db   :  { %v2241_v37 = vpop.xlane.xlu1 %2240  ;;  %2861 = vrsqrt.f32 %v2329_v45  ;;  %v2251_v21 = vmul.f32 0.0078125, %v2225_v0  ;;  %v2438_v15 = vrot.slane %v2437_v6, 2  ;;  %v2323_v36 = vsub.f32 %v4238_v7, %v4356_v44 }
 0x5dc   :  { %2863 = vrsqrt.f32 %v2337_v54  ;;  %v2259_v22 = vmul.f32 0.0078125, %v2241_v37  ;;  %v2478_v53 = vrot.slane %v2422_v29, 4  ;;  %v2268_v16 = vmul.f32 %v4364_v61, %v4364_v61 }
 0x5dd   :  { %v2283_v50 = vsub.f32 %v2251_v21, %v2267_v43  ;;  %v4378_v62 = vadd.f32 %v4317_v12, %v2380_v57  ;;  %v2316_v34 = vsub.f32 %v4243_v17, %v4364_v61  ;;  %v4382_v23 = vmul.f32 0.0078125, %v2165_v5 }
 0x5de   :  { %v2227_v31 = vpop.xlane.xlu0 %2226  ;;  %v2291_v19 = vsub.f32 %v2259_v22, %v2275_v8  ;;  %v2484_v46 = vrot.slane %v2423_v2, 4  ;;  %v4385_v63 = vadd.f32 %v4317_v12, %v2388_v20  ;;  %v2276_v30 = vmul.f32 %v4370_v9, %v4370_v9 }
 0x5df   :  { %v2243_v32 = vpop.xlane.xlu1 %2242  ;;  %v2252_v25 = vmul.f32 0.0078125, %v2227_v31  ;;  %v2299_v56 = vmax.f32 %v2283_v50, 0.0  ;;  %v4389_v0 = vmax.f32 %v2431_v39, %v2432_v10  ;;  %v4391_v60 = vmax.f32 %v2437_v6, %v2438_v15 }
 0x5e0   :  { %v2307_v49 = vmax.f32 %v2291_v19, 0.0  ;;  %v4393_v45 = vmul.f32 0.0078125, %v2181_v18  ;;  %v2479_v35 = vmax.f32 %v2422_v29, %v2478_v53  ;;  %v2416_v57 = vmax.f32 %v4378_v62, 0.0 }
 0x5e1   :  { %v2858_v27 = vpop.eup %2857  ;;  %v2331_v37 = vadd.f32 1e-05, %v2299_v56  ;;  %v2284_v43 = vsub.f32 %v2252_v25, %v2268_v16  ;;  %v2269_v39 = vmul.f32 %v4382_v23, %v4382_v23  ;;  %v2260_v6 = vmul.f32 0.0078125, %v2243_v32 }
 0x5e2   :  { %v2860_v38 = vpop.eup %2859  ;;  %v2362_v5 = vmul.f32 %v2858_v27, %v2314_v13  ;;  %v2339_v26 = vadd.f32 1e-05, %v2307_v49  ;;  %v2229_v8 = vpop.xlane.xlu0 %2228  ;;  %v2485_v21 = vmax.f32 %v2423_v2, %v2484_v46  ;;  %v2424_v31 = vmax.f32 %v4385_v63, 0.0 }
 0x5e3   :  { %2865 = vrsqrt.f32 %v2331_v37  ;;  %v2245_v18 = vpop.xlane.xlu1 %2244  ;;  %v2370_v55 = vmul.f32 %v2860_v38, %v2322_v41  ;;  %v2277_v13 = vmul.f32 %v4393_v45, %v4393_v45  ;;  %v2300_v29 = vmax.f32 %v2284_v43, 0.0 }
 0x5e4   :  { %2867 = vrsqrt.f32 %v2339_v26  ;;  %v2292_v20 = vsub.f32 %v2260_v6, %v2276_v30  ;;  %v2382_v10 = vmul.f32 %v4302_v42, %v2362_v5  ;;  %v2253_v15 = vmul.f32 0.0078125, %v2229_v8 }
 0x5e5   :  { %v2862_v54 = vpop.eup %2861  ;;  %v2261_v50 = vmul.f32 0.0078125, %v2245_v18  ;;  %v2480_v32 = vrot.slane %v2479_v35, 2  ;;  %v2332_v24 = vadd.f32 1e-05, %v2300_v29  ;;  %v2442_v11 = vrot.slane %v2416_v57, 4 }
 0x5e6   :  { %v2361_v51 = vmul.f32 %v2862_v54, %v2313_v48  ;;  %v2864_v22 = vpop.eup %2863  ;;  %v2308_v28 = vmax.f32 %v2292_v20, 0.0  ;;  %v2285_v48 = vsub.f32 %v2253_v15, %v2269_v39  ;;  %v2390_v16 = vmul.f32 %v4302_v42, %v2370_v55 }
 0x5e7   :  { %v2369_v40 = vmul.f32 %v2864_v22, %v2321_v3  ;;  %v2293_v53 = vsub.f32 %v2261_v50, %v2277_v13  ;;  %2869 = vrsqrt.f32 %v2332_v24  ;;  %v2486_v27 = vrot.slane %v2485_v21, 2 }
 0x5e8   :  { %v2381_v2 = vmul.f32 %v4302_v42, %v2361_v51  ;;  %v2340_v25 = vadd.f32 1e-05, %v2308_v28  ;;  %v2402_v62 = vadd.f32 %v4317_v12, %v2382_v10  ;;  %v2301_v56 = vmax.f32 %v2285_v48, 0.0 }
 0x5e9   :  { %v2389_v19 = vmul.f32 %v4302_v42, %v2369_v40  ;;  %v2309_v46 = vmax.f32 %v2293_v53, 0.0  ;;  %v2434_v58 = vrot.slane %v4389_v0, 1  ;;  %v2440_v63 = vrot.slane %v4391_v60, 1 }
 0x5ea   :  { %v2401_v41 = vadd.f32 %v4317_v12, %v2381_v2  ;;  %2871 = vrsqrt.f32 %v2340_v25  ;;  %v2490_v30 = vrot.slane %v2424_v31, 4  ;;  %v2333_v49 = vadd.f32 1e-05, %v2301_v56 }
 0x5eb   :  { %v2409_v3 = vadd.f32 %v4317_v12, %v2389_v19  ;;  %v2341_v37 = vadd.f32 1e-05, %v2309_v46  ;;  %v2481_v5 = vmax.f32 %v2479_v35, %v2480_v32  ;;  %v2443_v26 = vmax.f32 %v2416_v57, %v2442_v11 }
 0x5ec   :  { %v2417_v33 = vmax.f32 %v2401_v41, 0.0  ;;  %v2410_v43 = vadd.f32 %v4317_v12, %v2390_v16  ;;  %v2487_v6 = vmax.f32 %v2485_v21, %v2486_v27  ;;  %v2418_v8 = vmax.f32 %v2402_v62, 0.0 }
 0x5ed   :  { %v2866_v38 = vpop.eup %2865  ;;  %v2425_v54 = vmax.f32 %v2409_v3, 0.0  ;;  %2873 = vrsqrt.f32 %v2333_v49  ;;  %v4430_v35 = vmax.f32 %v4389_v0, %v2434_v58  ;;  %v2491_v57 = vmax.f32 %v2424_v31, %v2490_v30 }
 0x5ee   :  { %v2868_v39 = vpop.eup %2867  ;;  %v2363_v18 = vmul.f32 %v2866_v38, %v2315_v14  ;;  %v2448_v51 = vrot.slane %v2417_v33, 4  ;;  %2875 = vrsqrt.f32 %v2341_v37  ;;  %v2324_v21 = vsub.f32 %v4246_v1, %v4370_v9 }
 0x5ef   :  { %v2496_v55 = vrot.slane %v2425_v54, 4  ;;  %v2371_v13 = vmul.f32 %v2868_v39, %v2323_v36  ;;  %v2482_v20 = vrot.slane %v2481_v5, 1  ;;  %v2444_v47 = vrot.slane %v2443_v26, 2 }
 0x5f0   :  { %v2383_v29 = vmul.f32 %v4302_v42, %v2363_v18  ;;  %v2426_v4 = vmax.f32 %v2410_v43, 0.0  ;;  %v4437_v22 = vmax.f32 %v4391_v60, %v2440_v63  ;;  %v2454_v7 = vrot.slane %v2418_v8, 4 }
 0x5f1   :  { %v2391_v14 = vmul.f32 %v4302_v42, %v2371_v13  ;;  %v2317_v44 = vsub.f32 %v4259_v59, %v4382_v23  ;;  %v2870_v0 = vpop.eup %2869  ;;  %v2488_v31 = vrot.slane %v2487_v6, 1  ;;  %v2449_v10 = vmax.f32 %v2417_v33, %v2448_v51 }
 0x5f2   :  { %v2403_v36 = vadd.f32 %v4317_v12, %v2383_v29  ;;  %v2497_v1 = vmax.f32 %v2425_v54, %v2496_v55  ;;  %v2492_v2 = vrot.slane %v2491_v57, 2  ;;  %v2325_v15 = vsub.f32 %v4262_v52, %v4393_v45 }
 0x5f3   :  { %v2411_v9 = vadd.f32 %v4317_v12, %v2391_v14  ;;  %v2364_v60 = vmul.f32 %v2870_v0, %v2316_v34  ;;  %v4448_v40 = vmax.f32 %v2481_v5, %v2482_v20  ;;  %v2445_v59 = vmax.f32 %v2443_v26, %v2444_v47 }
 0x5f4   :  { %v2419_v50 = vmax.f32 %v2403_v36, 0.0  ;;  %v2872_v32 = vpop.eup %2871  ;;  %v2502_v23 = vrot.slane %v2426_v4, 4  ;;  %v2455_v28 = vmax.f32 %v2418_v8, %v2454_v7  ;;  %v4451_v53 = vmax.f32 %v2487_v6, %v2488_v31 }
 0x5f5   :  { %v2427_v24 = vmax.f32 %v2411_v9, 0.0  ;;  %v2384_v41 = vmul.f32 %v4302_v42, %v2364_v60  ;;  %v2372_v48 = vmul.f32 %v2872_v32, %v2324_v21  ;;  %v2450_v16 = vrot.slane %v2449_v10, 2 }
 0x5f6   :  { %v2460_v11 = vrot.slane %v2419_v50, 4  ;;  %v2498_v52 = vrot.slane %v2497_v1, 2  ;;  %v2493_v25 = vmax.f32 %v2491_v57, %v2492_v2  ;;  %v2446_v62 = vrot.slane %v2445_v59, 1 }
 0x5f7   :  { %v2508_v45 = vrot.slane %v2427_v24, 4  ;;  %v2874_v19 = vpop.eup %2873  ;;  %v2404_v61 = vadd.f32 %v4317_v12, %v2384_v41  ;;  %v2392_v34 = vmul.f32 %v4302_v42, %v2372_v48  ;;  %v2503_v56 = vmax.f32 %v2426_v4, %v2502_v23 }
 0x5f8   :  { %v2461_v17 = vmax.f32 %v2419_v50, %v2460_v11  ;;  %v2876_v27 = vpop.eup %2875  ;;  %v2365_v58 = vmul.f32 %v2874_v19, %v2317_v44  ;;  %v2456_v33 = vrot.slane %v2455_v28, 2  ;;  %v2451_v49 = vmax.f32 %v2449_v10, %v2450_v16 }
 0x5f9   :  { %v2509_v46 = vmax.f32 %v2427_v24, %v2508_v45  ;;  %v2420_v3 = vmax.f32 %v2404_v61, 0.0  ;;  %v2412_v63 = vadd.f32 %v4317_v12, %v2392_v34  ;;  %v2373_v30 = vmul.f32 %v2876_v27, %v2325_v15 }
 0x5fa   :  { %v2499_v37 = vmax.f32 %v2497_v1, %v2498_v52  ;;  %v2462_v38 = vrot.slane %v2461_v17, 2  ;;  %v2385_v5 = vmul.f32 %v4302_v42, %v2365_v58  ;;  %v2447_v6 = vmax.f32 %v2445_v59, %v2446_v62 }
 0x5fb   :  { %v2510_v26 = vrot.slane %v2509_v46, 2  ;;  %v2466_v43 = vrot.slane %v2420_v3, 4  ;;  %v2428_v54 = vmax.f32 %v2412_v63, 0.0  ;;  %v2393_v39 = vmul.f32 %v4302_v42, %v2373_v30 }
 0x5fc   :  { %v2494_v8 = vrot.slane %v2493_v25, 1  ;;  %v2504_v18 = vrot.slane %v2503_v56, 2  ;;  %v2405_v51 = vadd.f32 %v4317_v12, %v2385_v5  ;;  %v2457_v55 = vmax.f32 %v2455_v28, %v2456_v33 }
 0x5fd   :  { %v2467_v13 = vmax.f32 %v2420_v3, %v2466_v43  ;;  %v2514_v57 = vrot.slane %v2428_v54, 4  ;;  %v2413_v21 = vadd.f32 %v4317_v12, %v2393_v39  ;;  %v2452_v29 = vrot.slane %v2451_v49, 1 }
 0x5fe   :  { %v2500_v20 = vrot.slane %v2499_v37, 1  ;;  %v2463_v47 = vmax.f32 %v2461_v17, %v2462_v38  ;;  %v2421_v4 = vmax.f32 %v2405_v51, 0.0  ;;  %v2511_v14 = vmax.f32 %v2509_v46, %v2510_v26 }
 0x5ff   :  { %v2468_v7 = vrot.slane %v2467_v13, 2  ;;  %v2515_v44 = vmax.f32 %v2428_v54, %v2514_v57  ;;  %v2429_v36 = vmax.f32 %v2413_v21, 0.0  ;;  %v2495_v0 = vmax.f32 %v2493_v25, %v2494_v8 }
 0x600   :  { %v2505_v42 = vmax.f32 %v2503_v56, %v2504_v18  ;;  %v2472_v31 = vrot.slane %v2421_v4, 4  ;;  %v2542_v10 = vsel %vm770_vm2, %v4437_v22, %v4430_v35  ;;  %v2458_v1 = vrot.slane %v2457_v55, 1 }
 0x601   :  { %v2469_v9 = vmax.f32 %v2467_v13, %v2468_v7  ;;  %v2516_v2 = vrot.slane %v2515_v44, 2  ;;  %v2520_v15 = vrot.slane %v2429_v36, 4  ;;  %v2453_v12 = vmax.f32 %v2451_v49, %v2452_v29 }
 0x602   :  { %v2501_v50 = vmax.f32 %v2499_v37, %v2500_v20  ;;  %v2464_v60 = vrot.slane %v2463_v47, 1  ;;  %v2473_v32 = vmax.f32 %v2421_v4, %v2472_v31  ;;  %v2512_v59 = vrot.slane %v2511_v14, 1 }
 0x603   :  { %v2517_v23 = vmax.f32 %v2515_v44, %v2516_v2  ;;  %v2521_v24 = vmax.f32 %v2429_v36, %v2520_v15  ;;  %v2470_v28 = vrot.slane %v2469_v9, 1  ;;  %v2506_v11 = vrot.slane %v2505_v42, 1 }
 0x604   :  { %v2474_v41 = vrot.slane %v2473_v32, 2  ;;  %v2543_v48 = vsel %vm772_vm3, %v2447_v6, %v2542_v10  ;;  %v2459_v16 = vmax.f32 %v2457_v55, %v2458_v1  ;;  %v2549_v35 = vsel %vm770_vm2, %v4451_v53, %v4448_v40 }
 0x605   :  { %v2522_v52 = vrot.slane %v2521_v24, 2  ;;  %v2518_v45 = vrot.slane %v2517_v23, 1  ;;  %v2465_v19 = vmax.f32 %v2463_v47, %v2464_v60  ;;  %v2544_v25 = vsel %vm774_vm4, %v2453_v12, %v2543_v48 }
 0x606   :  { %v2475_v22 = vmax.f32 %v2473_v32, %v2474_v41  ;;  %v2550_v17 = vsel %vm772_vm3, %v2495_v0, %v2549_v35  ;;  %v2471_v34 = vmax.f32 %v2469_v9, %v2470_v28  ;;  %v2513_v27 = vmax.f32 %v2511_v14, %v2512_v59 }
 0x607   :  { %v2523_v61 = vmax.f32 %v2521_v24, %v2522_v52  ;;  %v2551_v62 = vsel %vm774_vm4, %v2501_v50, %v2550_v17  ;;  %v2507_v56 = vmax.f32 %v2505_v42, %v2506_v11  ;;  %v2519_v58 = vmax.f32 %v2517_v23, %v2518_v45 }
 0x608   :  { %v2476_v46 = vrot.slane %v2475_v22, 1  ;;  %v2545_v3 = vsel %vm776_vm5, %v2459_v16, %v2544_v25 }
 0x609   :  { %v2524_v33 = vrot.slane %v2523_v61, 1  ;;  %v2546_v53 = vsel %vm778_vm6, %v2465_v19, %v2545_v3  ;;  %v2552_v63 = vsel %vm776_vm5, %v2507_v56, %v2551_v62 }
 0x60a   :  { %v2477_v40 = vmax.f32 %v2475_v22, %v2476_v46  ;;  %v2547_v49 = vsel %vm780_vm7, %v2471_v34, %v2546_v53  ;;  %v2553_v37 = vsel %vm778_vm6, %v2513_v27, %v2552_v63 }
 0x60b   :  { %v2525_v30 = vmax.f32 %v2523_v61, %v2524_v33  ;;  %v2554_v5 = vsel %vm780_vm7, %v2519_v58, %v2553_v37 }
 0x60c   :  { %v2548_v38 = vsel %vm782_vm8, %v2477_v40, %v2547_v49 }
 0x60d   :  { %v2555_v26 = vsel %vm782_vm8, %v2525_v30, %v2554_v5  ;;  %2558 = vst [vmem:[#allocation13] sm:$0xff] %v2548_v38  ;;  %2560 = vst [vmem:[#allocation13 + $0x8] sm:$0xff] %v2548_v38 }
 0x60e   :  { %2559 = vst [vmem:[#allocation13 + $0x10] sm:$0xff] %v2555_v26  ;;  %2561 = vst [vmem:[#allocation13 + $0x18] sm:$0xff] %v2555_v26 }
 0x60f   :  { %3022 = shalt.err (!%p3019_p10)
}
 0x610   :  { %s3023_s14 = scalar_lea.hbm %s4497_s7, 512 }
 0x611   :  { %p3024_p11 = scmp.ne.s32.totalorder %s4497_s7, %s3023_s14  ;;  %p3027_p12 = scmp.lt.u32.totalorder %s3023_s14, %s4497_s7 }
 0x613   :  { %p3029_p13 = pnand %p3027_p12, %p3024_p11 }
 0x615   :  { %3032 = shalt.err (!%p3029_p13)
}
 0x616   :  { %s3057_s17 = smov 256   ;;  %s3058_s19 = smov 16  }
 0x617   :  { %2573 = dma.vmem_to_hbm [thread:$0]  %s2568_s8, 512, %s4497_s7, [#allocation4], %s3057_s17, %s3057_s17, %s3058_s19  }
 0x618   :  { %3041 = dma.done.wait [#allocation4], 512  }
 0x619   :  { %3042 = vsyncadd [#allocation4], 4294966784 }
 0x61a   :  { %2577 = vsyncpa [#allocation3], 1 }
 0x61b   :  { %2578 = vsyncpa [#allocation6], 1 }
 0x61c   :  { %2579 = vsyncpa [#allocation9], 1 }
 0x61d   :  { %2580 = vsyncpa [#allocation12], 1 }
 0x61e   :  { %2581 = vsyncpa [#allocation4], 1 }

// kernel: tpu_custom_call.1
= control target key start
LH: loop header
LB: loop body
LE: loop exit
PB: predicated region body
PF: predicated region fallthrough
CT: control target
= control target key end

     0   :  { %12 = vsyncpa [#allocation3], 0  ;;  %s4490_s0 = inlined_call_operand.hbm [shape: f32[16,8,32], index: 0, kind: input, shape index: {}]   ;;  %s4491_s1 = inlined_call_operand.hbm [shape: bf16[32,32], index: 1, kind: input, shape index: {}]   ;;  %s4492_s2 = inlined_call_operand.hbm [shape: bf16[32,64], index: 2, kind: input, shape index: {}]   ;;  %s4493_s3 = inlined_call_operand.hbm [shape: bf16[32,64], index: 3, kind: input, shape index: {}]   ;;  %s4494_s4 = inlined_call_operand.hbm [shape: bf16[64,128], index: 4, kind: input, shape index: {}]   ;;  %s4495_s5 = inlined_call_operand.hbm [shape: bf16[64,128], index: 5, kind: input, shape index: {}]   ;;  %s4496_s6 = inlined_call_operand.vmem [shape: f32[9,128], index: 6, kind: input, shape index: {}]   ;;  %s4497_s7 = inlined_call_operand.hbm [shape: f32[16,256], index: 7, kind: output, shape index: {}]  }
   0x1   :  { %13 = vsyncpa [#allocation6], 0 }
   0x2   :  { %14 = vsyncpa [#allocation9], 0 }
   0x3   :  { %15 = vsyncpa [#allocation12], 0 }
   0x4   :  { %16 = vsyncpa [#allocation4], 0  ;;  %s3043_s24 = smov [#allocation5]   ;;  %s2879_s28 = scalar_lea.hbm %s4491_s1, 256 }
   0x5   :  { %s34_s25 = sshll.u32 %s3043_s24, 4  ;;  %p2880_p0 = scmp.ne.s32.totalorder %s4491_s1, %s2879_s28  ;;  %s35_s25 = int_to_ptr.vmem [resolvable:$true] %s34_s25 }
   0x6   :  { %p2883_p1 = scmp.lt.u32.totalorder %s2879_s28, %s4491_s1 }
   0x8   :  { %p2885_p2 = pnand %p2883_p1, %p2880_p0 }
   0xa   :  { %2888 = shalt.err (!%p2885_p2)
}
   0xb   :  { %s2889_s10 = scalar_lea.vmem %s35_s25, 256  ;;  %p2894_p4 = scmp.lt.s32.totalorder %s35_s25, %s35_s25 }
   0xc   :  { %p2890_p3 = scmp.ne.s32.totalorder %s35_s25, %s2889_s10  ;;  %p2895_p5 = scmp.lt.s32.totalorder %s2889_s10, %s2889_s10 }
   0xe   :  { %p2896_p6 = por %p2895_p5, %p2894_p4 }
  0x10   :  { %p2897_p7 = pnand %p2896_p6, %p2890_p3 }
  0x12   :  { %2900 = shalt.err (!%p2897_p7)
}
  0x13   :  { %s3044_s11 = smov 64   ;;  %s3045_s12 = smov 4  }
  0x14   :  { %40 = dma.hbm_to_vmem [thread:$0]  %s4491_s1, 256, %s35_s25, [#allocation6], %s3044_s11, %s3044_s11, %s3045_s12  }
  0x15   :  { %s3046_s15 = smov [#allocation8]   ;;  %s3047_s17 = smov [#allocation2]  }
  0x16   :  { %s58_s16 = sshll.u32 %s3046_s15, 4  ;;  %s22_s18 = sshll.u32 %s3047_s17, 4  ;;  %s59_s16 = int_to_ptr.vmem [resolvable:$true] %s58_s16  ;;  %s23_s18 = int_to_ptr.vmem [resolvable:$true] %s22_s18 }
  0x17   :  { %s2901_s21 = scalar_lea.hbm %s4493_s3, 256 }
  0x18   :  { %p2902_p8 = scmp.ne.s32.totalorder %s4493_s3, %s2901_s21  ;;  %p2905_p9 = scmp.lt.u32.totalorder %s2901_s21, %s4493_s3 }
  0x1a   :  { %p2907_p10 = pnand %p2905_p9, %p2902_p8 }
  0x1c   :  { %2910 = shalt.err (!%p2907_p10)
}
  0x1d   :  { %s2911_s1 = scalar_lea.vmem %s59_s16, 256  ;;  %p2916_p12 = scmp.lt.s32.totalorder %s59_s16, %s59_s16 }
  0x1e   :  { %p2912_p11 = scmp.ne.s32.totalorder %s59_s16, %s2911_s1  ;;  %p2917_p13 = scmp.lt.s32.totalorder %s2911_s1, %s2911_s1 }
  0x20   :  { %p2918_p0 = por %p2917_p13, %p2916_p12 }
  0x22   :  { %p2919_p1 = pnand %p2918_p0, %p2912_p11 }
  0x24   :  { %2922 = shalt.err (!%p2919_p1)
}
  0x25   :  { %64 = dma.hbm_to_vmem [thread:$0]  %s4493_s3, 256, %s59_s16, [#allocation9], %s3044_s11, %s3044_s11, %s3045_s12  }
  0x26   :  { %s2923_s30 = scalar_lea.hbm %s4490_s0, 2048 }
  0x27   :  { %p2924_p2 = scmp.ne.s32.totalorder %s4490_s0, %s2923_s30  ;;  %p2927_p3 = scmp.lt.u32.totalorder %s2923_s30, %s4490_s0 }
  0x29   :  { %p2929_p4 = pnand %p2927_p3, %p2924_p2 }
  0x2b   :  { %2932 = shalt.err (!%p2929_p4)
}
  0x2c   :  { %s2933_s14 = scalar_lea.vmem %s23_s18, 2048  ;;  %p2938_p6 = scmp.lt.s32.totalorder %s23_s18, %s23_s18 }
  0x2d   :  { %p2934_p5 = scmp.ne.s32.totalorder %s23_s18, %s2933_s14  ;;  %p2939_p7 = scmp.lt.s32.totalorder %s2933_s14, %s2933_s14 }
  0x2f   :  { %p2940_p8 = por %p2939_p7, %p2938_p6 }
  0x31   :  { %p2941_p9 = pnand %p2940_p8, %p2934_p5 }
  0x33   :  { %2944 = shalt.err (!%p2941_p9)
}
  0x34   :  { %s3048_s3 = smov 128   ;;  %s3049_s15 = smov 8  }
  0x35   :  { %28 = dma.hbm_to_vmem [thread:$0]  %s4490_s0, 2048, %s23_s18, [#allocation3], %s3048_s3, %s3048_s3, %s3049_s15  }
  0x36   :  { %s3050_s19 = smov [#allocation7]   ;;  %s3051_s21 = smov [#allocation10]  }
  0x37   :  { %s46_s20 = sshll.u32 %s3050_s19, 4  ;;  %s70_s22 = sshll.u32 %s3051_s21, 4  ;;  %s47_s20 = int_to_ptr.vmem [resolvable:$true] %s46_s20  ;;  %s71_s22 = int_to_ptr.vmem [resolvable:$true] %s70_s22 }
  0x38   :  { %s2945_s26 = scalar_lea.hbm %s4492_s2, 256 }
  0x39   :  { %p2946_p10 = scmp.ne.s32.totalorder %s4492_s2, %s2945_s26  ;;  %p2949_p11 = scmp.lt.u32.totalorder %s2945_s26, %s4492_s2 }
  0x3b   :  { %p2951_p12 = pnand %p2949_p11, %p2946_p10 }
  0x3d   :  { %2954 = shalt.err (!%p2951_p12)
}
  0x3e   :  { %s2955_s0 = scalar_lea.vmem %s47_s20, 256  ;;  %p2960_p0 = scmp.lt.s32.totalorder %s47_s20, %s47_s20 }
  0x3f   :  { %p2956_p13 = scmp.ne.s32.totalorder %s47_s20, %s2955_s0  ;;  %p2961_p1 = scmp.lt.s32.totalorder %s2955_s0, %s2955_s0 }
  0x41   :  { %p2962_p2 = por %p2961_p1, %p2960_p0 }
  0x43   :  { %p2963_p3 = pnand %p2962_p2, %p2956_p13 }
  0x45   :  { %2966 = shalt.err (!%p2963_p3)
}
  0x46   :  { %52 = dma.hbm_to_vmem [thread:$0]  %s4492_s2, 256, %s47_s20, [#allocation6], %s3044_s11, %s3044_s11, %s3045_s12  }
  0x47   :  { %s2967_s9 = scalar_lea.hbm %s4494_s4, 512 }
  0x48   :  { %p2968_p4 = scmp.ne.s32.totalorder %s4494_s4, %s2967_s9  ;;  %p2971_p5 = scmp.lt.u32.totalorder %s2967_s9, %s4494_s4 }
  0x4a   :  { %p2973_p6 = pnand %p2971_p5, %p2968_p4 }
  0x4c   :  { %2976 = shalt.err (!%p2973_p6)
}
  0x4d   :  { %s2977_s15 = scalar_lea.vmem %s71_s22, 512  ;;  %p2982_p8 = scmp.lt.s32.totalorder %s71_s22, %s71_s22 }
  0x4e   :  { %p2978_p7 = scmp.ne.s32.totalorder %s71_s22, %s2977_s15  ;;  %p2983_p9 = scmp.lt.s32.totalorder %s2977_s15, %s2977_s15 }
  0x50   :  { %p2984_p10 = por %p2983_p9, %p2982_p8 }
  0x52   :  { %p2985_p11 = pnand %p2984_p10, %p2978_p7 }
  0x54   :  { %2988 = shalt.err (!%p2985_p11)
}
  0x55   :  { %76 = dma.hbm_to_vmem [thread:$0]  %s4494_s4, 512, %s71_s22, [#allocation9], %s3044_s11, %s3044_s11, %s3045_s12  }
  0x56   :  { %s3052_s17 = smov [#allocation11]   ;;  %s2989_s23 = scalar_lea.hbm %s4495_s5, 512 }
  0x57   :  { %s82_s19 = sshll.u32 %s3052_s17, 4  ;;  %p2990_p12 = scmp.ne.s32.totalorder %s4495_s5, %s2989_s23  ;;  %s83_s19 = int_to_ptr.vmem [resolvable:$true] %s82_s19 }
  0x58   :  { %p2993_p13 = scmp.lt.u32.totalorder %s2989_s23, %s4495_s5 }
  0x5a   :  { %p2995_p0 = pnand %p2993_p13, %p2990_p12 }
  0x5c   :  { %2998 = shalt.err (!%p2995_p0)
}
  0x5d   :  { %s2999_s27 = scalar_lea.vmem %s83_s19, 512  ;;  %p3004_p2 = scmp.lt.s32.totalorder %s83_s19, %s83_s19 }
  0x5e   :  { %p3000_p1 = scmp.ne.s32.totalorder %s83_s19, %s2999_s27  ;;  %p3005_p3 = scmp.lt.s32.totalorder %s2999_s27, %s2999_s27 }
  0x60   :  { %p3006_p4 = por %p3005_p3, %p3004_p2 }
  0x62   :  { %p3007_p5 = pnand %p3006_p4, %p3000_p1 }
  0x64   :  { %3010 = shalt.err (!%p3007_p5)
}
  0x65   :  { %88 = dma.hbm_to_vmem [thread:$0]  %s4495_s5, 512, %s83_s19, [#allocation12], %s3044_s11, %s3044_s11, %s3045_s12  }
  0x66   :  { %3033 = dma.done.wait [#allocation3], 2048  }
  0x67   :  { %3034 = vsyncadd [#allocation3], 4294965248 }
  0x68   :  { %3035 = dma.done.wait [#allocation6], 512  }
  0x69   :  { %3036 = vsyncadd [#allocation6], 4294966784 }
  0x6a   :  { %3037 = dma.done.wait [#allocation9], 768  }
  0x6b   :  { %3038 = vsyncadd [#allocation9], 4294966528 }
  0x6c   :  { %3039 = dma.done.wait [#allocation12], 512  }
  0x6d   :  { %3040 = vsyncadd [#allocation12], 4294966784  ;;  %v2767_v0 = vld [vmem:[#allocation5] sm:$0xff]   ;;  %v2768_v1 = vld [vmem:[#allocation5 + $0x8] sm:$0xff]   ;;  %vm152_vm0 = vcmask 261120   ;;  %v274_v26 = vlaneseq  ;;  %vm3054_vm1 = vmmov 0  }
  0x6e   :  { %2663 = vmatprep.subr.bf16.mxu0 %v2767_v0  ;;  %v112_v2 = vld [vmem:[#allocation2] sm:$0xff]  ;;  %v113_v3 = vld [vmem:[#allocation2 + $0x8] sm:$0xff]  ;;  %v114_v5 = vld [vmem:[#allocation2 + $0x10] sm:$0xff]  ;;  %vm770_vm2 = vcmask 1041409   ;;  %vm772_vm3 = vcmask 1042434   ;;  %vm774_vm4 = vcmask 1043459  }
  0x6f   :  { %2664 = vmatpush3.bf16.msra.mxu0 %v2767_v0  ;;  %v132_v4 = vpack.c.bf16 %v113_v3, %v112_v2  ;;  %v115_v6 = vld [vmem:[#allocation2 + $0x18] sm:$0xff]  ;;  %v116_v7 = vld [vmem:[#allocation2 + $0x20] sm:$0xff]  ;;  %v117_v8 = vld [vmem:[#allocation2 + $0x28] sm:$0xff]  ;;  %v3194_v27 = vshrl.u32 %v274_v26, 7  ;;  %vm776_vm5 = vcmask 1044484   ;;  %vm778_vm6 = vcmask 1045509  }
  0x70   :  { %2665 = vmatprep.subr.bf16.mxu0 %v2768_v1  ;;  %v133_v9 = vpack.c.bf16 %v115_v6, %v114_v5  ;;  %v134_v10 = vpack.c.bf16 %v117_v8, %v116_v7  ;;  %v118_v11 = vld [vmem:[#allocation2 + $0x30] sm:$0xff]  ;;  %v119_v12 = vld [vmem:[#allocation2 + $0x38] sm:$0xff]  ;;  %v120_v13 = vld [vmem:[#allocation2 + $0x40] sm:$0xff]  ;;  %vm780_vm7 = vcmask 1046534   ;;  %vm782_vm8 = vcmask 1047559  }
  0x71   :  { %2667 = vmatprep.mubr.msk.bf16.mxu0 %vm152_vm0, %v132_v4  ;;  %v121_v14 = vld [vmem:[#allocation2 + $0x48] sm:$0xff]  ;;  %v135_v15 = vpack.c.bf16 %v119_v12, %v118_v11  ;;  %v122_v17 = vld [vmem:[#allocation2 + $0x50] sm:$0xff]  ;;  %v123_v18 = vld [vmem:[#allocation2 + $0x58] sm:$0xff]  ;;  %v3197_v28 = vsub.s32 0, %v3194_v27  ;;  %vm1209_vm9 = vcmask 523264  }
  0x72   :  { %v136_v16 = vpack.c.bf16 %v121_v14, %v120_v13  ;;  %v124_v19 = vld [vmem:[#allocation2 + $0x60] sm:$0xff]  ;;  %v125_v20 = vld [vmem:[#allocation2 + $0x68] sm:$0xff]  ;;  %v137_v21 = vpack.c.bf16 %v123_v18, %v122_v17  ;;  %v126_v23 = vld [vmem:[#allocation2 + $0x70] sm:$0xff] }
  0x73   :  { %2666 = vmatpush3.bf16.msra.mxu0 %v2768_v1  ;;  %v138_v22 = vpack.c.bf16 %v125_v20, %v124_v19  ;;  %v127_v24 = vld [vmem:[#allocation2 + $0x78] sm:$0xff]  ;;  %v3202_v29 = vld [vmem:[%s4496_s6] sm:$0xff] }
  0x74   :  { %v139_v25 = vpack.c.bf16 %v127_v24, %v126_v23  ;;  %v3206_v30 = vrot.slane %v3202_v29, %v3197_v28 }
  0x76   :  { %2668 = vmatmul.mubr.msk.bf16.vlgmr.msra.gmra.mrb[0].mxu0 %vm152_vm0, %v133_v9 }
  0x77   :  { %2671 = vmatprep.mubr.msk.bf16.mxu0 %vm152_vm0, %v134_v10 }
  0x7e   :  { %2672 = vmatmul.mubr.msk.bf16.gmra.mrb[4].mxu0 %vm152_vm0, %v135_v15 }
  0x7f   :  { %2675 = vmatprep.mubr.msk.bf16.mxu0 %vm152_vm0, %v136_v16 }
  0x86   :  { %2676 = vmatmul.mubr.msk.bf16.gmra.mrb[8].mxu0 %vm152_vm0, %v137_v21 }
  0x87   :  { %2679 = vmatprep.mubr.msk.bf16.mxu0 %vm152_vm0, %v138_v22 }
  0x8e   :  { %2680 = vmatmul.mubr.msk.bf16.gmra.mrb[12].mxu0 %vm152_vm0, %v139_v25 }
 0x149   :  { %v2669_v31 = vpop.f32.mrb[0].mxu0 }
 0x14a   :  { %v3209_v32 = vadd.f32 %v2669_v31, %v3206_v30  ;;  %v211_v33 = vpop.f32.mrb[1].mxu0 }
 0x14b   :  { %v2670_v34 = vpop.f32.mrb[2].mxu0  ;;  %v3212_v35 = vadd.f32 %v3206_v30, %v211_v33 }
 0x14c   :  { %v214_v36 = vpop.f32.mrb[3].mxu0  ;;  %v300_v37 = vsel %vm152_vm0, %v3209_v32, 0.0  ;;  %v3222_v40 = vadd.f32 %v2670_v34, %v3206_v30  ;;  %v360_v48 = vmul.f32 %v3209_v32, %v3209_v32 }
 0x14d   :  { %v3217_v38 = vadd.f32 %v3206_v30, %v214_v36  ;;  %301 = vadd.xlane.f32.xlu0 %v300_v37  ;;  %v294_v41 = vsel %vm152_vm0, %v3212_v35, 0.0  ;;  %v358_v58 = vmul.f32 %v3212_v35, %v3212_v35 }
 0x14e   :  { %v303_v47 = vsel %vm152_vm0, %v3222_v40, 0.0  ;;  %v380_v49 = vsel %vm152_vm0, %v360_v48, 0.0  ;;  %v361_v62 = vmul.f32 %v3222_v40, %v3222_v40 }
 0x14f   :  { %v359_v39 = vmul.f32 %v3217_v38, %v3217_v38  ;;  %v297_v57 = vsel %vm152_vm0, %v3217_v38, 0.0  ;;  %v374_v61 = vsel %vm152_vm0, %v358_v58, 0.0  ;;  %v2771_v58 = vld [vmem:[#allocation7] sm:$0xff]  }
 0x150   :  { %v383_v4 = vsel %vm152_vm0, %v361_v62, 0.0 }
 0x151   :  { %v2673_v42 = vpop.f32.mrb[4].mxu0  ;;  %295 = vadd.xlane.f32.xlu0 %v294_v41  ;;  %v377_v43 = vsel %vm152_vm0, %v359_v39, 0.0 }
 0x152   :  { %v227_v44 = vpop.f32.mrb[5].mxu0  ;;  %378 = vadd.xlane.f32.xlu1 %v377_v43  ;;  %v3253_v2 = vadd.f32 %v2673_v42, %v3206_v30 }
 0x153   :  { %v2674_v45 = vpop.f32.mrb[6].mxu0  ;;  %v3261_v7 = vadd.f32 %v3206_v30, %v227_v44 }
 0x154   :  { %v230_v46 = vpop.f32.mrb[7].mxu0  ;;  %v312_v10 = vsel %vm152_vm0, %v3253_v2, 0.0  ;;  %v3270_v11 = vadd.f32 %v2674_v45, %v3206_v30  ;;  %v364_v42 = vmul.f32 %v3253_v2, %v3253_v2 }
 0x155   :  { %304 = vadd.xlane.f32.xlu0 %v303_v47  ;;  %v306_v13 = vsel %vm152_vm0, %v3261_v7, 0.0  ;;  %v3279_v15 = vadd.f32 %v3206_v30, %v230_v46  ;;  %v362_v22 = vmul.f32 %v3261_v7, %v3261_v7  ;;  %v3324_v47 = vld [vmem:[#allocation8] sm:$0xff]  }
 0x156   :  { %v315_v17 = vsel %vm152_vm0, %v3270_v11, 0.0  ;;  %v392_v45 = vsel %vm152_vm0, %v364_v42, 0.0  ;;  %v365_v46 = vmul.f32 %v3270_v11, %v3270_v11  ;;  %2691 = vmatprep.subr.bf16.mxu0 %v3324_v47 }
 0x157   :  { %v309_v21 = vsel %vm152_vm0, %v3279_v15, 0.0  ;;  %v386_v25 = vsel %vm152_vm0, %v362_v22, 0.0  ;;  %v363_v26 = vmul.f32 %v3279_v15, %v3279_v15  ;;  %2692 = vmatpush3.bf16.msra.mxu0 %v3324_v47 }
 0x159   :  { %v2677_v50 = vpop.f32.mrb[8].mxu0  ;;  %381 = vadd.xlane.f32.xlu0 %v380_v49  ;;  %v389_v34 = vsel %vm152_vm0, %v363_v26, 0.0  ;;  %v395_v49 = vsel %vm152_vm0, %v365_v46, 0.0 }
 0x15a   :  { %v3233_v51 = vadd.f32 %v2677_v50, %v3206_v30  ;;  %v243_v52 = vpop.f32.mrb[9].mxu0  ;;  %v3333_v50 = vld [vmem:[#allocation8 + $0x8] sm:$0xff]  }
 0x15b   :  { %v2678_v53 = vpop.f32.mrb[10].mxu0  ;;  %v3236_v54 = vadd.f32 %v3206_v30, %v243_v52  ;;  %2693 = vmatprep.subr.bf16.mxu0 %v3333_v50 }
 0x15c   :  { %v246_v55 = vpop.f32.mrb[11].mxu0  ;;  %v324_v56 = vsel %vm152_vm0, %v3233_v51, 0.0  ;;  %v3245_v59 = vadd.f32 %v2678_v53, %v3206_v30  ;;  %v368_v5 = vmul.f32 %v3233_v51, %v3233_v51  ;;  %2694 = vmatpush3.bf16.msra.mxu0 %v3333_v50 }
 0x15d   :  { %325 = vadd.xlane.f32.xlu1 %v324_v56  ;;  %298 = vadd.xlane.f32.xlu0 %v297_v57  ;;  %v318_v60 = vsel %vm152_vm0, %v3236_v54, 0.0  ;;  %v3264_v8 = vadd.f32 %v3206_v30, %v246_v55  ;;  %v366_v36 = vmul.f32 %v3236_v54, %v3236_v54 }
 0x15e   :  { %v327_v3 = vsel %vm152_vm0, %v3245_v59, 0.0  ;;  %v404_v9 = vsel %vm152_vm0, %v368_v5, 0.0  ;;  %v369_v14 = vmul.f32 %v3245_v59, %v3245_v59 }
 0x15f   :  { %v321_v12 = vsel %vm152_vm0, %v3264_v8, 0.0  ;;  %v367_v18 = vmul.f32 %v3264_v8, %v3264_v8  ;;  %v398_v39 = vsel %vm152_vm0, %v366_v36, 0.0 }
 0x160   :  { %v407_v16 = vsel %vm152_vm0, %v369_v14, 0.0 }
 0x161   :  { %319 = vadd.xlane.f32.xlu1 %v318_v60  ;;  %375 = vadd.xlane.f32.xlu0 %v374_v61  ;;  %v2681_v63 = vpop.f32.mrb[12].mxu0  ;;  %v401_v20 = vsel %vm152_vm0, %v367_v18, 0.0  ;;  %v4500_v60 = vmov 0.0   ;;  %v2772_v61 = vld [vmem:[#allocation7 + $0x8] sm:$0xff]  }
 0x162   :  { %v259_v0 = vpop.f32.mrb[13].mxu0  ;;  %v3287_v19 = vadd.f32 %v2681_v63, %v3206_v30  ;;  %2683 = vmatprep.subr.bf16.mxu1 %v4500_v60  ;;  %2687 = vmatprep.mubr.msk.bf16.mxu1 %vm3054_vm1, %v4500_v60 }
 0x163   :  { %v2682_v1 = vpop.f32.mrb[14].mxu0  ;;  %v3297_v24 = vadd.f32 %v3206_v30, %v259_v0  ;;  %2684 = vmatpush3.bf16.msra.mxu1 %v2771_v58  ;;  %2711 = vmatprep.subr.bf16.mxu0 %v4500_v60 }
 0x164   :  { %v262_v6 = vpop.f32.mrb[15].mxu0  ;;  %v336_v23 = vsel %vm152_vm0, %v3287_v19, 0.0  ;;  %v3303_v31 = vadd.f32 %v2682_v1, %v3206_v30  ;;  %v372_v41 = vmul.f32 %v3287_v19, %v3287_v19  ;;  %2685 = vmatprep.subr.bf16.mxu1 %v4500_v60 }
 0x165   :  { %328 = vadd.xlane.f32.xlu1 %v327_v3  ;;  %384 = vadd.xlane.f32.xlu0 %v383_v4  ;;  %v330_v33 = vsel %vm152_vm0, %v3297_v24, 0.0  ;;  %v3318_v43 = vadd.f32 %v3206_v30, %v262_v6  ;;  %v370_v30 = vmul.f32 %v3297_v24, %v3297_v24 }
 0x166   :  { %v339_v37 = vsel %vm152_vm0, %v3303_v31, 0.0  ;;  %v416_v44 = vsel %vm152_vm0, %v372_v41, 0.0  ;;  %v373_v56 = vmul.f32 %v3303_v31, %v3303_v31 }
 0x167   :  { %v333_v48 = vsel %vm152_vm0, %v3318_v43, 0.0  ;;  %v410_v52 = vsel %vm152_vm0, %v370_v30, 0.0  ;;  %v371_v53 = vmul.f32 %v3318_v43, %v3318_v43  ;;  %2686 = vmatpush3.bf16.msra.mxu1 %v2772_v61 }
 0x168   :  { %v419_v57 = vsel %vm152_vm0, %v373_v56, 0.0  ;;  %2747 = vmatprep.subr.bf16.mxu1 %v3324_v47 }
 0x169   :  { %405 = vadd.xlane.f32.xlu1 %v404_v9  ;;  %313 = vadd.xlane.f32.xlu0 %v312_v10  ;;  %v413_v55 = vsel %vm152_vm0, %v371_v53, 0.0 }
 0x16d   :  { %322 = vadd.xlane.f32.xlu1 %v321_v12  ;;  %307 = vadd.xlane.f32.xlu0 %v306_v13 }
 0x171   :  { %408 = vadd.xlane.f32.xlu1 %v407_v16  ;;  %316 = vadd.xlane.f32.xlu0 %v315_v17 }
 0x175   :  { %402 = vadd.xlane.f32.xlu1 %v401_v20  ;;  %310 = vadd.xlane.f32.xlu0 %v309_v21 }
 0x179   :  { %337 = vadd.xlane.f32.xlu1 %v336_v23  ;;  %387 = vadd.xlane.f32.xlu0 %v386_v25 }
 0x17d   :  { %331 = vadd.xlane.f32.xlu1 %v330_v33  ;;  %390 = vadd.xlane.f32.xlu0 %v389_v34 }
 0x181   :  { %340 = vadd.xlane.f32.xlu1 %v339_v37  ;;  %399 = vadd.xlane.f32.xlu0 %v398_v39 }
 0x185   :  { %417 = vadd.xlane.f32.xlu1 %v416_v44  ;;  %393 = vadd.xlane.f32.xlu0 %v392_v45 }
 0x189   :  { %334 = vadd.xlane.f32.xlu1 %v333_v48  ;;  %396 = vadd.xlane.f32.xlu0 %v395_v49  ;;  %v552_v49 = vsub.s32 1, %v3194_v27 }
 0x18d   :  { %411 = vadd.xlane.f32.xlu1 %v410_v52 }
 0x191   :  { %414 = vadd.xlane.f32.xlu1 %v413_v55 }
 0x195   :  { %420 = vadd.xlane.f32.xlu1 %v419_v57 }
 0x1da   :  { %v302_v62 = vpop.xlane.xlu0 %301 }
 0x1db   :  { %v344_v1 = vmul.f32 0.03125, %v302_v62 }
 0x1dd   :  { %v440_v5 = vmul.f32 %v344_v1, %v344_v1  ;;  %v488_v57 = vsub.f32 %v3209_v32, %v344_v1 }
 0x1de   :  { %v296_v63 = vpop.xlane.xlu0 %295 }
 0x1df   :  { %v379_v3 = vpop.xlane.xlu1 %378  ;;  %v3350_v13 = vmul.f32 0.03125, %v296_v63  ;;  %v3365_v63 = vrot.slane %v3202_v29, %v552_v49 }
 0x1e0   :  { %v423_v17 = vmul.f32 0.03125, %v379_v3 }
 0x1e1   :  { %v438_v23 = vmul.f32 %v3350_v13, %v3350_v13 }
 0x1e2   :  { %v305_v0 = vpop.xlane.xlu0 %304 }
 0x1e3   :  { %v3354_v33 = vmul.f32 0.03125, %v305_v0  ;;  %v572_v0 = vsub.s32 2, %v3194_v27 }
 0x1e5   :  { %v441_v46 = vmul.f32 %v3354_v33, %v3354_v33 }
 0x1e6   :  { %v382_v4 = vpop.xlane.xlu0 %381 }
 0x1e7   :  { %v424_v6 = vmul.f32 0.03125, %v382_v4 }
 0x1e9   :  { %v456_v9 = vsub.f32 %v424_v6, %v440_v5 }
 0x1ea   :  { %v326_v10 = vpop.xlane.xlu1 %325  ;;  %v299_v12 = vpop.xlane.xlu0 %298 }
 0x1eb   :  { %v472_v14 = vmax.f32 %v456_v9, 0.0  ;;  %v343_v16 = vmul.f32 0.03125, %v299_v12  ;;  %v3356_v41 = vmul.f32 0.03125, %v326_v10 }
 0x1ed   :  { %v504_v18 = vadd.f32 1e-05, %v472_v14  ;;  %v439_v20 = vmul.f32 %v343_v16, %v343_v16  ;;  %v448_v55 = vmul.f32 %v3356_v41, %v3356_v41  ;;  %v3371_v14 = vrot.slane %v3202_v29, %v572_v0 }
 0x1ee   :  { %v320_v21 = vpop.xlane.xlu1 %319  ;;  %v376_v22 = vpop.xlane.xlu0 %375  ;;  %v487_v1 = vsub.f32 %v3217_v38, %v343_v16  ;;  %v489_v38 = vsub.f32 %v3222_v40, %v3354_v33 }
 0x1ef   :  { %2781 = vrsqrt.f32 %v504_v18  ;;  %v455_v25 = vsub.f32 %v423_v17, %v439_v20  ;;  %v422_v26 = vmul.f32 0.03125, %v376_v22 }
 0x1f1   :  { %v471_v34 = vmax.f32 %v455_v25, 0.0  ;;  %v454_v36 = vsub.f32 %v422_v26, %v438_v23  ;;  %v486_v26 = vsub.f32 %v3212_v35, %v3350_v13 }
 0x1f2   :  { %v329_v37 = vpop.xlane.xlu1 %328  ;;  %v385_v39 = vpop.xlane.xlu0 %384 }
 0x1f3   :  { %v503_v42 = vadd.f32 1e-05, %v471_v34  ;;  %v470_v44 = vmax.f32 %v454_v36, 0.0  ;;  %v425_v45 = vmul.f32 0.03125, %v385_v39  ;;  %v3368_v9 = vmul.f32 0.03125, %v329_v37 }
 0x1f4   :  { %v3383_v34 = vmul.f32 0.03125, %v320_v21 }
 0x1f5   :  { %2783 = vrsqrt.f32 %v503_v42  ;;  %v502_v48 = vadd.f32 1e-05, %v470_v44  ;;  %v457_v30 = vsub.f32 %v425_v45, %v441_v46  ;;  %v449_v22 = vmul.f32 %v3368_v9, %v3368_v9 }
 0x1f6   :  { %v406_v52 = vpop.xlane.xlu1 %405  ;;  %v314_v53 = vpop.xlane.xlu0 %313  ;;  %v496_v46 = vsub.f32 %v3233_v51, %v3356_v41  ;;  %v3398_v40 = vmul.f32 %v3383_v34, %v3383_v34 }
 0x1f7   :  { %2785 = vrsqrt.f32 %v502_v48  ;;  %v432_v56 = vmul.f32 0.03125, %v406_v52  ;;  %v473_v58 = vmax.f32 %v457_v30, 0.0  ;;  %v494_v30 = vsub.f32 %v3236_v54, %v3383_v34 }
 0x1f8   :  { %v3405_v52 = vmul.f32 0.03125, %v314_v53 }
 0x1f9   :  { %v2782_v61 = vpop.eup %2781  ;;  %v464_v62 = vsub.f32 %v432_v56, %v448_v55  ;;  %v505_v4 = vadd.f32 1e-05, %v473_v58 }
 0x1fa   :  { %v536_v3 = vmul.f32 %v2782_v61, %v488_v57  ;;  %v323_v5 = vpop.xlane.xlu1 %322  ;;  %v308_v6 = vpop.xlane.xlu0 %307  ;;  %v497_v57 = vsub.f32 %v3245_v59, %v3368_v9 }
 0x1fb   :  { %v480_v10 = vmax.f32 %v464_v62, 0.0  ;;  %2787 = vrsqrt.f32 %v505_v4  ;;  %v3379_v23 = vmul.f32 0.03125, %v323_v5  ;;  %v3400_v33 = vmul.f32 0.03125, %v308_v6 }
 0x1fc   :  { %v556_v32 = vmul.f32 %v3365_v63, %v536_v3 }
 0x1fd   :  { %v512_v12 = vadd.f32 1e-05, %v480_v10  ;;  %v447_v35 = vmul.f32 %v3379_v23, %v3379_v23  ;;  %v442_v6 = vmul.f32 %v3400_v33, %v3400_v33 }
 0x1fe   :  { %v409_v17 = vpop.xlane.xlu1 %408  ;;  %v3375_v18 = vpop.xlane.xlu0 %316  ;;  %v3388_v16 = vadd.f32 %v3371_v14, %v556_v32 }
 0x1ff   :  { %v2784_v20 = vpop.eup %2783  ;;  %2789 = vrsqrt.f32 %v512_v12  ;;  %v433_v25 = vmul.f32 0.03125, %v409_v17 }
 0x200   :  { %v535_v29 = vmul.f32 %v2784_v20, %v487_v1  ;;  %v592_v0 = vmax.f32 %v3388_v16, 0.0  ;;  %v3419_v1 = vmul.f32 %v3405_v52, %v3405_v52 }
 0x201   :  { %v2786_v36 = vpop.eup %2785  ;;  %v465_v37 = vsub.f32 %v433_v25, %v449_v22 }
 0x202   :  { %v555_v39 = vmul.f32 %v3365_v63, %v535_v29  ;;  %v403_v42 = vpop.xlane.xlu1 %402  ;;  %v311_v44 = vpop.xlane.xlu0 %310  ;;  %v534_v45 = vmul.f32 %v2786_v36, %v486_v26  ;;  %v620_v36 = vsel %vm152_vm0, %v592_v0, -inf }
 0x203   :  { %v481_v13 = vmax.f32 %v465_v37, 0.0  ;;  %v431_v21 = vmul.f32 0.03125, %v403_v42  ;;  %v3411_v5 = vmul.f32 0.03125, %v311_v44 }
 0x204   :  { %v575_v48 = vadd.f32 %v3371_v14, %v555_v39  ;;  %v554_v49 = vmul.f32 %v3365_v63, %v534_v45 }
 0x205   :  { %v513_v51 = vadd.f32 1e-05, %v481_v13  ;;  %v463_v41 = vsub.f32 %v431_v21, %v447_v35  ;;  %v2788_v55 = vpop.eup %2787  ;;  %v443_v39 = vmul.f32 %v3411_v5, %v3411_v5  ;;  %v3430_v13 = vmul.f32 0.03125, %v3375_v18 }
 0x206   :  { %v591_v56 = vmax.f32 %v575_v48, 0.0  ;;  %v338_v58 = vpop.xlane.xlu1 %337  ;;  %v388_v61 = vpop.xlane.xlu0 %387  ;;  %v574_v62 = vadd.f32 %v3371_v14, %v554_v49  ;;  %v537_v3 = vmul.f32 %v2788_v55, %v489_v38  ;;  %v621_v48 = vrot.slane %v620_v36, 4 }
 0x207   :  { %2791 = vrsqrt.f32 %v513_v51  ;;  %v479_v4 = vmax.f32 %v463_v41, 0.0  ;;  %v426_v10 = vmul.f32 0.03125, %v388_v61 }
 0x208   :  { %v613_v53 = vsel %vm152_vm0, %v591_v56, -inf  ;;  %v590_v12 = vmax.f32 %v574_v62, 0.0  ;;  %v557_v9 = vmul.f32 %v3365_v63, %v537_v3 }
 0x209   :  { %v2790_v32 = vpop.eup %2789  ;;  %v614_v59 = vrot.slane %v613_v53, 4  ;;  %v511_v17 = vadd.f32 1e-05, %v479_v4  ;;  %v458_v22 = vsub.f32 %v426_v10, %v442_v6  ;;  %v492_v4 = vsub.f32 %v3253_v2, %v3405_v52 }
 0x20a   :  { %v544_v20 = vmul.f32 %v2790_v32, %v496_v46  ;;  %v332_v25 = vpop.xlane.xlu1 %331  ;;  %v391_v26 = vpop.xlane.xlu0 %390  ;;  %v606_v29 = vsel %vm152_vm0, %v590_v12, -inf  ;;  %v577_v38 = vadd.f32 %v3371_v14, %v557_v9  ;;  %v852_v21 = vpack.c.bf16 %v591_v56, %v590_v12 }
 0x20b   :  { %v615_v37 = vmax.f32 %v613_v53, %v614_v59  ;;  %2793 = vrsqrt.f32 %v511_v17  ;;  %v474_v44 = vmax.f32 %v458_v22, 0.0  ;;  %v427_v45 = vmul.f32 0.03125, %v391_v26 }
 0x20c   :  { %v564_v42 = vmul.f32 %v3365_v63, %v544_v20  ;;  %v607_v46 = vrot.slane %v606_v29, 4  ;;  %v495_v53 = vsub.f32 %v3264_v8, %v3379_v23  ;;  %2695 = vmatprep.mubr.msk.bf16.mxu0 %vm152_vm0, %v852_v21  ;;  %v593_v12 = vmax.f32 %v577_v38, 0.0 }
 0x20d   :  { %v616_v35 = vrot.slane %v615_v37, 2  ;;  %v506_v51 = vadd.f32 1e-05, %v474_v44  ;;  %v459_v41 = vsub.f32 %v427_v45, %v443_v39  ;;  %v490_v59 = vsub.f32 %v3261_v7, %v3400_v33 }
 0x20e   :  { %v3433_v49 = vadd.f32 %v3371_v14, %v564_v42  ;;  %v608_v55 = vmax.f32 %v606_v29, %v607_v46  ;;  %v341_v61 = vpop.xlane.xlu1 %340  ;;  %v400_v62 = vpop.xlane.xlu0 %399  ;;  %v3445_v9 = vmul.f32 %v3430_v13, %v3430_v13  ;;  %v622_v22 = vmax.f32 %v620_v36, %v621_v48 }
 0x20f   :  { %v617_v3 = vmax.f32 %v615_v37, %v616_v35  ;;  %v430_v18 = vmul.f32 0.03125, %v400_v62  ;;  %v475_v6 = vmax.f32 %v459_v41, 0.0  ;;  %2795 = vrsqrt.f32 %v506_v51 }
 0x210   :  { %v4498_v56 = vmax.f32 %v3433_v49, 0.0  ;;  %v609_v10 = vrot.slane %v608_v55, 2  ;;  %v3451_v37 = vmul.f32 0.03125, %v338_v58  ;;  %v627_v45 = vsel %vm152_vm0, %v593_v12, -inf }
 0x211   :  { %v2792_v32 = vpop.eup %2791  ;;  %v462_v17 = vsub.f32 %v430_v18, %v3398_v40  ;;  %v507_v20 = vadd.f32 1e-05, %v475_v6  ;;  %v618_v29 = vrot.slane %v617_v3, 1  ;;  %v493_v35 = vsub.f32 %v3270_v11, %v3430_v13 }
 0x212   :  { %v676_v8 = vsel %vm152_vm0, %v4498_v56, -inf  ;;  %v545_v23 = vmul.f32 %v2792_v32, %v497_v57  ;;  %v418_v26 = vpop.xlane.xlu1 %417  ;;  %v610_v38 = vmax.f32 %v608_v55, %v609_v10  ;;  %v394_v40 = vpop.xlane.xlu0 %393  ;;  %v491_v57 = vsub.f32 %v3279_v15, %v3411_v5 }
 0x213   :  { %v478_v39 = vmax.f32 %v462_v17, 0.0  ;;  %v677_v42 = vrot.slane %v676_v8, 4  ;;  %2797 = vrsqrt.f32 %v507_v20  ;;  %v3459_v36 = vmul.f32 0.03125, %v332_v25 }
 0x214   :  { %v565_v44 = vmul.f32 %v3365_v63, %v545_v23  ;;  %v3464_v51 = vmul.f32 0.03125, %v341_v61  ;;  %v623_v41 = vrot.slane %v622_v22, 2  ;;  %v452_v62 = vmul.f32 %v3451_v37, %v3451_v37 }
 0x215   :  { %v2794_v46 = vpop.eup %2793  ;;  %v510_v58 = vadd.f32 1e-05, %v478_v39  ;;  %v628_v18 = vrot.slane %v627_v45, 4  ;;  %v853_v6 = vpack.c.bf16 %v593_v12, %v592_v0  ;;  %v3470_v15 = vmax.f32 %v617_v3, %v618_v29 }
 0x216   :  { %v3462_v21 = vadd.f32 %v3371_v14, %v565_v44  ;;  %v543_v48 = vmul.f32 %v2794_v46, %v495_v53  ;;  %v335_v55 = vpop.xlane.xlu1 %334  ;;  %v3472_v5 = vmax.f32 %v676_v8, %v677_v42  ;;  %v611_v10 = vrot.slane %v610_v38, 1  ;;  %v397_v8 = vpop.xlane.xlu0 %396 }
 0x217   :  { %2799 = vrsqrt.f32 %v510_v58  ;;  %v500_v61 = vsub.f32 %v3287_v19, %v3451_v37  ;;  %v450_v53 = vmul.f32 %v3459_v36, %v3459_v36  ;;  %2696 = vmatmul.mubr.msk.bf16.vlgmr.msra.gmra.mrb[16].mxu0 %vm152_vm0, %v853_v6  ;;  %v436_v32 = vmul.f32 0.03125, %v418_v26 }
 0x218   :  { %v563_v25 = vmul.f32 %v3365_v63, %v543_v48  ;;  %v428_v17 = vmul.f32 0.03125, %v394_v40  ;;  %v4499_v16 = vmax.f32 %v3462_v21, 0.0  ;;  %v498_v3 = vsub.f32 %v3297_v24, %v3459_v36 }
 0x219   :  { %v453_v12 = vmul.f32 %v3464_v51, %v3464_v51  ;;  %v2796_v20 = vpop.eup %2795  ;;  %v3488_v29 = vmax.f32 %v622_v22, %v623_v41  ;;  %v629_v39 = vmax.f32 %v627_v45, %v628_v18  ;;  %v468_v42 = vsub.f32 %v436_v32, %v452_v62 }
 0x21a   :  { %v3482_v0 = vadd.f32 %v3371_v14, %v563_v25  ;;  %v412_v23 = vpop.xlane.xlu1 %411  ;;  %v460_v26 = vsub.f32 %v428_v17, %v3419_v1  ;;  %v723_v44 = vpack.c.bf16 %v3470_v15, %v3470_v15  ;;  %v679_v40 = vrot.slane %v3472_v5, 2 }
 0x21b   :  { %v3495_v58 = vmax.f32 %v610_v38, %v611_v10  ;;  %v484_v48 = vmax.f32 %v468_v42, 0.0  ;;  %v3497_v25 = vmul.f32 0.03125, %v335_v55  ;;  %v429_v56 = vmul.f32 0.03125, %v397_v8 }
 0x21c   :  { %v4502_v46 = vmax.f32 %v3482_v0, 0.0  ;;  %v476_v6 = vmax.f32 %v460_v26, 0.0  ;;  %v683_v45 = vsel %vm152_vm0, %v4499_v16, -inf  ;;  %v434_v41 = vmul.f32 0.03125, %v412_v23 }
 0x21d   :  { %v2798_v22 = vpop.eup %2797  ;;  %v538_v38 = vmul.f32 %v2796_v20, %v490_v59  ;;  %v630_v10 = vrot.slane %v629_v39, 2  ;;  %v516_v55 = vadd.f32 1e-05, %v484_v48  ;;  %v461_v17 = vsub.f32 %v429_v56, %v3445_v9 }
 0x21e   :  { %v669_v1 = vsel %vm152_vm0, %v4502_v46, -inf  ;;  %v415_v62 = vpop.xlane.xlu1 %414  ;;  %v508_v32 = vadd.f32 1e-05, %v476_v6  ;;  %v466_v8 = vsub.f32 %v434_v41, %v450_v53  ;;  %v539_v26 = vmul.f32 %v2798_v22, %v491_v57 }
 0x21f   :  { %v670_v18 = vrot.slane %v669_v1, 4  ;;  %v435_v42 = vmul.f32 0.03125, %v415_v62  ;;  %2801 = vrsqrt.f32 %v516_v55  ;;  %v451_v23 = vmul.f32 %v3497_v25, %v3497_v25 }
 0x220   :  { %v558_v46 = vmul.f32 %v3365_v63, %v538_v38  ;;  %2803 = vrsqrt.f32 %v508_v32  ;;  %v477_v33 = vmax.f32 %v461_v17, 0.0  ;;  %v482_v59 = vmax.f32 %v466_v8, 0.0 }
 0x221   :  { %v2800_v16 = vpop.eup %2799  ;;  %v671_v60 = vmax.f32 %v669_v1, %v670_v18  ;;  %v684_v56 = vrot.slane %v683_v45, 4  ;;  %v467_v9 = vsub.f32 %v435_v42, %v451_v23  ;;  %v559_v57 = vmul.f32 %v3365_v63, %v539_v26 }
 0x222   :  { %v542_v7 = vmul.f32 %v2800_v16, %v494_v30  ;;  %v421_v20 = vpop.xlane.xlu1 %420  ;;  %v509_v6 = vadd.f32 1e-05, %v477_v33  ;;  %v514_v22 = vadd.f32 1e-05, %v482_v59  ;;  %v578_v1 = vadd.f32 %v3371_v14, %v558_v46 }
 0x223   :  { %v437_v53 = vmul.f32 0.03125, %v421_v20  ;;  %v672_v41 = vrot.slane %v671_v60, 2  ;;  %v483_v62 = vmax.f32 %v467_v9, 0.0  ;;  %v579_v54 = vadd.f32 %v3371_v14, %v559_v57 }
 0x224   :  { %v562_v48 = vmul.f32 %v3365_v63, %v542_v7  ;;  %v722_v34 = vpack.c.bf16 %v3495_v58, %v3495_v58  ;;  %2805 = vrsqrt.f32 %v509_v6  ;;  %v594_v16 = vmax.f32 %v578_v1, 0.0 }
 0x225   :  { %v469_v38 = vsub.f32 %v437_v53, %v453_v12  ;;  %v685_v18 = vmax.f32 %v683_v45, %v684_v56  ;;  %2807 = vrsqrt.f32 %v514_v22  ;;  %v515_v55 = vadd.f32 1e-05, %v483_v62 }
 0x226   :  { %v3522_v30 = vadd.f32 %v3371_v14, %v562_v48  ;;  %v631_v46 = vmax.f32 %v629_v39, %v630_v10  ;;  %v595_v8 = vmax.f32 %v579_v54, 0.0  ;;  %v634_v12 = vsel %vm152_vm0, %v594_v16, -inf }
 0x227   :  { %v485_v32 = vmax.f32 %v469_v38, 0.0  ;;  %v673_v42 = vmax.f32 %v671_v60, %v672_v41  ;;  %2809 = vrsqrt.f32 %v515_v55  ;;  %v635_v23 = vrot.slane %v634_v12, 4 }
 0x228   :  { %v598_v17 = vmax.f32 %v3522_v30, 0.0  ;;  %v680_v58 = vmax.f32 %v3472_v5, %v679_v40  ;;  %v641_v45 = vsel %vm152_vm0, %v595_v8, -inf  ;;  %v854_v33 = vpack.c.bf16 %v595_v8, %v594_v16 }
 0x229   :  { %v517_v26 = vadd.f32 1e-05, %v485_v32  ;;  %v2802_v59 = vpop.eup %2801  ;;  %v686_v20 = vrot.slane %v685_v18, 2  ;;  %v636_v39 = vmax.f32 %v634_v12, %v635_v23  ;;  %v501_v60 = vsub.f32 %v3303_v31, %v3464_v51 }
 0x22a   :  { %v662_v7 = vsel %vm152_vm0, %v598_v17, -inf  ;;  %v2804_v10 = vpop.eup %2803  ;;  %v625_v9 = vrot.slane %v3488_v29, 1  ;;  %v548_v5 = vmul.f32 %v2802_v59, %v500_v61  ;;  %2699 = vmatprep.mubr.msk.bf16.mxu0 %vm152_vm0, %v854_v33  ;;  %v632_v40 = vrot.slane %v631_v46, 1 }
 0x22b   :  { %v663_v56 = vrot.slane %v662_v7, 4  ;;  %2811 = vrsqrt.f32 %v517_v26  ;;  %v674_v53 = vrot.slane %v673_v42, 1  ;;  %v642_v48 = vrot.slane %v641_v45, 4 }
 0x22c   :  { %v540_v6 = vmul.f32 %v2804_v10, %v492_v4  ;;  %v3544_v31 = vunpack.c.l.b16 %v723_v44  ;;  %v681_v51 = vrot.slane %v680_v58, 1  ;;  %v3546_v22 = vunpack.c.l.b16 %v722_v34 }
 0x22d   :  { %v664_v57 = vmax.f32 %v662_v7, %v663_v56  ;;  %v568_v19 = vmul.f32 %v3365_v63, %v548_v5  ;;  %v3549_v37 = vmax.f32 %v685_v18, %v686_v20  ;;  %v637_v1 = vrot.slane %v636_v39, 2 }
 0x22e   :  { %v560_v41 = vmul.f32 %v3365_v63, %v540_v6  ;;  %v2806_v62 = vpop.eup %2805  ;;  %v499_v52 = vsub.f32 %v3318_v43, %v3497_v25  ;;  %v3558_v4 = vmax.f32 %v3488_v29, %v625_v9  ;;  %v3560_v15 = vmax.f32 %v631_v46, %v632_v40 }
 0x22f   :  { %v665_v61 = vrot.slane %v664_v57, 2  ;;  %v3553_v2 = vadd.f32 %v3371_v14, %v568_v19  ;;  %v2808_v44 = vpop.eup %2807  ;;  %v3562_v38 = vmax.f32 %v673_v42, %v674_v53  ;;  %v643_v34 = vmax.f32 %v641_v45, %v642_v48 }
 0x230   :  { %v541_v16 = vmul.f32 %v2806_v62, %v493_v35  ;;  %v546_v43 = vmul.f32 %v2808_v44, %v498_v3  ;;  %v580_v29 = vadd.f32 %v3371_v14, %v560_v41  ;;  %v3572_v25 = vmax.f32 %v680_v58, %v681_v51 }
 0x231   :  { %v666_v54 = vmax.f32 %v664_v57, %v665_v61  ;;  %v604_v18 = vmax.f32 %v3553_v2, 0.0  ;;  %v2810_v55 = vpop.eup %2809  ;;  %v638_v46 = vmax.f32 %v636_v39, %v637_v1  ;;  %v688_v12 = vrot.slane %v3549_v37, 1 }
 0x232   :  { %v561_v8 = vmul.f32 %v3365_v63, %v541_v16  ;;  %v566_v11 = vmul.f32 %v3365_v63, %v546_v43  ;;  %v547_v13 = vmul.f32 %v2810_v55, %v499_v52  ;;  %v596_v35 = vmax.f32 %v580_v29, 0.0 }
 0x233   :  { %v667_v32 = vrot.slane %v666_v54, 1  ;;  %v724_v42 = vpack.c.bf16 %v3558_v4, %v3558_v4  ;;  %v644_v36 = vrot.slane %v643_v34, 2  ;;  %v704_v26 = vsel %vm152_vm0, %v604_v18, -inf }
 0x234   :  { %v581_v3 = vadd.f32 %v3371_v14, %v561_v8  ;;  %v725_v23 = vpack.c.bf16 %v3560_v15, %v3560_v15  ;;  %v3586_v58 = vadd.f32 %v3371_v14, %v566_v11  ;;  %v567_v7 = vmul.f32 %v3365_v63, %v547_v13 }
 0x235   :  { %v2812_v24 = vpop.eup %2811  ;;  %v648_v33 = vsel %vm152_vm0, %v596_v35, -inf  ;;  %v668_v59 = vmax.f32 %v666_v54, %v667_v32  ;;  %v639_v20 = vrot.slane %v638_v46, 1  ;;  %v705_v40 = vrot.slane %v704_v26, 4 }
 0x236   :  { %v549_v45 = vmul.f32 %v2812_v24, %v501_v60  ;;  %v597_v56 = vmax.f32 %v581_v3, 0.0  ;;  %v649_v39 = vrot.slane %v648_v33, 4  ;;  %v602_v10 = vmax.f32 %v3586_v58, 0.0 }
 0x237   :  { %v3592_v9 = vadd.f32 %v3371_v14, %v567_v7  ;;  %v645_v53 = vmax.f32 %v643_v34, %v644_v36  ;;  %v731_v62 = vpack.c.bf16 %v3562_v38, %v3562_v38  ;;  %v730_v34 = vpack.c.bf16 %v668_v59, %v668_v59 }
 0x238   :  { %v569_v5 = vmul.f32 %v3365_v63, %v549_v45  ;;  %v650_v57 = vmax.f32 %v648_v33, %v649_v39  ;;  %v655_v48 = vsel %vm152_vm0, %v597_v56, -inf  ;;  %v855_v6 = vpack.c.bf16 %v597_v56, %v596_v35 }
 0x239   :  { %v690_v60 = vsel %vm152_vm0, %v602_v10, -inf  ;;  %v603_v51 = vmax.f32 %v3592_v9, 0.0  ;;  %v656_v61 = vrot.slane %v655_v48, 4  ;;  %v706_v63 = vmax.f32 %v704_v26, %v705_v40 }
 0x23a   :  { %v3601_v19 = vadd.f32 %v3371_v14, %v569_v5  ;;  %v691_v1 = vrot.slane %v690_v60, 4  ;;  %v651_v41 = vrot.slane %v650_v57, 2  ;;  %2700 = vmatmul.mubr.msk.bf16.gmra.mrb[20].mxu0 %vm152_vm0, %v855_v6  ;;  %v4503_v14 = vmov 0.0  }
 0x23b   :  { %v697_v52 = vsel %vm152_vm0, %v603_v51, -inf  ;;  %v657_v54 = vmax.f32 %v655_v48, %v656_v61  ;;  %2719 = vmatprep.mubr.msk.bf16.mxu0 %vm3054_vm1, %v4503_v14  ;;  %v707_v55 = vrot.slane %v706_v63, 2  ;;  %v640_v32 = vmax.f32 %v638_v46, %v639_v20 }
 0x23c   :  { %v605_v44 = vmax.f32 %v3601_v19, 0.0  ;;  %v692_v16 = vmax.f32 %v690_v60, %v691_v1  ;;  %v698_v43 = vrot.slane %v697_v52, 4  ;;  %v652_v29 = vmax.f32 %v650_v57, %v651_v41 }
 0x23d   :  { %v646_v8 = vrot.slane %v645_v53, 1  ;;  %v658_v11 = vrot.slane %v657_v54, 2  ;;  %v708_v36 = vmax.f32 %v706_v63, %v707_v55  ;;  %v689_v26 = vmax.f32 %v3549_v37, %v688_v12 }
 0x23e   :  { %v711_v38 = vsel %vm152_vm0, %v605_v44, -inf  ;;  %v693_v13 = vrot.slane %v692_v16, 2  ;;  %v653_v35 = vrot.slane %v652_v29, 1  ;;  %v699_v24 = vmax.f32 %v697_v52, %v698_v43 }
 0x23f   :  { %v659_v3 = vmax.f32 %v657_v54, %v658_v11  ;;  %v712_v7 = vrot.slane %v711_v38, 4  ;;  %v732_v45 = vpack.c.bf16 %v3572_v25, %v3572_v25  ;;  %v709_v59 = vrot.slane %v708_v36, 1 }
 0x240   :  { %v694_v33 = vmax.f32 %v692_v16, %v693_v13  ;;  %v700_v46 = vrot.slane %v699_v24, 2  ;;  %v762_v20 = vunpack.c.l.b16 %v730_v34  ;;  %v647_v56 = vmax.f32 %v645_v53, %v646_v8 }
 0x241   :  { %v660_v39 = vrot.slane %v659_v3, 1  ;;  %v713_v5 = vmax.f32 %v711_v38, %v712_v7  ;;  %v763_v40 = vunpack.c.l.b16 %v731_v62  ;;  %v726_v57 = vpack.c.bf16 %v640_v32, %v640_v32 }
 0x242   :  { %v654_v48 = vmax.f32 %v652_v29, %v653_v35  ;;  %v695_v6 = vrot.slane %v694_v33, 1  ;;  %v701_v60 = vmax.f32 %v699_v24, %v700_v46  ;;  %v733_v12 = vpack.c.bf16 %v689_v26, %v689_v26 }
 0x243   :  { %v661_v61 = vmax.f32 %v659_v3, %v660_v39  ;;  %v714_v37 = vrot.slane %v713_v5, 2  ;;  %v756_v25 = vunpack.c.l.b16 %v724_v42  ;;  %v710_v63 = vmax.f32 %v708_v36, %v709_v59 }
 0x244   :  { %v696_v1 = vmax.f32 %v694_v33, %v695_v6  ;;  %v702_v41 = vrot.slane %v701_v60, 1  ;;  %v784_v53 = vsel %vm770_vm2, %v763_v40, %v762_v20  ;;  %v727_v52 = vpack.c.bf16 %v647_v56, %v647_v56 }
 0x245   :  { %v715_v54 = vmax.f32 %v713_v5, %v714_v37  ;;  %v757_v62 = vunpack.c.l.b16 %v725_v23  ;;  %v764_v34 = vunpack.c.l.b16 %v732_v45  ;;  %v758_v16 = vunpack.c.l.b16 %v726_v57 }
 0x246   :  { %v703_v43 = vmax.f32 %v701_v60, %v702_v41  ;;  %v728_v29 = vpack.c.bf16 %v654_v48, %v654_v48  ;;  %v734_v55 = vpack.c.bf16 %v696_v1, %v696_v1  ;;  %v729_v8 = vpack.c.bf16 %v661_v61, %v661_v61 }
 0x247   :  { %v716_v32 = vrot.slane %v715_v54, 1  ;;  %v771_v4 = vsel %vm770_vm2, %v3544_v31, %v3546_v22  ;;  %v785_v42 = vsel %vm772_vm3, %v764_v34, %v784_v53  ;;  %v736_v38 = vpack.c.bf16 %v710_v63, %v710_v63 }
 0x248   :  { %v735_v11 = vpack.c.bf16 %v703_v43, %v703_v43  ;;  %v765_v13 = vunpack.c.l.b16 %v733_v12  ;;  %v766_v35 = vunpack.c.l.b16 %v734_v55  ;;  %v759_v15 = vunpack.c.l.b16 %v727_v52 }
 0x249   :  { %v717_v24 = vmax.f32 %v715_v54, %v716_v32  ;;  %v760_v23 = vunpack.c.l.b16 %v728_v29  ;;  %v773_v3 = vsel %vm772_vm3, %v756_v25, %v771_v4  ;;  %v761_v45 = vunpack.c.l.b16 %v729_v8 }
 0x24a   :  { %v767_v36 = vunpack.c.l.b16 %v735_v11  ;;  %v786_v26 = vsel %vm774_vm4, %v765_v13, %v785_v42  ;;  %v775_v31 = vsel %vm774_vm4, %v757_v62, %v773_v3  ;;  %v768_v33 = vunpack.c.l.b16 %v736_v38  ;;  %v3693_v38 = vld [vmem:[%s4496_s6] sm:$0xff] }
 0x24b   :  { %v737_v7 = vpack.c.bf16 %v717_v24, %v717_v24  ;;  %v787_v22 = vsel %vm776_vm5, %v766_v35, %v786_v26  ;;  %v777_v46 = vsel %vm776_vm5, %v758_v16, %v775_v31  ;;  %v4504_v6 = vmax.f32 %v3482_v0, 0.0 }
 0x24c   :  { %v788_v59 = vsel %vm778_vm6, %v767_v36, %v787_v22  ;;  %v779_v56 = vsel %vm778_vm6, %v759_v15, %v777_v46  ;;  %v4505_v61 = vmax.f32 %v3433_v49, 0.0  ;;  %v4506_v37 = vmax.f32 %v3462_v21, 0.0 }
 0x24d   :  { %v769_v20 = vunpack.c.l.b16 %v737_v7  ;;  %v781_v39 = vsel %vm780_vm7, %v760_v23, %v779_v56  ;;  %v789_v5 = vsel %vm780_vm7, %v768_v33, %v788_v59  ;;  %v856_v60 = vpack.c.bf16 %v4504_v6, %v598_v17 }
 0x24e   :  { %v783_v40 = vsel %vm782_vm8, %v761_v45, %v781_v39  ;;  %v857_v12 = vpack.c.bf16 %v4506_v37, %v4505_v61  ;;  %v858_v0 = vpack.c.bf16 %v603_v51, %v602_v10  ;;  %v3055_v51 = vmov 1966171168  }
 0x24f   :  { %v790_v57 = vsel %vm782_vm8, %v769_v20, %v789_v5  ;;  %v997_v2 = vunpack.c.l.s4 %v3055_v51  ;;  %v1191_v34 = vsub.s32 3, %v3194_v27 }
 0x250   :  { %v791_v48 = vpack.c.b16 %v790_v57, %v783_v40 }
 0x251   :  { %v998_v25 = vunpack.c.0.s8 %v997_v2  ;;  %v3696_v13 = vrot.slane %v3693_v38, %v1191_v34 }
 0x252   :  { %2688 = vmatmul.mubr.msk.bf16.vlgmr.msra.gmra.mrb[0].mxu1 %vm152_vm0, %v791_v48 }
 0x253   :  { %2749 = vmatpush3.bf16.msra.mxu1 %v3324_v47  ;;  %2703 = vmatprep.mubr.msk.bf16.mxu1 %vm152_vm0, %v856_v60  ;;  %v859_v47 = vpack.c.bf16 %v605_v44, %v604_v18  ;;  %v3675_v18 = vsub.s32 %v998_v25, %v3194_v27 }
 0x254   :  { %2748 = vmatprep.subr.bf16.mxu1 %v3333_v50 }
 0x257   :  { %2750 = vmatpush3.bf16.msra.mxu1 %v3333_v50 }
 0x25a   :  { %2704 = vmatmul.mubr.msk.bf16.vlgmr.msra.gmra.mrb[4].mxu1 %vm152_vm0, %v857_v12 }
 0x25b   :  { %2707 = vmatprep.mubr.msk.bf16.mxu1 %vm152_vm0, %v858_v0 }
 0x262   :  { %2708 = vmatmul.mubr.msk.bf16.gmra.mrb[8].mxu1 %vm152_vm0, %v859_v47 }
 0x2ea   :  { %v2697_v50 = vpop.f32.mrb[16].mxu0 }
 0x2eb   :  { %v930_v49 = vpop.f32.mrb[17].mxu0 }
 0x2ec   :  { %v3664_v21 = vpop.f32.mrb[18].mxu0 }
 0x2ed   :  { %v933_v30 = vpop.f32.mrb[19].mxu0 }
 0x30d   :  { %v3666_v17 = vpop.f32.mrb[20].mxu0 }
 0x30e   :  { %v3668_v58 = vpop.f32.mrb[21].mxu0 }
 0x30f   :  { %v3670_v10 = vpop.f32.mrb[22].mxu0 }
 0x310   :  { %v3672_v9 = vpop.f32.mrb[23].mxu0 }
 0x325   :  { %v841_v19 = vpop.f32.mrb[0].mxu1 }
 0x326   :  { %v995_v44 = vcombine.high %v841_v19, %v841_v19  ;;  %v1002_v1 = vrot.slane %v841_v19, %v3675_v18  ;;  %v2689_v41 = vpop.f32.mrb[1].mxu1 }
 0x327   :  { %v844_v63 = vpop.f32.mrb[2].mxu1 }
 0x328   :  { %v1010_v53 = vcombine.high %v1002_v1, %v1002_v1  ;;  %v1018_v52 = vrot.slane %v1002_v1, %v3675_v18  ;;  %v1044_v54 = vcombine.high %v844_v63, %v844_v63  ;;  %v2690_v62 = vpop.f32.mrb[3].mxu1  ;;  %v1009_v16 = vrot.slane %v995_v44, %v3675_v18 }
 0x329   :  { %v1051_v43 = vrot.slane %v844_v63, %v3675_v18 }
 0x32a   :  { %v3683_v29 = vrot.slane %v1010_v53, %v3675_v18  ;;  %v1040_v55 = vcombine.high %v1018_v52, %v1018_v52  ;;  %v1096_v32 = vrot.slane %v1018_v52, %v3197_v28  ;;  %v1058_v8 = vrot.slane %v1044_v54, %v3675_v18 }
 0x32b   :  { %v1059_v4 = vcombine.high %v1051_v43, %v1051_v43  ;;  %v1067_v42 = vrot.slane %v1051_v43, %v3675_v18  ;;  %v3699_v35 = vrot.slane %v1009_v16, %v3675_v18  ;;  %v1011_v36 = vcombine.high %v1009_v16, %v1009_v16 }
 0x32c   :  { %v1100_v11 = vrot.slane %v3683_v29, %v3197_v28  ;;  %v1104_v24 = vrot.slane %v1040_v55, %v3197_v28  ;;  %v1074_v15 = vrot.slane %v1058_v8, %v3675_v18  ;;  %v1173_v22 = vadd.f32 %v1096_v32, %v930_v49 }
 0x32d   :  { %v2705_v23 = vpop.f32.mrb[4].mxu1  ;;  %v1081_v3 = vrot.slane %v1059_v4, %v3675_v18  ;;  %v1089_v26 = vcombine.high %v1067_v42, %v1067_v42  ;;  %v1128_v45 = vrot.slane %v1067_v42, %v3197_v28  ;;  %v1112_v57 = vrot.slane %v3699_v35, %v3197_v28 }
 0x32e   :  { %v962_v7 = vpop.f32.mrb[5].mxu1  ;;  %v1174_v33 = vadd.f32 %v1100_v11, %v933_v30  ;;  %v1175_v46 = vadd.f32 %v2697_v50, %v1104_v24  ;;  %v1090_v59 = vcombine.high %v1074_v15, %v1074_v15  ;;  %v1060_v48 = vcombine.high %v1058_v8, %v1058_v8 }
 0x32f   :  { %v2706_v31 = vpop.f32.mrb[6].mxu1  ;;  %v1136_v20 = vrot.slane %v1089_v26, %v3197_v28  ;;  %v1181_v56 = vadd.f32 %v1128_v45, %v962_v7  ;;  %v1091_v39 = vcombine.high %v1081_v3, %v1081_v3  ;;  %v1132_v40 = vrot.slane %v1081_v3, %v3197_v28 }
 0x330   :  { %v965_v5 = vpop.f32.mrb[7].mxu1  ;;  %v3710_v6 = vadd.f32 %v3696_v13, %v1173_v22  ;;  %v3713_v60 = vadd.f32 %v3696_v13, %v1174_v33  ;;  %v3717_v0 = vadd.f32 %v3696_v13, %v1175_v46  ;;  %v1039_v47 = vrot.slane %v1011_v36, %v3675_v18 }
 0x331   :  { %v1183_v61 = vadd.f32 %v2705_v23, %v1136_v20  ;;  %v1140_v37 = vrot.slane %v1091_v39, %v3197_v28  ;;  %v1182_v12 = vadd.f32 %v1132_v40, %v965_v5  ;;  %v1152_v2 = vrot.slane %v1090_v59, %v3197_v28 }
 0x332   :  { %v1210_v50 = vsel %vm1209_vm9, %v3710_v6, 0.0  ;;  %v1213_v49 = vsel %vm1209_vm9, %v3713_v60, 0.0  ;;  %v1042_v25 = vcombine.high %v3683_v29, %v3683_v29  ;;  %v1144_v44 = vrot.slane %v1074_v15, %v3197_v28 }
 0x333   :  { %v3725_v30 = vadd.f32 %v3696_v13, %v1183_v61  ;;  %v1184_v51 = vadd.f32 %v2706_v31, %v1140_v37  ;;  %1211 = vadd.xlane.f32.xlu0 %v1210_v50  ;;  %1214 = vadd.xlane.f32.xlu1 %v1213_v49  ;;  %v1088_v1 = vrot.slane %v1060_v48, %v3675_v18  ;;  %v1216_v63 = vsel %vm1209_vm9, %v3717_v0, 0.0 }
 0x334   :  { %v1177_v41 = vadd.f32 %v1112_v57, %v3668_v58  ;;  %v1274_v54 = vmul.f32 %v3710_v6, %v3710_v6  ;;  %v1275_v62 = vmul.f32 %v3713_v60, %v3713_v60  ;;  %v1041_v32 = vcombine.high %v3699_v35, %v3699_v35 }
 0x335   :  { %v2709_v19 = vpop.f32.mrb[8].mxu1  ;;  %v1240_v16 = vsel %vm1209_vm9, %v3725_v30, 0.0  ;;  %v1092_v29 = vcombine.high %v1088_v1, %v1088_v1  ;;  %v1148_v55 = vrot.slane %v1088_v1, %v3197_v28  ;;  %v1108_v42 = vrot.slane %v1042_v25, %v3197_v28 }
 0x336   :  { %v1187_v53 = vadd.f32 %v2709_v19, %v1152_v2  ;;  %v978_v52 = vpop.f32.mrb[9].mxu1  ;;  %v3749_v11 = vadd.f32 %v3696_v13, %v1182_v12  ;;  %v1290_v24 = vsel %vm1209_vm9, %v1274_v54, 0.0  ;;  %v1293_v15 = vsel %vm1209_vm9, %v1275_v62, 0.0 }
 0x337   :  { %v1185_v34 = vadd.f32 %v1144_v44, %v978_v52  ;;  %v2710_v43 = vpop.f32.mrb[10].mxu1  ;;  %1217 = vadd.xlane.f32.xlu0 %v1216_v63  ;;  %1241 = vadd.xlane.f32.xlu1 %v1240_v16  ;;  %v1156_v8 = vrot.slane %v1092_v29, %v3197_v28  ;;  %v3754_v36 = vadd.f32 %v3696_v13, %v1177_v41 }
 0x338   :  { %v981_v58 = vpop.f32.mrb[11].mxu1  ;;  %v1176_v3 = vadd.f32 %v3664_v21, %v1108_v42  ;;  %v1116_v35 = vrot.slane %v1039_v47, %v3197_v28  ;;  %v1043_v26 = vcombine.high %v1039_v47, %v1039_v47  ;;  %v1120_v45 = vrot.slane %v1041_v32, %v3197_v28 }
 0x339   :  { %v3745_v4 = vadd.f32 %v1148_v55, %v981_v58  ;;  %v1188_v23 = vadd.f32 %v2710_v43, %v1156_v8  ;;  %v3761_v31 = vadd.f32 %v3696_v13, %v1181_v56  ;;  %v3764_v22 = vadd.f32 %v3696_v13, %v1184_v51 }
 0x33a   :  { %v1178_v7 = vadd.f32 %v1116_v35, %v3672_v9  ;;  %v1222_v33 = vsel %vm1209_vm9, %v3754_v36, 0.0  ;;  %v1237_v21 = vsel %vm1209_vm9, %v3749_v11, 0.0  ;;  %v1179_v46 = vadd.f32 %v3666_v17, %v1120_v45 }
 0x33b   :  { %1291 = vadd.xlane.f32.xlu0 %v1290_v24  ;;  %1294 = vadd.xlane.f32.xlu1 %v1293_v15  ;;  %v1124_v9 = vrot.slane %v1043_v26, %v3197_v28  ;;  %v1234_v59 = vsel %vm1209_vm9, %v3761_v31, 0.0  ;;  %v1243_v20 = vsel %vm1209_vm9, %v3764_v22, 0.0  ;;  %v3777_v56 = vadd.f32 %v3696_v13, %v1176_v3 }
 0x33c   :  { %v1284_v39 = vmul.f32 %v3725_v30, %v3725_v30  ;;  %v1276_v57 = vmul.f32 %v3717_v0, %v3717_v0  ;;  %v1283_v48 = vmul.f32 %v3749_v11, %v3749_v11  ;;  %v1285_v12 = vmul.f32 %v3764_v22, %v3764_v22 }
 0x33d   :  { %v1180_v5 = vadd.f32 %v3670_v10, %v1124_v9  ;;  %v1219_v17 = vsel %vm1209_vm9, %v3777_v56, 0.0  ;;  %v3792_v10 = vadd.f32 %v3696_v13, %v1178_v7  ;;  %v3797_v47 = vadd.f32 %v3696_v13, %v1187_v53  ;;  %v2776_v9 = vld [vmem:[#allocation11 + $0x18] sm:$0xff]  }
 0x33e   :  { %v1320_v40 = vsel %vm1209_vm9, %v1284_v39, 0.0  ;;  %v1296_v61 = vsel %vm1209_vm9, %v1276_v57, 0.0  ;;  %v1317_v37 = vsel %vm1209_vm9, %v1283_v48, 0.0  ;;  %v1323_v49 = vsel %vm1209_vm9, %v1285_v12, 0.0  ;;  %v2779_v39 = vld [vmem:[#allocation10 + $0x10] sm:$0xff]  }
 0x33f   :  { %1223 = vadd.xlane.f32.xlu0 %v1222_v33  ;;  %1238 = vadd.xlane.f32.xlu1 %v1237_v21  ;;  %v1225_v50 = vsel %vm1209_vm9, %v3792_v10, 0.0  ;;  %v3803_v51 = vadd.f32 %v3696_v13, %v1179_v46  ;;  %v3806_v2 = vadd.f32 %v3696_v13, %v1185_v34  ;;  %v1252_v19 = vsel %vm1209_vm9, %v3797_v47, 0.0  ;;  %v2773_v33 = vld [vmem:[#allocation11] sm:$0xff]   ;;  %v2774_v21 = vld [vmem:[#allocation11 + $0x8] sm:$0xff]   ;;  %v2775_v46 = vld [vmem:[#allocation11 + $0x10] sm:$0xff]  }
 0x340   :  { %v1278_v44 = vmul.f32 %v3754_v36, %v3754_v36  ;;  %v3815_v1 = vadd.f32 %v3696_v13, %v1188_v23  ;;  %v1282_v53 = vmul.f32 %v3761_v31, %v3761_v31  ;;  %v1277_v62 = vmul.f32 %v3777_v56, %v3777_v56  ;;  %2723 = vmatprep.subr.bf16.mxu1 %v2773_v33 }
 0x341   :  { %v1228_v25 = vsel %vm1209_vm9, %v3803_v51, 0.0  ;;  %v1246_v63 = vsel %vm1209_vm9, %v3806_v2, 0.0  ;;  %v1288_v34 = vmul.f32 %v3797_v47, %v3797_v47  ;;  %v3831_v16 = vadd.f32 %v3696_v13, %v3745_v4  ;;  %2724 = vmatpush3.bf16.msra.mxu1 %v2773_v33 }
 0x342   :  { %v1302_v41 = vsel %vm1209_vm9, %v1278_v44, 0.0  ;;  %v1314_v52 = vsel %vm1209_vm9, %v1282_v53, 0.0  ;;  %v1255_v54 = vsel %vm1209_vm9, %v3815_v1, 0.0  ;;  %v1299_v43 = vsel %vm1209_vm9, %v1277_v62, 0.0  ;;  %2725 = vmatprep.subr.bf16.mxu1 %v2774_v21 }
 0x343   :  { %1235 = vadd.xlane.f32.xlu0 %v1234_v59  ;;  %1244 = vadd.xlane.f32.xlu1 %v1243_v20  ;;  %v1332_v29 = vsel %vm1209_vm9, %v1288_v34, 0.0  ;;  %v3836_v55 = vadd.f32 %v3696_v13, %v1180_v5  ;;  %v1249_v32 = vsel %vm1209_vm9, %v3831_v16, 0.0  ;;  %v1279_v8 = vmul.f32 %v3792_v10, %v3792_v10  ;;  %v2777_v59 = vld [vmem:[#allocation10] sm:$0xff]   ;;  %v2778_v20 = vld [vmem:[#allocation10 + $0x8] sm:$0xff]   ;;  %v2780_v5 = vld [vmem:[#allocation10 + $0x18] sm:$0xff]  }
 0x344   :  { %v1286_v4 = vmul.f32 %v3806_v2, %v3806_v2  ;;  %v1280_v24 = vmul.f32 %v3803_v51, %v3803_v51  ;;  %v1287_v15 = vmul.f32 %v3831_v16, %v3831_v16  ;;  %v1289_v26 = vmul.f32 %v3815_v1, %v3815_v1  ;;  %2712 = vmatpush3.bf16.msra.mxu0 %v2777_v59 }
 0x345   :  { %v1231_v58 = vsel %vm1209_vm9, %v3836_v55, 0.0  ;;  %v1305_v42 = vsel %vm1209_vm9, %v1279_v8, 0.0  ;;  %v1281_v35 = vmul.f32 %v3836_v55, %v3836_v55  ;;  %2726 = vmatpush3.bf16.msra.mxu1 %v2774_v21  ;;  %2713 = vmatprep.subr.bf16.mxu0 %v4503_v14 }
 0x346   :  { %v1326_v13 = vsel %vm1209_vm9, %v1286_v4, 0.0  ;;  %v1308_v23 = vsel %vm1209_vm9, %v1280_v24, 0.0  ;;  %v1329_v3 = vsel %vm1209_vm9, %v1287_v15, 0.0  ;;  %v1335_v45 = vsel %vm1209_vm9, %v1289_v26, 0.0  ;;  %2727 = vmatprep.subr.bf16.mxu1 %v2775_v46 }
 0x347   :  { %1220 = vadd.xlane.f32.xlu0 %v1219_v17  ;;  %1321 = vadd.xlane.f32.xlu1 %v1320_v40  ;;  %v1311_v7 = vsel %vm1209_vm9, %v1281_v35, 0.0  ;;  %v1468_v15 = vsub.s32 4, %v3194_v27 }
 0x348   :  { %2714 = vmatpush3.bf16.msra.mxu0 %v2778_v20 }
 0x349   :  { %2728 = vmatpush3.bf16.msra.mxu1 %v2775_v46  ;;  %2715 = vmatprep.subr.bf16.mxu0 %v4503_v14 }
 0x34a   :  { %2729 = vmatprep.subr.bf16.mxu1 %v2776_v9 }
 0x34b   :  { %1297 = vadd.xlane.f32.xlu0 %v1296_v61  ;;  %1318 = vadd.xlane.f32.xlu1 %v1317_v37 }
 0x34c   :  { %2716 = vmatpush3.bf16.msra.mxu0 %v2779_v39 }
 0x34d   :  { %2730 = vmatpush3.bf16.msra.mxu1 %v2776_v9  ;;  %2717 = vmatprep.subr.bf16.mxu0 %v4503_v14  ;;  %v3879_v9 = vrot.slane %v3693_v38, %v1468_v15 }
 0x34f   :  { %1226 = vadd.xlane.f32.xlu0 %v1225_v50  ;;  %1324 = vadd.xlane.f32.xlu1 %v1323_v49 }
 0x350   :  { %2718 = vmatpush3.bf16.msra.mxu0 %v2780_v5 }
 0x353   :  { %1229 = vadd.xlane.f32.xlu0 %v1228_v25  ;;  %1253 = vadd.xlane.f32.xlu1 %v1252_v19 }
 0x357   :  { %1303 = vadd.xlane.f32.xlu0 %v1302_v41  ;;  %1247 = vadd.xlane.f32.xlu1 %v1246_v63 }
 0x35b   :  { %1315 = vadd.xlane.f32.xlu0 %v1314_v52  ;;  %1256 = vadd.xlane.f32.xlu1 %v1255_v54 }
 0x35f   :  { %1300 = vadd.xlane.f32.xlu0 %v1299_v43  ;;  %1333 = vadd.xlane.f32.xlu1 %v1332_v29 }
 0x363   :  { %1232 = vadd.xlane.f32.xlu0 %v1231_v58  ;;  %1250 = vadd.xlane.f32.xlu1 %v1249_v32 }
 0x367   :  { %1306 = vadd.xlane.f32.xlu0 %v1305_v42  ;;  %1327 = vadd.xlane.f32.xlu1 %v1326_v13 }
 0x36b   :  { %1309 = vadd.xlane.f32.xlu0 %v1308_v23  ;;  %1330 = vadd.xlane.f32.xlu1 %v1329_v3  ;;  %v1488_v3 = vsub.s32 5, %v3194_v27 }
 0x36f   :  { %1312 = vadd.xlane.f32.xlu0 %v1311_v7  ;;  %1336 = vadd.xlane.f32.xlu1 %v1335_v45 }
 0x3c0   :  { %v1212_v17 = vpop.xlane.xlu0 %1211  ;;  %v1215_v40 = vpop.xlane.xlu1 %1214 }
 0x3c1   :  { %v1258_v61 = vmul.f32 0.015625, %v1212_v17  ;;  %v1259_v37 = vmul.f32 0.015625, %v1215_v40 }
 0x3c3   :  { %v1354_v49 = vmul.f32 %v1258_v61, %v1258_v61  ;;  %v1355_v25 = vmul.f32 %v1259_v37, %v1259_v37  ;;  %v1402_v46 = vsub.f32 %v3710_v6, %v1258_v61  ;;  %v1403_v17 = vsub.f32 %v3713_v60, %v1259_v37 }
 0x3c4   :  { %v1218_v57 = vpop.xlane.xlu0 %1217  ;;  %v1242_v48 = vpop.xlane.xlu1 %1241 }
 0x3c5   :  { %v3863_v58 = vmul.f32 0.015625, %v1242_v48  ;;  %v3865_v4 = vmul.f32 0.015625, %v1218_v57  ;;  %v3883_v57 = vrot.slane %v3693_v38, %v1488_v3 }
 0x3c7   :  { %v1364_v24 = vmul.f32 %v3863_v58, %v3863_v58  ;;  %v1356_v7 = vmul.f32 %v3865_v4, %v3865_v4 }
 0x3c8   :  { %v1292_v12 = vpop.xlane.xlu0 %1291  ;;  %v1295_v50 = vpop.xlane.xlu1 %1294 }
 0x3c9   :  { %v1338_v19 = vmul.f32 0.015625, %v1292_v12  ;;  %v1339_v44 = vmul.f32 0.015625, %v1295_v50 }
 0x3cb   :  { %v1370_v41 = vsub.f32 %v1338_v19, %v1354_v49  ;;  %v1371_v63 = vsub.f32 %v1339_v44, %v1355_v25 }
 0x3cc   :  { %v1224_v53 = vpop.xlane.xlu0 %1223  ;;  %v1239_v52 = vpop.xlane.xlu1 %1238 }
 0x3cd   :  { %v1386_v54 = vmax.f32 %v1370_v41, 0.0  ;;  %v1387_v62 = vmax.f32 %v1371_v63, 0.0  ;;  %v3867_v42 = vmul.f32 0.015625, %v1239_v52 }
 0x3cf   :  { %v1418_v14 = vadd.f32 1e-05, %v1386_v54  ;;  %v1419_v34 = vadd.f32 1e-05, %v1387_v62  ;;  %v1363_v45 = vmul.f32 %v3867_v42, %v3867_v42  ;;  %v3892_v62 = vmul.f32 0.015625, %v1224_v53 }
 0x3d0   :  { %v1236_v43 = vpop.xlane.xlu0 %1235  ;;  %v1245_v29 = vpop.xlane.xlu1 %1244 }
 0x3d1   :  { %2813 = vrsqrt.f32 %v1418_v14  ;;  %v3885_v19 = vmul.f32 0.015625, %v1245_v29  ;;  %v3899_v3 = vmul.f32 0.015625, %v1236_v43  ;;  %v1404_v43 = vsub.f32 %v3717_v0, %v3865_v4 }
 0x3d2   :  { %2815 = vrsqrt.f32 %v1419_v34 }
 0x3d3   :  { %v1365_v14 = vmul.f32 %v3885_v19, %v3885_v19 }
 0x3d4   :  { %v1221_v32 = vpop.xlane.xlu0 %1220  ;;  %v1322_v8 = vpop.xlane.xlu1 %1321 }
 0x3d5   :  { %v1348_v13 = vmul.f32 0.015625, %v1322_v8 }
 0x3d7   :  { %v1380_v23 = vsub.f32 %v1348_v13, %v1364_v24 }
 0x3d8   :  { %v1298_v35 = vpop.xlane.xlu0 %1297  ;;  %v1319_v26 = vpop.xlane.xlu1 %1318 }
 0x3d9   :  { %v1340_v33 = vmul.f32 0.015625, %v1298_v35  ;;  %v1347_v21 = vmul.f32 0.015625, %v1319_v26  ;;  %v1396_v40 = vmax.f32 %v1380_v23, 0.0  ;;  %v1358_v23 = vmul.f32 %v3892_v62, %v3892_v62 }
 0x3db   :  { %v2814_v59 = vpop.eup %2813  ;;  %v1372_v20 = vsub.f32 %v1340_v33, %v1356_v7  ;;  %v1379_v39 = vsub.f32 %v1347_v21, %v1363_v45  ;;  %v1428_v63 = vadd.f32 1e-05, %v1396_v40  ;;  %v3902_v45 = vmul.f32 0.015625, %v1221_v32 }
 0x3dc   :  { %v2816_v5 = vpop.eup %2815  ;;  %v1227_v48 = vpop.xlane.xlu0 %1226  ;;  %v1450_v50 = vmul.f32 %v2814_v59, %v1402_v46  ;;  %v1362_v59 = vmul.f32 %v3899_v3, %v3899_v3  ;;  %v1412_v40 = vsub.f32 %v3725_v30, %v3863_v58  ;;  %v1406_v32 = vsub.f32 %v3754_v36, %v3892_v62 }
 0x3dd   :  { %v1325_v12 = vpop.xlane.xlu1 %1324  ;;  %v1388_v49 = vmax.f32 %v1372_v20, 0.0  ;;  %v1395_v25 = vmax.f32 %v1379_v39, 0.0  ;;  %v1451_v6 = vmul.f32 %v2816_v5, %v1403_v17 }
 0x3de   :  { %v1470_v61 = vmul.f32 %v3879_v9, %v1450_v50  ;;  %v1349_v52 = vmul.f32 0.015625, %v1325_v12 }
 0x3df   :  { %v1420_v44 = vadd.f32 1e-05, %v1388_v49  ;;  %v1427_v41 = vadd.f32 1e-05, %v1395_v25  ;;  %v1471_v38 = vmul.f32 %v3879_v9, %v1451_v6  ;;  %v1411_v49 = vsub.f32 %v3749_v11, %v3867_v42 }
 0x3e0   :  { %v1230_v54 = vpop.xlane.xlu0 %1229  ;;  %v1490_v37 = vadd.f32 %v3883_v57, %v1470_v61  ;;  %v1381_v8 = vsub.f32 %v1349_v52, %v1365_v14  ;;  %v1357_v25 = vmul.f32 %v3902_v45, %v3902_v45  ;;  %v1410_v52 = vsub.f32 %v3761_v31, %v3899_v3 }
 0x3e1   :  { %v3888_v60 = vpop.xlane.xlu1 %1253  ;;  %2817 = vrsqrt.f32 %v1420_v44  ;;  %v1491_v34 = vadd.f32 %v3883_v57, %v1471_v38  ;;  %v3923_v42 = vmul.f32 0.015625, %v1227_v48  ;;  %v3927_v14 = vmul.f32 0.015625, %v1230_v54 }
 0x3e2   :  { %2819 = vrsqrt.f32 %v1427_v41  ;;  %v1506_v29 = vmax.f32 %v1490_v37, 0.0  ;;  %v1397_v33 = vmax.f32 %v1381_v8, 0.0  ;;  %v1413_v37 = vsub.f32 %v3764_v22, %v3885_v19 }
 0x3e3   :  { %2821 = vrsqrt.f32 %v1428_v63  ;;  %v1507_v15 = vmax.f32 %v1491_v34, 0.0  ;;  %v1405_v48 = vsub.f32 %v3777_v56, %v3902_v45  ;;  %v1359_v54 = vmul.f32 %v3923_v42, %v3923_v42 }
 0x3e4   :  { %v1304_v13 = vpop.xlane.xlu0 %1303  ;;  %v1522_v7 = vsel %vm1209_vm9, %v1506_v29, -inf  ;;  %v1429_v61 = vadd.f32 1e-05, %v1397_v33 }
 0x3e5   :  { %v1248_v24 = vpop.xlane.xlu1 %1247  ;;  %v1342_v53 = vmul.f32 0.015625, %v1304_v13  ;;  %v1781_v35 = vpack.c.bf16 %v1507_v15, %v1506_v29  ;;  %v1523_v5 = vrot.slane %v1522_v7, 4  ;;  %v1529_v30 = vsel %vm1209_vm9, %v1507_v15, -inf }
 0x3e6   :  { %v1530_v13 = vrot.slane %v1529_v30, 4 }
 0x3e7   :  { %v1374_v26 = vsub.f32 %v1342_v53, %v1358_v23  ;;  %2731 = vmatprep.mubr.msk.bf16.mxu1 %vm1209_vm9, %v1781_v35  ;;  %v1524_v38 = vmax.f32 %v1522_v7, %v1523_v5  ;;  %v3937_v7 = vmul.f32 0.015625, %v3888_v60  ;;  %v1360_v5 = vmul.f32 %v3927_v14, %v3927_v14 }
 0x3e8   :  { %v1316_v21 = vpop.xlane.xlu0 %1315 }
 0x3e9   :  { %v1257_v46 = vpop.xlane.xlu1 %1256  ;;  %v1390_v20 = vmax.f32 %v1374_v26, 0.0  ;;  %v1346_v39 = vmul.f32 0.015625, %v1316_v21  ;;  %v1525_v33 = vrot.slane %v1524_v38, 2 }
 0x3eb   :  { %v2818_v17 = vpop.eup %2817  ;;  %v1422_v12 = vadd.f32 1e-05, %v1390_v20  ;;  %v1378_v50 = vsub.f32 %v1346_v39, %v1362_v59  ;;  %v3942_v20 = vmul.f32 0.015625, %v1248_v24  ;;  %v3944_v39 = vmul.f32 0.015625, %v1257_v46 }
 0x3ec   :  { %v1452_v6 = vmul.f32 %v2818_v17, %v1404_v43  ;;  %v1301_v44 = vpop.xlane.xlu0 %1300  ;;  %v2820_v4 = vpop.eup %2819 }
 0x3ed   :  { %v3917_v0 = vpop.xlane.xlu1 %1333  ;;  %2823 = vrsqrt.f32 %v1422_v12  ;;  %v1394_v58 = vmax.f32 %v1378_v50, 0.0  ;;  %v1341_v41 = vmul.f32 0.015625, %v1301_v44  ;;  %v2822_v63 = vpop.eup %2821  ;;  %v1459_v53 = vmul.f32 %v2820_v4, %v1411_v49 }
 0x3ee   :  { %v1472_v11 = vmul.f32 %v3879_v9, %v1452_v6  ;;  %2825 = vrsqrt.f32 %v1429_v61  ;;  %v1460_v26 = vmul.f32 %v2822_v63, %v1412_v40  ;;  %v1531_v40 = vmax.f32 %v1529_v30, %v1530_v13 }
 0x3ef   :  { %v1426_v34 = vadd.f32 1e-05, %v1394_v58  ;;  %v1373_v29 = vsub.f32 %v1341_v41, %v1357_v25  ;;  %v1479_v50 = vmul.f32 %v3879_v9, %v1459_v53  ;;  %v3957_v25 = vmul.f32 %v3937_v7, %v3937_v7 }
 0x3f0   :  { %v3930_v8 = vadd.f32 %v3883_v57, %v1472_v11  ;;  %v1233_v15 = vpop.xlane.xlu0 %1232  ;;  %v1480_v46 = vmul.f32 %v3879_v9, %v1460_v26  ;;  %v3959_v6 = vmax.f32 %v1524_v38, %v1525_v33  ;;  %v1366_v30 = vmul.f32 %v3942_v20, %v3942_v20 }
 0x3f1   :  { %v1251_v23 = vpop.xlane.xlu1 %1250  ;;  %2827 = vrsqrt.f32 %v1426_v34  ;;  %v1389_v35 = vmax.f32 %v1373_v29, 0.0  ;;  %v3965_v58 = vmul.f32 %v3944_v39, %v3944_v39  ;;  %v1532_v11 = vrot.slane %v1531_v40, 2 }
 0x3f2   :  { %v1508_v21 = vmax.f32 %v3930_v8, 0.0  ;;  %v3967_v41 = vmul.f32 0.015625, %v1251_v23  ;;  %v3969_v34 = vmul.f32 0.015625, %v1233_v15  ;;  %v3975_v53 = vadd.f32 %v3883_v57, %v1479_v50 }
 0x3f3   :  { %v1421_v43 = vadd.f32 1e-05, %v1389_v35  ;;  %v1352_v36 = vmul.f32 0.015625, %v3917_v0  ;;  %v1533_v3 = vmax.f32 %v1531_v40, %v1532_v11 }
 0x3f4   :  { %v1307_v60 = vpop.xlane.xlu0 %1306  ;;  %v1536_v24 = vsel %vm1209_vm9, %v1508_v21, -inf  ;;  %v1367_v62 = vmul.f32 %v3967_v41, %v3967_v41 }
 0x3f5   :  { %v1328_v12 = vpop.xlane.xlu1 %1327  ;;  %2829 = vrsqrt.f32 %v1421_v43  ;;  %v1343_v49 = vmul.f32 0.015625, %v1307_v60  ;;  %v1537_v44 = vrot.slane %v1536_v24, 4  ;;  %v3978_v43 = vadd.f32 %v3883_v57, %v1480_v46 }
 0x3f6   :  { %v1350_v61 = vmul.f32 0.015625, %v1328_v12 }
 0x3f7   :  { %v2824_v4 = vpop.eup %2823  ;;  %v1375_v63 = vsub.f32 %v1343_v49, %v1359_v54  ;;  %v1527_v54 = vrot.slane %v3959_v6, 1  ;;  %v1538_v60 = vmax.f32 %v1536_v24, %v1537_v44 }
 0x3f8   :  { %v1310_v29 = vpop.xlane.xlu0 %1309  ;;  %v1454_v38 = vmul.f32 %v2824_v4, %v1406_v32  ;;  %v2826_v23 = vpop.eup %2825  ;;  %v1382_v15 = vsub.f32 %v1350_v61, %v1366_v30  ;;  %v1361_v4 = vmul.f32 %v3969_v34, %v3969_v34  ;;  %v1515_v61 = vmax.f32 %v3975_v53, 0.0 }
 0x3f9   :  { %v1331_v13 = vpop.xlane.xlu1 %1330  ;;  %v1391_v35 = vmax.f32 %v1375_v63, 0.0  ;;  %v1344_v26 = vmul.f32 0.015625, %v1310_v29 }
 0x3fa   :  { %v1351_v33 = vmul.f32 0.015625, %v1331_v13  ;;  %v1474_v12 = vmul.f32 %v3879_v9, %v1454_v38  ;;  %v1398_v13 = vmax.f32 %v1382_v15, 0.0  ;;  %v1539_v38 = vrot.slane %v1538_v60, 2 }
 0x3fb   :  { %v2828_v49 = vpop.eup %2827  ;;  %v1423_v32 = vadd.f32 1e-05, %v1391_v35  ;;  %v1376_v50 = vsub.f32 %v1344_v26, %v1360_v5  ;;  %v1461_v35 = vmul.f32 %v2826_v23, %v1413_v37  ;;  %v1585_v15 = vsel %vm1209_vm9, %v1515_v61, -inf }
 0x3fc   :  { %v1313_v46 = vpop.xlane.xlu0 %1312  ;;  %v3988_v29 = vadd.f32 %v3883_v57, %v1474_v12  ;;  %v1458_v24 = vmul.f32 %v2828_v49, %v1410_v52  ;;  %v1383_v44 = vsub.f32 %v1351_v33, %v1367_v62  ;;  %v1384_v33 = vsub.f32 %v1352_v36, %v3957_v25 }
 0x3fd   :  { %v1337_v63 = vpop.xlane.xlu1 %1336  ;;  %2831 = vrsqrt.f32 %v1423_v32  ;;  %v1392_v0 = vmax.f32 %v1376_v50, 0.0  ;;  %v1345_v30 = vmul.f32 0.015625, %v1313_v46  ;;  %v1430_v49 = vadd.f32 1e-05, %v1398_v13 }
 0x3fe   :  { %v1353_v5 = vmul.f32 0.015625, %v1337_v63  ;;  %v1510_v59 = vmax.f32 %v3988_v29, 0.0  ;;  %v1478_v31 = vmul.f32 %v3879_v9, %v1458_v24  ;;  %v1399_v22 = vmax.f32 %v1383_v44, 0.0 }
 0x3ff   :  { %v2830_v26 = vpop.eup %2829  ;;  %v1424_v12 = vadd.f32 1e-05, %v1392_v0  ;;  %v1377_v17 = vsub.f32 %v1345_v30, %v1361_v4  ;;  %v1540_v40 = vmax.f32 %v1538_v60, %v1539_v38  ;;  %v1481_v11 = vmul.f32 %v3879_v9, %v1461_v35 }
 0x400   :  { %v1453_v52 = vmul.f32 %v2830_v26, %v1405_v48  ;;  %v4007_v37 = vadd.f32 %v3883_v57, %v1478_v31  ;;  %v1385_v45 = vsub.f32 %v1353_v5, %v3965_v58  ;;  %v1550_v48 = vsel %vm1209_vm9, %v1510_v59, -inf }
 0x401   :  { %2833 = vrsqrt.f32 %v1424_v12  ;;  %v1393_v19 = vmax.f32 %v1377_v17, 0.0  ;;  %v1416_v17 = vsub.f32 %v3797_v47, %v3937_v7  ;;  %v1534_v36 = vrot.slane %v1533_v3, 1 }
 0x402   :  { %v1473_v23 = vmul.f32 %v3879_v9, %v1453_v52  ;;  %v1514_v25 = vmax.f32 %v4007_v37, 0.0  ;;  %v1400_v32 = vmax.f32 %v1384_v33, 0.0  ;;  %v1431_v50 = vadd.f32 1e-05, %v1399_v22 }
 0x403   :  { %v1425_v56 = vadd.f32 1e-05, %v1393_v19  ;;  %v1586_v58 = vrot.slane %v1585_v15, 4  ;;  %v1551_v46 = vrot.slane %v1550_v48, 4  ;;  %v4023_v63 = vadd.f32 %v3883_v57, %v1481_v11 }
 0x404   :  { %v1493_v62 = vadd.f32 %v3883_v57, %v1473_v23  ;;  %v1578_v60 = vsel %vm1209_vm9, %v1514_v25, -inf  ;;  %v1528_v0 = vmax.f32 %v3959_v6, %v1527_v54  ;;  %v1401_v44 = vmax.f32 %v1385_v45, 0.0 }
 0x405   :  { %2835 = vrsqrt.f32 %v1425_v56  ;;  %v1541_v30 = vrot.slane %v1540_v40, 1  ;;  %v1516_v13 = vmax.f32 %v3978_v43, 0.0  ;;  %v1414_v5 = vsub.f32 %v3806_v2, %v3942_v20 }
 0x406   :  { %2837 = vrsqrt.f32 %v1430_v49  ;;  %v1509_v4 = vmax.f32 %v1493_v62, 0.0  ;;  %v4507_v35 = vsub.f32 %v3792_v10, %v3923_v42  ;;  %v1579_v12 = vrot.slane %v1578_v60, 4 }
 0x407   :  { %v2832_v24 = vpop.eup %2831  ;;  %v1535_v31 = vmax.f32 %v1533_v3, %v1534_v36  ;;  %v1432_v52 = vadd.f32 1e-05, %v1400_v32  ;;  %2839 = vrsqrt.f32 %v1431_v50  ;;  %v1587_v33 = vmax.f32 %v1585_v15, %v1586_v58 }
 0x408   :  { %v1782_v38 = vpack.c.bf16 %v1509_v4, %v1508_v21  ;;  %v1455_v26 = vmul.f32 %v2832_v24, %v4507_v35  ;;  %v1417_v6 = vsub.f32 %v3815_v1, %v3944_v39  ;;  %v1552_v2 = vmax.f32 %v1550_v48, %v1551_v46 }
 0x409   :  { %v1517_v8 = vmax.f32 %v4023_v63, 0.0  ;;  %v1642_v20 = vpack.c.bf16 %v1528_v0, %v1528_v0  ;;  %v1433_v22 = vadd.f32 1e-05, %v1401_v44  ;;  %v1542_v10 = vmax.f32 %v1540_v40, %v1541_v30 }
 0x40a   :  { %2732 = vmatmul.mubr.msk.bf16.vlgmr.msra.gmra.mrb[12].mxu1 %vm1209_vm9, %v1782_v38  ;;  %v1475_v54 = vmul.f32 %v3879_v9, %v1455_v26  ;;  %v1592_v42 = vsel %vm1209_vm9, %v1516_v13, -inf  ;;  %v1543_v3 = vsel %vm1209_vm9, %v1509_v4, -inf  ;;  %v4508_v19 = vsub.f32 %v3803_v51, %v3927_v14 }
 0x40b   :  { %v2834_v21 = vpop.eup %2833  ;;  %v1580_v49 = vmax.f32 %v1578_v60, %v1579_v12  ;;  %v1643_v11 = vpack.c.bf16 %v1535_v31, %v1535_v31  ;;  %2841 = vrsqrt.f32 %v1432_v52  ;;  %v1409_v56 = vsub.f32 %v3836_v55, %v3969_v34 }
 0x40c   :  { %v1495_v15 = vadd.f32 %v3883_v57, %v1475_v54  ;;  %v1456_v23 = vmul.f32 %v2834_v21, %v4508_v19  ;;  %v1588_v45 = vrot.slane %v1587_v33, 2  ;;  %v1553_v48 = vrot.slane %v1552_v2, 2 }
 0x40d   :  { %v1599_v62 = vsel %vm1209_vm9, %v1517_v8, -inf  ;;  %2843 = vrsqrt.f32 %v1433_v22  ;;  %v1544_v50 = vrot.slane %v1543_v3, 4  ;;  %v1644_v51 = vpack.c.bf16 %v1542_v10, %v1542_v10 }
 0x40e   :  { %v1511_v40 = vmax.f32 %v1495_v15, 0.0  ;;  %v1476_v36 = vmul.f32 %v3879_v9, %v1456_v23  ;;  %v1593_v14 = vrot.slane %v1592_v42, 4  ;;  %v1581_v34 = vrot.slane %v1580_v49, 2 }
 0x40f   :  { %v2836_v32 = vpop.eup %2835  ;;  %v1674_v46 = vunpack.c.l.b16 %v1642_v20  ;;  %v1675_v24 = vunpack.c.l.b16 %v1643_v11  ;;  %v1589_v0 = vmax.f32 %v1587_v33, %v1588_v45  ;;  %v1600_v44 = vrot.slane %v1599_v62, 4 }
 0x410   :  { %v2838_v60 = vpop.eup %2837  ;;  %v1783_v58 = vpack.c.bf16 %v1511_v40, %v1510_v59  ;;  %v1457_v4 = vmul.f32 %v2836_v32, %v1409_v56  ;;  %v1496_v55 = vadd.f32 %v3883_v57, %v1476_v36  ;;  %v1554_v30 = vmax.f32 %v1552_v2, %v1553_v48 }
 0x411   :  { %v1557_v38 = vsel %vm1209_vm9, %v1511_v40, -inf  ;;  %v2840_v12 = vpop.eup %2839  ;;  %v1545_v31 = vmax.f32 %v1543_v3, %v1544_v50  ;;  %v1676_v29 = vunpack.c.l.b16 %v1644_v51  ;;  %v1594_v59 = vmax.f32 %v1592_v42, %v1593_v14 }
 0x412   :  { %2735 = vmatprep.mubr.msk.bf16.mxu1 %vm1209_vm9, %v1783_v58  ;;  %v1477_v35 = vmul.f32 %v3879_v9, %v1457_v4  ;;  %v1512_v26 = vmax.f32 %v1496_v55, 0.0  ;;  %v1462_v52 = vmul.f32 %v2838_v60, %v1414_v5  ;;  %v1415_v54 = vsub.f32 %v3831_v16, %v3967_v41 }
 0x413   :  { %v1582_v2 = vmax.f32 %v1580_v49, %v1581_v34  ;;  %v1690_v20 = vsel %vm770_vm2, %v1675_v24, %v1674_v46  ;;  %v1558_v22 = vrot.slane %v1557_v38, 4  ;;  %v1590_v10 = vrot.slane %v1589_v0, 1 }
 0x414   :  { %v1497_v21 = vadd.f32 %v3883_v57, %v1477_v35  ;;  %v1564_v33 = vsel %vm1209_vm9, %v1512_v26, -inf  ;;  %v1601_v15 = vmax.f32 %v1599_v62, %v1600_v44  ;;  %v1555_v19 = vrot.slane %v1554_v30, 1 }
 0x415   :  { %v1565_v11 = vrot.slane %v1564_v33, 4  ;;  %v1463_v3 = vmul.f32 %v2840_v12, %v1415_v54  ;;  %v2842_v56 = vpop.eup %2841  ;;  %v1546_v42 = vrot.slane %v1545_v31, 2  ;;  %v4065_v5 = vsel %vm772_vm3, %v1676_v29, %v1690_v20 }
 0x416   :  { %v1513_v23 = vmax.f32 %v1497_v21, 0.0  ;;  %v1595_v16 = vrot.slane %v1594_v59, 2  ;;  %v1482_v41 = vmul.f32 %v3879_v9, %v1462_v52  ;;  %v1583_v40 = vrot.slane %v1582_v2, 1 }
 0x417   :  { %v1785_v48 = vpack.c.bf16 %v1515_v61, %v1514_v25  ;;  %v2844_v36 = vpop.eup %2843  ;;  %v1559_v62 = vmax.f32 %v1557_v38, %v1558_v22  ;;  %v4073_v50 = vmax.f32 %v1589_v0, %v1590_v10  ;;  %v1602_v51 = vrot.slane %v1601_v15, 2 }
 0x418   :  { %v1571_v45 = vsel %vm1209_vm9, %v1513_v23, -inf  ;;  %v1784_v49 = vpack.c.bf16 %v1513_v23, %v1512_v26  ;;  %v4075_v14 = vmax.f32 %v1554_v30, %v1555_v19  ;;  %v1566_v60 = vmax.f32 %v1564_v33, %v1565_v11 }
 0x419   :  { %v1572_v32 = vrot.slane %v1571_v45, 4  ;;  %v1786_v58 = vpack.c.bf16 %v1517_v8, %v1516_v13  ;;  %v1483_v37 = vmul.f32 %v3879_v9, %v1463_v3  ;;  %v1547_v53 = vmax.f32 %v1545_v31, %v1546_v42 }
 0x41a   :  { %2736 = vmatmul.mubr.msk.bf16.gmra.mrb[16].mxu1 %vm1209_vm9, %v1784_v49  ;;  %v1596_v25 = vmax.f32 %v1594_v59, %v1595_v16  ;;  %v1502_v4 = vadd.f32 %v3883_v57, %v1482_v41  ;;  %v1584_v55 = vmax.f32 %v1582_v2, %v1583_v40  ;;  %v1464_v46 = vmul.f32 %v2842_v56, %v1416_v17 }
 0x41b   :  { %v1573_v61 = vmax.f32 %v1571_v45, %v1572_v32  ;;  %2739 = vmatprep.mubr.msk.bf16.mxu1 %vm1209_vm9, %v1785_v48  ;;  %v1503_v34 = vadd.f32 %v3883_v57, %v1483_v37  ;;  %v1465_v43 = vmul.f32 %v2844_v36, %v1417_v6  ;;  %v1560_v63 = vrot.slane %v1559_v62, 2 }
 0x41c   :  { %v1651_v13 = vpack.c.bf16 %v4073_v50, %v4073_v50  ;;  %v1603_v8 = vmax.f32 %v1601_v15, %v1602_v51  ;;  %v1518_v24 = vmax.f32 %v1502_v4, 0.0  ;;  %v1567_v0 = vrot.slane %v1566_v60, 2 }
 0x41d   :  { %v1519_v44 = vmax.f32 %v1503_v34, 0.0  ;;  %v1484_v30 = vmul.f32 %v3879_v9, %v1464_v46  ;;  %v1485_v38 = vmul.f32 %v3879_v9, %v1465_v43  ;;  %v1548_v35 = vrot.slane %v1547_v53, 1 }
 0x41e   :  { %v1574_v26 = vrot.slane %v1573_v61, 2  ;;  %v1597_v47 = vrot.slane %v1596_v25, 1  ;;  %v1606_v7 = vsel %vm1209_vm9, %v1518_v24, -inf  ;;  %v1650_v17 = vpack.c.bf16 %v1584_v55, %v1584_v55 }
 0x41f   :  { %v1607_v1 = vrot.slane %v1606_v7, 4  ;;  %v1613_v39 = vsel %vm1209_vm9, %v1519_v44, -inf  ;;  %v1504_v6 = vadd.f32 %v3883_v57, %v1484_v30  ;;  %v1561_v12 = vmax.f32 %v1559_v62, %v1560_v63 }
 0x420   :  { %v1604_v31 = vrot.slane %v1603_v8, 1  ;;  %v1614_v29 = vrot.slane %v1613_v39, 4  ;;  %v1787_v59 = vpack.c.bf16 %v1519_v44, %v1518_v24  ;;  %v1568_v52 = vmax.f32 %v1566_v60, %v1567_v0 }
 0x421   :  { %v1608_v54 = vmax.f32 %v1606_v7, %v1607_v1  ;;  %v1505_v9 = vadd.f32 %v3883_v57, %v1485_v38  ;;  %v1520_v21 = vmax.f32 %v1504_v6, 0.0  ;;  %v1549_v33 = vmax.f32 %v1547_v53, %v1548_v35 }
 0x422   :  { %2740 = vmatmul.mubr.msk.bf16.gmra.mrb[20].mxu1 %vm1209_vm9, %v1786_v58  ;;  %v1575_v2 = vmax.f32 %v1573_v61, %v1574_v26  ;;  %v1598_v20 = vmax.f32 %v1596_v25, %v1597_v47  ;;  %v1615_v22 = vmax.f32 %v1613_v39, %v1614_v29  ;;  %v1682_v10 = vunpack.c.l.b16 %v1650_v17 }
 0x423   :  { %2743 = vmatprep.mubr.msk.bf16.mxu1 %vm1209_vm9, %v1787_v59  ;;  %v1609_v15 = vrot.slane %v1608_v54, 2  ;;  %v1521_v19 = vmax.f32 %v1505_v9, 0.0  ;;  %v1620_v23 = vsel %vm1209_vm9, %v1520_v21, -inf  ;;  %v1562_v11 = vrot.slane %v1561_v12, 1 }
 0x424   :  { %v1605_v3 = vmax.f32 %v1603_v8, %v1604_v31  ;;  %v1616_v56 = vrot.slane %v1615_v22, 2  ;;  %v1621_v42 = vrot.slane %v1620_v23, 4  ;;  %v1569_v16 = vrot.slane %v1568_v52, 1 }
 0x425   :  { %v1610_v41 = vmax.f32 %v1608_v54, %v1609_v15  ;;  %v1627_v57 = vsel %vm1209_vm9, %v1521_v19, -inf  ;;  %v1788_v45 = vpack.c.bf16 %v1521_v19, %v1520_v21  ;;  %v1576_v49 = vrot.slane %v1575_v2, 1 }
 0x426   :  { %v1617_v40 = vmax.f32 %v1615_v22, %v1616_v56  ;;  %v1622_v48 = vmax.f32 %v1620_v23, %v1621_v42  ;;  %v1628_v36 = vrot.slane %v1627_v57, 4  ;;  %v1645_v62 = vpack.c.bf16 %v1549_v33, %v1549_v33 }
 0x427   :  { %v1683_v32 = vunpack.c.l.b16 %v1651_v13  ;;  %v1652_v50 = vpack.c.bf16 %v1598_v20, %v1598_v20  ;;  %v1611_v51 = vrot.slane %v1610_v41, 1  ;;  %v1563_v60 = vmax.f32 %v1561_v12, %v1562_v11 }
 0x428   :  { %v1618_v58 = vrot.slane %v1617_v40, 1  ;;  %v1623_v37 = vrot.slane %v1622_v48, 2  ;;  %v1629_v53 = vmax.f32 %v1627_v57, %v1628_v36  ;;  %v1570_v61 = vmax.f32 %v1568_v52, %v1569_v16 }
 0x429   :  { %v1697_v25 = vsel %vm770_vm2, %v1683_v32, %v1682_v10  ;;  %v1653_v4 = vpack.c.bf16 %v1605_v3, %v1605_v3  ;;  %v1612_v55 = vmax.f32 %v1610_v41, %v1611_v51  ;;  %v1577_v34 = vmax.f32 %v1575_v2, %v1576_v49 }
 0x42a   :  { %2744 = vmatmul.mubr.msk.bf16.gmra.mrb[24].mxu1 %vm1209_vm9, %v1788_v45  ;;  %v1619_v46 = vmax.f32 %v1617_v40, %v1618_v58  ;;  %v1624_v43 = vmax.f32 %v1622_v48, %v1623_v37  ;;  %v1630_v63 = vrot.slane %v1629_v53, 2  ;;  %v1677_v8 = vunpack.c.l.b16 %v1645_v62 }
 0x42b   :  { %v1646_v13 = vpack.c.bf16 %v4075_v14, %v4075_v14  ;;  %v1684_v24 = vunpack.c.l.b16 %v1652_v50  ;;  %v1654_v0 = vpack.c.bf16 %v1612_v55, %v1612_v55  ;;  %v1647_v44 = vpack.c.bf16 %v1563_v60, %v1563_v60 }
 0x42c   :  { %v1655_v30 = vpack.c.bf16 %v1619_v46, %v1619_v46  ;;  %v1625_v38 = vrot.slane %v1624_v43, 1  ;;  %v1631_v35 = vmax.f32 %v1629_v53, %v1630_v63  ;;  %v1648_v26 = vpack.c.bf16 %v1570_v61, %v1570_v61 }
 0x42d   :  { %v1685_v47 = vunpack.c.l.b16 %v1653_v4  ;;  %v1698_v7 = vsel %vm772_vm3, %v1684_v24, %v1697_v25  ;;  %v1686_v17 = vunpack.c.l.b16 %v1654_v0  ;;  %v1649_v1 = vpack.c.bf16 %v1577_v34, %v1577_v34 }
 0x42e   :  { %v1687_v39 = vunpack.c.l.b16 %v1655_v30  ;;  %v1626_v6 = vmax.f32 %v1624_v43, %v1625_v38  ;;  %v1632_v12 = vrot.slane %v1631_v35, 1  ;;  %v1692_v31 = vsel %vm774_vm4, %v1677_v8, %v4065_v5 }
 0x42f   :  { %v1679_v29 = vunpack.c.l.b16 %v1647_v44  ;;  %v1699_v14 = vsel %vm774_vm4, %v1685_v47, %v1698_v7  ;;  %v1678_v54 = vunpack.c.l.b16 %v1646_v13  ;;  %v1680_v9 = vunpack.c.l.b16 %v1648_v26 }
 0x430   :  { %v1633_v59 = vmax.f32 %v1631_v35, %v1632_v12  ;;  %v1656_v52 = vpack.c.bf16 %v1626_v6, %v1626_v6  ;;  %v1700_v21 = vsel %vm776_vm5, %v1686_v17, %v1699_v14  ;;  %v1681_v33 = vunpack.c.l.b16 %v1649_v1  ;;  %v4153_v12 = vld [vmem:[%s4496_s6] sm:$0xff] }
 0x431   :  { %v1701_v2 = vsel %vm778_vm6, %v1687_v39, %v1700_v21  ;;  %v1693_v22 = vsel %vm776_vm5, %v1678_v54, %v1692_v31  ;;  %v2132_v24 = vsub.s32 6, %v3194_v27 }
 0x432   :  { %v1657_v20 = vpack.c.bf16 %v1633_v59, %v1633_v59  ;;  %v1688_v10 = vunpack.c.l.b16 %v1656_v52  ;;  %v1694_v15 = vsel %vm778_vm6, %v1679_v29, %v1693_v22 }
 0x433   :  { %v1695_v5 = vsel %vm780_vm7, %v1680_v9, %v1694_v15  ;;  %v4156_v31 = vrot.slane %v4153_v12, %v2132_v24 }
 0x434   :  { %v1689_v19 = vunpack.c.l.b16 %v1657_v20  ;;  %v1702_v23 = vsel %vm780_vm7, %v1688_v10, %v1701_v2  ;;  %v1696_v11 = vsel %vm782_vm8, %v1681_v33, %v1695_v5 }
 0x436   :  { %v1703_v3 = vsel %vm782_vm8, %v1689_v19, %v1702_v23 }
 0x437   :  { %v1704_v56 = vpack.c.b16 %v1703_v3, %v1696_v11 }
 0x439   :  { %2720 = vmatmul.mubr.msk.bf16.vlgmr.msra.gmra.mrb[24].mxu0 %vm1209_vm9, %v1704_v56 }
 0x4dd   :  { %v2733_v42 = vpop.f32.mrb[12].mxu1 }
 0x4de   :  { %v1871_v16 = vpop.f32.mrb[13].mxu1 }
 0x4df   :  { %v4121_v41 = vpop.f32.mrb[14].mxu1 }
 0x4e0   :  { %v1874_v57 = vpop.f32.mrb[15].mxu1 }
 0x4ed   :  { %v4123_v45 = vpop.f32.mrb[16].mxu1 }
 0x4ee   :  { %v1887_v49 = vpop.f32.mrb[17].mxu1 }
 0x4ef   :  { %v4125_v40 = vpop.f32.mrb[18].mxu1 }
 0x4f0   :  { %v4127_v48 = vpop.f32.mrb[19].mxu1 }
 0x4f5   :  { %v2741_v36 = vpop.f32.mrb[20].mxu1 }
 0x4f6   :  { %v1903_v62 = vpop.f32.mrb[21].mxu1 }
 0x4f7   :  { %v4129_v32 = vpop.f32.mrb[22].mxu1 }
 0x4f8   :  { %v1906_v50 = vpop.f32.mrb[23].mxu1 }
 0x4fd   :  { %v4131_v51 = vpop.f32.mrb[24].mxu1 }
 0x4fe   :  { %v1919_v60 = vpop.f32.mrb[25].mxu1 }
 0x4ff   :  { %v4133_v58 = vpop.f32.mrb[26].mxu1 }
 0x500   :  { %v4135_v37 = vpop.f32.mrb[27].mxu1 }
 0x50c   :  { %v1766_v53 = vpop.f32.mrb[24].mxu0 }
 0x50d   :  { %v1936_v61 = vcombine.high %v1766_v53, %v1766_v53  ;;  %v1943_v25 = vrot.slane %v1766_v53, %v3675_v18  ;;  %v2721_v4 = vpop.f32.mrb[25].mxu0 }
 0x50e   :  { %v1769_v55 = vpop.f32.mrb[26].mxu0 }
 0x50f   :  { %v1950_v34 = vrot.slane %v1936_v61, %v3675_v18  ;;  %v1951_v46 = vcombine.high %v1943_v25, %v1943_v25  ;;  %v1959_v43 = vrot.slane %v1943_v25, %v3675_v18  ;;  %v1985_v63 = vcombine.high %v1769_v55, %v1769_v55  ;;  %v2722_v8 = vpop.f32.mrb[27].mxu0 }
 0x510   :  { %v1992_v13 = vrot.slane %v1769_v55, %v3675_v18 }
 0x511   :  { %v1952_v0 = vcombine.high %v1950_v34, %v1950_v34  ;;  %v1966_v44 = vrot.slane %v1950_v34, %v3675_v18  ;;  %v1973_v30 = vrot.slane %v1951_v46, %v3675_v18  ;;  %v1981_v38 = vcombine.high %v1959_v43, %v1959_v43 }
 0x512   :  { %v2037_v35 = vrot.slane %v1959_v43, %v3197_v28  ;;  %v1999_v26 = vrot.slane %v1985_v63, %v3675_v18  ;;  %v2000_v47 = vcombine.high %v1992_v13, %v1992_v13  ;;  %v2008_v7 = vrot.slane %v1992_v13, %v3675_v18 }
 0x513   :  { %v2041_v17 = vrot.slane %v1973_v30, %v3197_v28  ;;  %v2045_v1 = vrot.slane %v1981_v38, %v3197_v28  ;;  %v2053_v29 = vrot.slane %v1966_v44, %v3197_v28  ;;  %v1980_v54 = vrot.slane %v1952_v0, %v3675_v18 }
 0x514   :  { %v2001_v39 = vcombine.high %v1999_v26, %v1999_v26  ;;  %v2015_v6 = vrot.slane %v1999_v26, %v3675_v18  ;;  %v2022_v14 = vrot.slane %v2000_v47, %v3675_v18  ;;  %v2030_v59 = vcombine.high %v2008_v7, %v2008_v7 }
 0x515   :  { %v2069_v52 = vrot.slane %v2008_v7, %v3197_v28  ;;  %v1983_v9 = vcombine.high %v1973_v30, %v1973_v30  ;;  %v2114_v33 = vadd.f32 %v2037_v35, %v1871_v16  ;;  %v2115_v10 = vadd.f32 %v2041_v17, %v1874_v57 }
 0x516   :  { %v2085_v21 = vrot.slane %v2015_v6, %v3197_v28  ;;  %v2029_v2 = vrot.slane %v2001_v39, %v3675_v18  ;;  %v2073_v20 = vrot.slane %v2022_v14, %v3197_v28  ;;  %v2077_v22 = vrot.slane %v2030_v59, %v3197_v28 }
 0x517   :  { %v2032_v15 = vcombine.high %v2022_v14, %v2022_v14  ;;  %v4167_v19 = vadd.f32 %v4156_v31, %v2114_v33  ;;  %v2122_v5 = vadd.f32 %v2069_v52, %v1903_v62  ;;  %v2116_v23 = vadd.f32 %v2733_v42, %v2045_v1 }
 0x518   :  { %v4170_v11 = vadd.f32 %v4156_v31, %v2115_v10  ;;  %v2123_v3 = vadd.f32 %v2073_v20, %v1906_v50  ;;  %v2124_v56 = vadd.f32 %v2741_v36, %v2077_v22  ;;  %v2118_v53 = vadd.f32 %v2053_v29, %v1887_v49 }
 0x519   :  { %v1982_v16 = vcombine.high %v1966_v44, %v1966_v44  ;;  %2150 = vadd.xlane.f32.xlu0 %v4167_v19  ;;  %v2126_v18 = vadd.f32 %v2085_v21, %v1919_v60  ;;  %v2031_v61 = vcombine.high %v2015_v6, %v2015_v6  ;;  %v4175_v57 = vadd.f32 %v4156_v31, %v2122_v5 }
 0x51a   :  { %2152 = vadd.xlane.f32.xlu1 %v4170_v11  ;;  %v2049_v25 = vrot.slane %v1983_v9, %v3197_v28  ;;  %v2081_v42 = vrot.slane %v2032_v15, %v3197_v28  ;;  %v1984_v62 = vcombine.high %v1980_v54, %v1980_v54  ;;  %v2033_v4 = vcombine.high %v2029_v2, %v2029_v2 }
 0x51b   :  { %v4180_v50 = vadd.f32 %v4156_v31, %v2123_v3  ;;  %v2057_v49 = vrot.slane %v1980_v54, %v3197_v28  ;;  %v2089_v55 = vrot.slane %v2029_v2, %v3197_v28  ;;  %v2061_v34 = vrot.slane %v1982_v16, %v3197_v28 }
 0x51c   :  { %v2117_v36 = vadd.f32 %v4121_v41, %v2049_v25  ;;  %v2125_v60 = vadd.f32 %v4129_v32, %v2081_v42  ;;  %v2093_v43 = vrot.slane %v2031_v61, %v3197_v28  ;;  %v4192_v63 = vadd.f32 %v4156_v31, %v2116_v23 }
 0x51d   :  { %2166 = vadd.xlane.f32.xlu0 %v4175_v57  ;;  %v2119_v46 = vadd.f32 %v2057_v49, %v4127_v48  ;;  %v2127_v8 = vadd.f32 %v2089_v55, %v4135_v37  ;;  %v2120_v13 = vadd.f32 %v4123_v45, %v2061_v34  ;;  %v4197_v41 = vadd.f32 %v4156_v31, %v2124_v56 }
 0x51e   :  { %2168 = vadd.xlane.f32.xlu1 %v4180_v50  ;;  %v2128_v32 = vadd.f32 %v4131_v51, %v2093_v43  ;;  %v2065_v24 = vrot.slane %v1984_v62, %v3197_v28  ;;  %v2097_v0 = vrot.slane %v2033_v4, %v3197_v28  ;;  %v2198_v45 = vmul.f32 %v4167_v19, %v4167_v19 }
 0x51f   :  { %v2199_v37 = vmul.f32 %v4170_v11, %v4170_v11  ;;  %v4211_v51 = vadd.f32 %v4156_v31, %v2118_v53  ;;  %v4214_v28 = vadd.f32 %v4156_v31, %v2126_v18  ;;  %v2206_v30 = vmul.f32 %v4175_v57, %v4175_v57 }
 0x520   :  { %v2121_v48 = vadd.f32 %v4125_v40, %v2065_v24  ;;  %v2129_v44 = vadd.f32 %v4133_v58, %v2097_v0  ;;  %v4219_v40 = vadd.f32 %v4156_v31, %v2117_v36  ;;  %v4222_v58 = vadd.f32 %v4156_v31, %v2125_v60 }
 0x521   :  { %2154 = vadd.xlane.f32.xlu0 %v4192_v63  ;;  %v2207_v38 = vmul.f32 %v4180_v50, %v4180_v50  ;;  %v2200_v35 = vmul.f32 %v4192_v63, %v4192_v63  ;;  %v2208_v26 = vmul.f32 %v4197_v41, %v4197_v41  ;;  %v4235_v47 = vadd.f32 %v4156_v31, %v2119_v46 }
 0x522   :  { %2170 = vadd.xlane.f32.xlu1 %v4197_v41  ;;  %v4238_v7 = vadd.f32 %v4156_v31, %v2127_v8  ;;  %v4243_v17 = vadd.f32 %v4156_v31, %v2120_v13  ;;  %v4246_v1 = vadd.f32 %v4156_v31, %v2128_v32  ;;  %v2202_v39 = vmul.f32 %v4211_v51, %v4211_v51 }
 0x523   :  { %v2210_v6 = vmul.f32 %v4214_v28, %v4214_v28  ;;  %v2201_v29 = vmul.f32 %v4219_v40, %v4219_v40  ;;  %v2209_v14 = vmul.f32 %v4222_v58, %v4222_v58  ;;  %v4259_v59 = vadd.f32 %v4156_v31, %v2121_v48 }
 0x524   :  { %v4262_v52 = vadd.f32 %v4156_v31, %v2129_v44  ;;  %v2203_v54 = vmul.f32 %v4235_v47, %v4235_v47  ;;  %v2211_v9 = vmul.f32 %v4238_v7, %v4238_v7  ;;  %v2204_v21 = vmul.f32 %v4243_v17, %v4243_v17 }
 0x525   :  { %2214 = vadd.xlane.f32.xlu0 %v2198_v45  ;;  %v2212_v33 = vmul.f32 %v4246_v1, %v4246_v1  ;;  %v2205_v31 = vmul.f32 %v4259_v59, %v4259_v59 }
 0x526   :  { %2216 = vadd.xlane.f32.xlu1 %v2199_v37  ;;  %v2213_v2 = vmul.f32 %v4262_v52, %v4262_v52 }
 0x529   :  { %2158 = vadd.xlane.f32.xlu0 %v4211_v51 }
 0x52a   :  { %2174 = vadd.xlane.f32.xlu1 %v4214_v28 }
 0x52d   :  { %2156 = vadd.xlane.f32.xlu0 %v4219_v40 }
 0x52e   :  { %2172 = vadd.xlane.f32.xlu1 %v4222_v58 }
 0x531   :  { %2230 = vadd.xlane.f32.xlu0 %v2206_v30 }
 0x532   :  { %2232 = vadd.xlane.f32.xlu1 %v2207_v38 }
 0x535   :  { %2218 = vadd.xlane.f32.xlu0 %v2200_v35 }
 0x536   :  { %2234 = vadd.xlane.f32.xlu1 %v2208_v26 }
 0x539   :  { %2160 = vadd.xlane.f32.xlu0 %v4235_v47 }
 0x53a   :  { %2176 = vadd.xlane.f32.xlu1 %v4238_v7 }
 0x53d   :  { %2162 = vadd.xlane.f32.xlu0 %v4243_v17 }
 0x53e   :  { %2178 = vadd.xlane.f32.xlu1 %v4246_v1 }
 0x541   :  { %2222 = vadd.xlane.f32.xlu0 %v2202_v39 }
 0x542   :  { %2238 = vadd.xlane.f32.xlu1 %v2210_v6 }
 0x545   :  { %2220 = vadd.xlane.f32.xlu0 %v2201_v29 }
 0x546   :  { %2236 = vadd.xlane.f32.xlu1 %v2209_v14 }
 0x549   :  { %2164 = vadd.xlane.f32.xlu0 %v4259_v59 }
 0x54a   :  { %2180 = vadd.xlane.f32.xlu1 %v4262_v52 }
 0x54d   :  { %2224 = vadd.xlane.f32.xlu0 %v2203_v54 }
 0x54e   :  { %2240 = vadd.xlane.f32.xlu1 %v2211_v9 }
 0x551   :  { %2226 = vadd.xlane.f32.xlu0 %v2204_v21 }
 0x552   :  { %2242 = vadd.xlane.f32.xlu1 %v2212_v33 }
 0x555   :  { %2228 = vadd.xlane.f32.xlu0 %v2205_v31 }
 0x556   :  { %2244 = vadd.xlane.f32.xlu1 %v2213_v2  ;;  %v2376_v2 = vsub.s32 7, %v3194_v27 }
 0x5a6   :  { %v2151_v20 = vpop.xlane.xlu0 %2150 }
 0x5a7   :  { %v2153_v22 = vpop.xlane.xlu1 %2152  ;;  %v2182_v23 = vmul.f32 0.0078125, %v2151_v20 }
 0x5a8   :  { %v2183_v56 = vmul.f32 0.0078125, %v2153_v22 }
 0x5a9   :  { %v2262_v16 = vmul.f32 %v2182_v23, %v2182_v23 }
 0x5aa   :  { %v2167_v10 = vpop.xlane.xlu0 %2166  ;;  %v2263_v25 = vmul.f32 %v2183_v56, %v2183_v56 }
 0x5ab   :  { %v2169_v15 = vpop.xlane.xlu1 %2168  ;;  %v4278_v8 = vmul.f32 0.0078125, %v2167_v10 }
 0x5ac   :  { %v4282_v32 = vmul.f32 0.0078125, %v2169_v15 }
 0x5ad   :  { %v2270_v0 = vmul.f32 %v4278_v8, %v4278_v8 }
 0x5ae   :  { %v2155_v5 = vpop.xlane.xlu0 %2154  ;;  %v2271_v37 = vmul.f32 %v4282_v32, %v4282_v32 }
 0x5af   :  { %v2171_v3 = vpop.xlane.xlu1 %2170  ;;  %v4286_v48 = vmul.f32 0.0078125, %v2155_v5 }
 0x5b0   :  { %v4290_v30 = vmul.f32 0.0078125, %v2171_v3 }
 0x5b1   :  { %v2264_v6 = vmul.f32 %v4286_v48, %v4286_v48 }
 0x5b2   :  { %v2215_v53 = vpop.xlane.xlu0 %2214  ;;  %v2272_v9 = vmul.f32 %v4290_v30, %v4290_v30 }
 0x5b3   :  { %v2246_v18 = vmul.f32 0.0078125, %v2215_v53  ;;  %v2217_v61 = vpop.xlane.xlu1 %2216  ;;  %v2310_v53 = vsub.f32 %v4167_v19, %v2182_v23 }
 0x5b4   :  { %v2247_v42 = vmul.f32 0.0078125, %v2217_v61 }
 0x5b5   :  { %v2278_v62 = vsub.f32 %v2246_v18, %v2262_v16  ;;  %v2311_v16 = vsub.f32 %v4170_v11, %v2183_v56 }
 0x5b6   :  { %v2279_v4 = vsub.f32 %v2247_v42, %v2263_v25  ;;  %v2159_v49 = vpop.xlane.xlu0 %2158  ;;  %v4302_v42 = vrot.slane %v4153_v12, %v2376_v2  ;;  %v4317_v12 = vld [vmem:[%s4496_s6 + $0x8] ss:$0 sm:$0xff]  ;;  %s3056_s6 = smov [#allocation13]  }
 0x5b7   :  { %v2294_v36 = vmax.f32 %v2278_v62, 0.0  ;;  %v2175_v60 = vpop.xlane.xlu1 %2174  ;;  %s2567_s8 = sshll.u32 %s3056_s6, 4  ;;  %s2568_s8 = int_to_ptr.vmem [resolvable:$true] %s2567_s8 }
 0x5b8   :  { %v2295_v55 = vmax.f32 %v2279_v4, 0.0  ;;  %v4310_v11 = vmul.f32 0.0078125, %v2175_v60  ;;  %s3011_s9 = scalar_lea.vmem %s2568_s8, 512  ;;  %p3016_p7 = scmp.lt.s32.totalorder %s2568_s8, %s2568_s8 }
 0x5b9   :  { %v2326_v34 = vadd.f32 1e-05, %v2294_v36  ;;  %p3012_p6 = scmp.ne.s32.totalorder %s2568_s8, %s3011_s9  ;;  %p3017_p8 = scmp.lt.s32.totalorder %s3011_s9, %s3011_s9 }
 0x5ba   :  { %v2327_v46 = vadd.f32 1e-05, %v2295_v55  ;;  %v2157_v43 = vpop.xlane.xlu0 %2156  ;;  %v4306_v55 = vmul.f32 0.0078125, %v2159_v49 }
 0x5bb   :  { %2845 = vrsqrt.f32 %v2326_v34  ;;  %v4280_v13 = vpop.xlane.xlu1 %2172  ;;  %p3018_p9 = por %p3017_p8, %p3016_p7 }
 0x5bc   :  { %2847 = vrsqrt.f32 %v2327_v46  ;;  %v2266_v49 = vmul.f32 %v4306_v55, %v4306_v55 }
 0x5bd   :  { %p3019_p10 = pnand %p3018_p9, %p3012_p6 }
 0x5be   :  { %v2231_v24 = vpop.xlane.xlu0 %2230 }
 0x5bf   :  { %v2254_v44 = vmul.f32 0.0078125, %v2231_v24  ;;  %v2233_v45 = vpop.xlane.xlu1 %2232  ;;  %v4321_v24 = vmul.f32 0.0078125, %v2157_v43  ;;  %v2319_v43 = vsub.f32 %v4180_v50, %v4282_v32 }
 0x5c0   :  { %v2255_v38 = vmul.f32 0.0078125, %v2233_v45  ;;  %v2274_v45 = vmul.f32 %v4310_v11, %v4310_v11 }
 0x5c1   :  { %v2286_v35 = vsub.f32 %v2254_v44, %v2270_v0  ;;  %v2318_v44 = vsub.f32 %v4175_v57, %v4278_v8  ;;  %v2265_v57 = vmul.f32 %v4321_v24, %v4321_v24 }
 0x5c2   :  { %v2287_v26 = vsub.f32 %v2255_v38, %v2271_v37  ;;  %v2219_v39 = vpop.xlane.xlu0 %2218 }
 0x5c3   :  { %v2302_v29 = vmax.f32 %v2286_v35, 0.0  ;;  %v2248_v14 = vmul.f32 0.0078125, %v2219_v39  ;;  %v2235_v54 = vpop.xlane.xlu1 %2234 }
 0x5c4   :  { %v2303_v21 = vmax.f32 %v2287_v26, 0.0  ;;  %v2256_v33 = vmul.f32 0.0078125, %v2235_v54 }
 0x5c5   :  { %v2846_v31 = vpop.eup %2845  ;;  %v2334_v20 = vadd.f32 1e-05, %v2302_v29  ;;  %v2280_v22 = vsub.f32 %v2248_v14, %v2264_v6 }
 0x5c6   :  { %v2848_v10 = vpop.eup %2847  ;;  %v2335_v15 = vadd.f32 1e-05, %v2303_v21  ;;  %v2288_v5 = vsub.f32 %v2256_v33, %v2272_v9  ;;  %v2161_v3 = vpop.xlane.xlu0 %2160  ;;  %v2358_v27 = vmul.f32 %v2846_v31, %v2310_v53  ;;  %v4334_v33 = vmul.f32 0.0078125, %v4280_v13 }
 0x5c7   :  { %2849 = vrsqrt.f32 %v2334_v20  ;;  %v2296_v18 = vmax.f32 %v2280_v22, 0.0  ;;  %v4299_v61 = vpop.xlane.xlu1 %2176  ;;  %v2359_v62 = vmul.f32 %v2848_v10, %v2311_v16  ;;  %v2312_v53 = vsub.f32 %v4192_v63, %v4286_v48 }
 0x5c8   :  { %2851 = vrsqrt.f32 %v2335_v15  ;;  %v2304_v25 = vmax.f32 %v2288_v5, 0.0  ;;  %v2378_v23 = vmul.f32 %v4302_v42, %v2358_v27  ;;  %v2320_v16 = vsub.f32 %v4197_v41, %v4290_v30 }
 0x5c9   :  { %v2328_v4 = vadd.f32 1e-05, %v2296_v18  ;;  %v2379_v56 = vmul.f32 %v4302_v42, %v2359_v62  ;;  %v2314_v13 = vsub.f32 %v4211_v51, %v4306_v55  ;;  %v2273_v27 = vmul.f32 %v4334_v33, %v4334_v33 }
 0x5ca   :  { %v4304_v36 = vpop.xlane.xlu0 %2162  ;;  %v2336_v34 = vadd.f32 1e-05, %v2304_v25  ;;  %v2398_v35 = vadd.f32 %v4317_v12, %v2378_v23  ;;  %v2322_v41 = vsub.f32 %v4214_v28, %v4310_v11  ;;  %v2313_v48 = vsub.f32 %v4219_v40, %v4321_v24 }
 0x5cb   :  { %v4308_v19 = vpop.xlane.xlu1 %2178  ;;  %2853 = vrsqrt.f32 %v2328_v4  ;;  %v2399_v26 = vadd.f32 %v4317_v12, %v2379_v56  ;;  %v4346_v4 = vmul.f32 0.0078125, %v2161_v3  ;;  %v2321_v3 = vsub.f32 %v4222_v58, %v4334_v33 }
 0x5cc   :  { %2855 = vrsqrt.f32 %v2336_v34  ;;  %v2414_v20 = vmax.f32 %v2398_v35, 0.0 }
 0x5cd   :  { %v2415_v22 = vmax.f32 %v2399_v26, 0.0 }
 0x5ce   :  { %v2223_v46 = vpop.xlane.xlu0 %2222  ;;  %v2430_v56 = vrot.slane %v2414_v20, 4 }
 0x5cf   :  { %v2250_v0 = vmul.f32 0.0078125, %v2223_v46  ;;  %v2239_v60 = vpop.xlane.xlu1 %2238  ;;  %v2436_v46 = vrot.slane %v2415_v22, 4 }
 0x5d0   :  { %v2258_v37 = vmul.f32 0.0078125, %v2239_v60 }
 0x5d1   :  { %v2850_v38 = vpop.eup %2849  ;;  %v2282_v39 = vsub.f32 %v2250_v0, %v2266_v49 }
 0x5d2   :  { %v2852_v6 = vpop.eup %2851  ;;  %v2366_v29 = vmul.f32 %v2850_v38, %v2318_v44  ;;  %v2290_v14 = vsub.f32 %v2258_v37, %v2274_v45  ;;  %v2221_v54 = vpop.xlane.xlu0 %2220  ;;  %v4356_v44 = vmul.f32 0.0078125, %v4299_v61  ;;  %v4364_v61 = vmul.f32 0.0078125, %v4304_v36 }
 0x5d3   :  { %v2298_v8 = vmax.f32 %v2282_v39, 0.0  ;;  %v2249_v9 = vmul.f32 0.0078125, %v2221_v54  ;;  %v2237_v21 = vpop.xlane.xlu1 %2236  ;;  %v2367_v31 = vmul.f32 %v2852_v6, %v2319_v43  ;;  %v2431_v39 = vmax.f32 %v2414_v20, %v2430_v56 }
 0x5d4   :  { %v2306_v2 = vmax.f32 %v2290_v14, 0.0  ;;  %v2386_v50 = vmul.f32 %v4302_v42, %v2366_v29  ;;  %v2257_v32 = vmul.f32 0.0078125, %v2237_v21  ;;  %v2437_v6 = vmax.f32 %v2415_v22, %v2436_v46 }
 0x5d5   :  { %v2330_v10 = vadd.f32 1e-05, %v2298_v8  ;;  %v2281_v15 = vsub.f32 %v2249_v9, %v2265_v57  ;;  %v2854_v25 = vpop.eup %2853  ;;  %v2387_v62 = vmul.f32 %v4302_v42, %v2367_v31  ;;  %v2267_v43 = vmul.f32 %v4346_v4, %v4346_v4 }
 0x5d6   :  { %v2165_v5 = vpop.xlane.xlu0 %2164  ;;  %v2338_v34 = vadd.f32 1e-05, %v2306_v2  ;;  %v2856_v23 = vpop.eup %2855  ;;  %v2406_v30 = vadd.f32 %v4317_v12, %v2386_v50  ;;  %v2289_v49 = vsub.f32 %v2257_v32, %v2273_v27  ;;  %v2360_v60 = vmul.f32 %v2854_v25, %v2312_v53 }
 0x5d7   :  { %v2181_v18 = vpop.xlane.xlu1 %2180  ;;  %2857 = vrsqrt.f32 %v2330_v10  ;;  %v2297_v63 = vmax.f32 %v2281_v15, 0.0  ;;  %v2407_v38 = vadd.f32 %v4317_v12, %v2387_v62  ;;  %v2368_v35 = vmul.f32 %v2856_v23, %v2320_v16 }
 0x5d8   :  { %2859 = vrsqrt.f32 %v2338_v34  ;;  %v2305_v26 = vmax.f32 %v2289_v49, 0.0  ;;  %v2422_v29 = vmax.f32 %v2406_v30, 0.0  ;;  %v2315_v14 = vsub.f32 %v4235_v47, %v4346_v4 }
 0x5d9   :  { %v2329_v45 = vadd.f32 1e-05, %v2297_v63  ;;  %v2380_v57 = vmul.f32 %v4302_v42, %v2360_v60  ;;  %v2275_v8 = vmul.f32 %v4356_v44, %v4356_v44  ;;  %v4370_v9 = vmul.f32 0.0078125, %v4308_v19 }
 0x5da   :  { %v2225_v0 = vpop.xlane.xlu0 %2224  ;;  %v2337_v54 = vadd.f32 1e-05, %v2305_v26  ;;  %v2423_v2 = vmax.f32 %v2407_v38, 0.0  ;;  %v2388_v20 = vmul.f32 %v4302_v42, %v2368_v35  ;;  %v2432_v10 = vrot.slane %v2431_v39, 2 }
 0x5db   :  { %v2241_v37 = vpop.xlane.xlu1 %2240  ;;  %2861 = vrsqrt.f32 %v2329_v45  ;;  %v2251_v21 = vmul.f32 0.0078125, %v2225_v0  ;;  %v2438_v15 = vrot.slane %v2437_v6, 2  ;;  %v2323_v36 = vsub.f32 %v4238_v7, %v4356_v44 }
 0x5dc   :  { %2863 = vrsqrt.f32 %v2337_v54  ;;  %v2259_v22 = vmul.f32 0.0078125, %v2241_v37  ;;  %v2478_v53 = vrot.slane %v2422_v29, 4  ;;  %v2268_v16 = vmul.f32 %v4364_v61, %v4364_v61 }
 0x5dd   :  { %v2283_v50 = vsub.f32 %v2251_v21, %v2267_v43  ;;  %v4378_v62 = vadd.f32 %v4317_v12, %v2380_v57  ;;  %v2316_v34 = vsub.f32 %v4243_v17, %v4364_v61  ;;  %v4382_v23 = vmul.f32 0.0078125, %v2165_v5 }
 0x5de   :  { %v2227_v31 = vpop.xlane.xlu0 %2226  ;;  %v2291_v19 = vsub.f32 %v2259_v22, %v2275_v8  ;;  %v2484_v46 = vrot.slane %v2423_v2, 4  ;;  %v4385_v63 = vadd.f32 %v4317_v12, %v2388_v20  ;;  %v2276_v30 = vmul.f32 %v4370_v9, %v4370_v9 }
 0x5df   :  { %v2243_v32 = vpop.xlane.xlu1 %2242  ;;  %v2252_v25 = vmul.f32 0.0078125, %v2227_v31  ;;  %v2299_v56 = vmax.f32 %v2283_v50, 0.0  ;;  %v4389_v0 = vmax.f32 %v2431_v39, %v2432_v10  ;;  %v4391_v60 = vmax.f32 %v2437_v6, %v2438_v15 }
 0x5e0   :  { %v2307_v49 = vmax.f32 %v2291_v19, 0.0  ;;  %v4393_v45 = vmul.f32 0.0078125, %v2181_v18  ;;  %v2479_v35 = vmax.f32 %v2422_v29, %v2478_v53  ;;  %v2416_v57 = vmax.f32 %v4378_v62, 0.0 }
 0x5e1   :  { %v2858_v27 = vpop.eup %2857  ;;  %v2331_v37 = vadd.f32 1e-05, %v2299_v56  ;;  %v2284_v43 = vsub.f32 %v2252_v25, %v2268_v16  ;;  %v2269_v39 = vmul.f32 %v4382_v23, %v4382_v23  ;;  %v2260_v6 = vmul.f32 0.0078125, %v2243_v32 }
 0x5e2   :  { %v2860_v38 = vpop.eup %2859  ;;  %v2362_v5 = vmul.f32 %v2858_v27, %v2314_v13  ;;  %v2339_v26 = vadd.f32 1e-05, %v2307_v49  ;;  %v2229_v8 = vpop.xlane.xlu0 %2228  ;;  %v2485_v21 = vmax.f32 %v2423_v2, %v2484_v46  ;;  %v2424_v31 = vmax.f32 %v4385_v63, 0.0 }
 0x5e3   :  { %2865 = vrsqrt.f32 %v2331_v37  ;;  %v2245_v18 = vpop.xlane.xlu1 %2244  ;;  %v2370_v55 = vmul.f32 %v2860_v38, %v2322_v41  ;;  %v2277_v13 = vmul.f32 %v4393_v45, %v4393_v45  ;;  %v2300_v29 = vmax.f32 %v2284_v43, 0.0 }
 0x5e4   :  { %2867 = vrsqrt.f32 %v2339_v26  ;;  %v2292_v20 = vsub.f32 %v2260_v6, %v2276_v30  ;;  %v2382_v10 = vmul.f32 %v4302_v42, %v2362_v5  ;;  %v2253_v15 = vmul.f32 0.0078125, %v2229_v8 }
 0x5e5   :  { %v2862_v54 = vpop.eup %2861  ;;  %v2261_v50 = vmul.f32 0.0078125, %v2245_v18  ;;  %v2480_v32 = vrot.slane %v2479_v35, 2  ;;  %v2332_v24 = vadd.f32 1e-05, %v2300_v29  ;;  %v2442_v11 = vrot.slane %v2416_v57, 4 }
 0x5e6   :  { %v2361_v51 = vmul.f32 %v2862_v54, %v2313_v48  ;;  %v2864_v22 = vpop.eup %2863  ;;  %v2308_v28 = vmax.f32 %v2292_v20, 0.0  ;;  %v2285_v48 = vsub.f32 %v2253_v15, %v2269_v39  ;;  %v2390_v16 = vmul.f32 %v4302_v42, %v2370_v55 }
 0x5e7   :  { %v2369_v40 = vmul.f32 %v2864_v22, %v2321_v3  ;;  %v2293_v53 = vsub.f32 %v2261_v50, %v2277_v13  ;;  %2869 = vrsqrt.f32 %v2332_v24  ;;  %v2486_v27 = vrot.slane %v2485_v21, 2 }
 0x5e8   :  { %v2381_v2 = vmul.f32 %v4302_v42, %v2361_v51  ;;  %v2340_v25 = vadd.f32 1e-05, %v2308_v28  ;;  %v2402_v62 = vadd.f32 %v4317_v12, %v2382_v10  ;;  %v2301_v56 = vmax.f32 %v2285_v48, 0.0 }
 0x5e9   :  { %v2389_v19 = vmul.f32 %v4302_v42, %v2369_v40  ;;  %v2309_v46 = vmax.f32 %v2293_v53, 0.0  ;;  %v2434_v58 = vrot.slane %v4389_v0, 1  ;;  %v2440_v63 = vrot.slane %v4391_v60, 1 }
 0x5ea   :  { %v2401_v41 = vadd.f32 %v4317_v12, %v2381_v2  ;;  %2871 = vrsqrt.f32 %v2340_v25  ;;  %v2490_v30 = vrot.slane %v2424_v31, 4  ;;  %v2333_v49 = vadd.f32 1e-05, %v2301_v56 }
 0x5eb   :  { %v2409_v3 = vadd.f32 %v4317_v12, %v2389_v19  ;;  %v2341_v37 = vadd.f32 1e-05, %v2309_v46  ;;  %v2481_v5 = vmax.f32 %v2479_v35, %v2480_v32  ;;  %v2443_v26 = vmax.f32 %v2416_v57, %v2442_v11 }
 0x5ec   :  { %v2417_v33 = vmax.f32 %v2401_v41, 0.0  ;;  %v2410_v43 = vadd.f32 %v4317_v12, %v2390_v16  ;;  %v2487_v6 = vmax.f32 %v2485_v21, %v2486_v27  ;;  %v2418_v8 = vmax.f32 %v2402_v62, 0.0 }
 0x5ed   :  { %v2866_v38 = vpop.eup %2865  ;;  %v2425_v54 = vmax.f32 %v2409_v3, 0.0  ;;  %2873 = vrsqrt.f32 %v2333_v49  ;;  %v4430_v35 = vmax.f32 %v4389_v0, %v2434_v58  ;;  %v2491_v57 = vmax.f32 %v2424_v31, %v2490_v30 }
 0x5ee   :  { %v2868_v39 = vpop.eup %2867  ;;  %v2363_v18 = vmul.f32 %v2866_v38, %v2315_v14  ;;  %v2448_v51 = vrot.slane %v2417_v33, 4  ;;  %2875 = vrsqrt.f32 %v2341_v37  ;;  %v2324_v21 = vsub.f32 %v4246_v1, %v4370_v9 }
 0x5ef   :  { %v2496_v55 = vrot.slane %v2425_v54, 4  ;;  %v2371_v13 = vmul.f32 %v2868_v39, %v2323_v36  ;;  %v2482_v20 = vrot.slane %v2481_v5, 1  ;;  %v2444_v47 = vrot.slane %v2443_v26, 2 }
 0x5f0   :  { %v2383_v29 = vmul.f32 %v4302_v42, %v2363_v18  ;;  %v2426_v4 = vmax.f32 %v2410_v43, 0.0  ;;  %v4437_v22 = vmax.f32 %v4391_v60, %v2440_v63  ;;  %v2454_v7 = vrot.slane %v2418_v8, 4 }
 0x5f1   :  { %v2391_v14 = vmul.f32 %v4302_v42, %v2371_v13  ;;  %v2317_v44 = vsub.f32 %v4259_v59, %v4382_v23  ;;  %v2870_v0 = vpop.eup %2869  ;;  %v2488_v31 = vrot.slane %v2487_v6, 1  ;;  %v2449_v10 = vmax.f32 %v2417_v33, %v2448_v51 }
 0x5f2   :  { %v2403_v36 = vadd.f32 %v4317_v12, %v2383_v29  ;;  %v2497_v1 = vmax.f32 %v2425_v54, %v2496_v55  ;;  %v2492_v2 = vrot.slane %v2491_v57, 2  ;;  %v2325_v15 = vsub.f32 %v4262_v52, %v4393_v45 }
 0x5f3   :  { %v2411_v9 = vadd.f32 %v4317_v12, %v2391_v14  ;;  %v2364_v60 = vmul.f32 %v2870_v0, %v2316_v34  ;;  %v4448_v40 = vmax.f32 %v2481_v5, %v2482_v20  ;;  %v2445_v59 = vmax.f32 %v2443_v26, %v2444_v47 }
 0x5f4   :  { %v2419_v50 = vmax.f32 %v2403_v36, 0.0  ;;  %v2872_v32 = vpop.eup %2871  ;;  %v2502_v23 = vrot.slane %v2426_v4, 4  ;;  %v2455_v28 = vmax.f32 %v2418_v8, %v2454_v7  ;;  %v4451_v53 = vmax.f32 %v2487_v6, %v2488_v31 }
 0x5f5   :  { %v2427_v24 = vmax.f32 %v2411_v9, 0.0  ;;  %v2384_v41 = vmul.f32 %v4302_v42, %v2364_v60  ;;  %v2372_v48 = vmul.f32 %v2872_v32, %v2324_v21  ;;  %v2450_v16 = vrot.slane %v2449_v10, 2 }
 0x5f6   :  { %v2460_v11 = vrot.slane %v2419_v50, 4  ;;  %v2498_v52 = vrot.slane %v2497_v1, 2  ;;  %v2493_v25 = vmax.f32 %v2491_v57, %v2492_v2  ;;  %v2446_v62 = vrot.slane %v2445_v59, 1 }
 0x5f7   :  { %v2508_v45 = vrot.slane %v2427_v24, 4  ;;  %v2874_v19 = vpop.eup %2873  ;;  %v2404_v61 = vadd.f32 %v4317_v12, %v2384_v41  ;;  %v2392_v34 = vmul.f32 %v4302_v42, %v2372_v48  ;;  %v2503_v56 = vmax.f32 %v2426_v4, %v2502_v23 }
 0x5f8   :  { %v2461_v17 = vmax.f32 %v2419_v50, %v2460_v11  ;;  %v2876_v27 = vpop.eup %2875  ;;  %v2365_v58 = vmul.f32 %v2874_v19, %v2317_v44  ;;  %v2456_v33 = vrot.slane %v2455_v28, 2  ;;  %v2451_v49 = vmax.f32 %v2449_v10, %v2450_v16 }
 0x5f9   :  { %v2509_v46 = vmax.f32 %v2427_v24, %v2508_v45  ;;  %v2420_v3 = vmax.f32 %v2404_v61, 0.0  ;;  %v2412_v63 = vadd.f32 %v4317_v12, %v2392_v34  ;;  %v2373_v30 = vmul.f32 %v2876_v27, %v2325_v15 }
 0x5fa   :  { %v2499_v37 = vmax.f32 %v2497_v1, %v2498_v52  ;;  %v2462_v38 = vrot.slane %v2461_v17, 2  ;;  %v2385_v5 = vmul.f32 %v4302_v42, %v2365_v58  ;;  %v2447_v6 = vmax.f32 %v2445_v59, %v2446_v62 }
 0x5fb   :  { %v2510_v26 = vrot.slane %v2509_v46, 2  ;;  %v2466_v43 = vrot.slane %v2420_v3, 4  ;;  %v2428_v54 = vmax.f32 %v2412_v63, 0.0  ;;  %v2393_v39 = vmul.f32 %v4302_v42, %v2373_v30 }
 0x5fc   :  { %v2494_v8 = vrot.slane %v2493_v25, 1  ;;  %v2504_v18 = vrot.slane %v2503_v56, 2  ;;  %v2405_v51 = vadd.f32 %v4317_v12, %v2385_v5  ;;  %v2457_v55 = vmax.f32 %v2455_v28, %v2456_v33 }
 0x5fd   :  { %v2467_v13 = vmax.f32 %v2420_v3, %v2466_v43  ;;  %v2514_v57 = vrot.slane %v2428_v54, 4  ;;  %v2413_v21 = vadd.f32 %v4317_v12, %v2393_v39  ;;  %v2452_v29 = vrot.slane %v2451_v49, 1 }
 0x5fe   :  { %v2500_v20 = vrot.slane %v2499_v37, 1  ;;  %v2463_v47 = vmax.f32 %v2461_v17, %v2462_v38  ;;  %v2421_v4 = vmax.f32 %v2405_v51, 0.0  ;;  %v2511_v14 = vmax.f32 %v2509_v46, %v2510_v26 }
 0x5ff   :  { %v2468_v7 = vrot.slane %v2467_v13, 2  ;;  %v2515_v44 = vmax.f32 %v2428_v54, %v2514_v57  ;;  %v2429_v36 = vmax.f32 %v2413_v21, 0.0  ;;  %v2495_v0 = vmax.f32 %v2493_v25, %v2494_v8 }
 0x600   :  { %v2505_v42 = vmax.f32 %v2503_v56, %v2504_v18  ;;  %v2472_v31 = vrot.slane %v2421_v4, 4  ;;  %v2542_v10 = vsel %vm770_vm2, %v4437_v22, %v4430_v35  ;;  %v2458_v1 = vrot.slane %v2457_v55, 1 }
 0x601   :  { %v2469_v9 = vmax.f32 %v2467_v13, %v2468_v7  ;;  %v2516_v2 = vrot.slane %v2515_v44, 2  ;;  %v2520_v15 = vrot.slane %v2429_v36, 4  ;;  %v2453_v12 = vmax.f32 %v2451_v49, %v2452_v29 }
 0x602   :  { %v2501_v50 = vmax.f32 %v2499_v37, %v2500_v20  ;;  %v2464_v60 = vrot.slane %v2463_v47, 1  ;;  %v2473_v32 = vmax.f32 %v2421_v4, %v2472_v31  ;;  %v2512_v59 = vrot.slane %v2511_v14, 1 }
 0x603   :  { %v2517_v23 = vmax.f32 %v2515_v44, %v2516_v2  ;;  %v2521_v24 = vmax.f32 %v2429_v36, %v2520_v15  ;;  %v2470_v28 = vrot.slane %v2469_v9, 1  ;;  %v2506_v11 = vrot.slane %v2505_v42, 1 }
 0x604   :  { %v2474_v41 = vrot.slane %v2473_v32, 2  ;;  %v2543_v48 = vsel %vm772_vm3, %v2447_v6, %v2542_v10  ;;  %v2459_v16 = vmax.f32 %v2457_v55, %v2458_v1  ;;  %v2549_v35 = vsel %vm770_vm2, %v4451_v53, %v4448_v40 }
 0x605   :  { %v2522_v52 = vrot.slane %v2521_v24, 2  ;;  %v2518_v45 = vrot.slane %v2517_v23, 1  ;;  %v2465_v19 = vmax.f32 %v2463_v47, %v2464_v60  ;;  %v2544_v25 = vsel %vm774_vm4, %v2453_v12, %v2543_v48 }
 0x606   :  { %v2475_v22 = vmax.f32 %v2473_v32, %v2474_v41  ;;  %v2550_v17 = vsel %vm772_vm3, %v2495_v0, %v2549_v35  ;;  %v2471_v34 = vmax.f32 %v2469_v9, %v2470_v28  ;;  %v2513_v27 = vmax.f32 %v2511_v14, %v2512_v59 }
 0x607   :  { %v2523_v61 = vmax.f32 %v2521_v24, %v2522_v52  ;;  %v2551_v62 = vsel %vm774_vm4, %v2501_v50, %v2550_v17  ;;  %v2507_v56 = vmax.f32 %v2505_v42, %v2506_v11  ;;  %v2519_v58 = vmax.f32 %v2517_v23, %v2518_v45 }
 0x608   :  { %v2476_v46 = vrot.slane %v2475_v22, 1  ;;  %v2545_v3 = vsel %vm776_vm5, %v2459_v16, %v2544_v25 }
 0x609   :  { %v2524_v33 = vrot.slane %v2523_v61, 1  ;;  %v2546_v53 = vsel %vm778_vm6, %v2465_v19, %v2545_v3  ;;  %v2552_v63 = vsel %vm776_vm5, %v2507_v56, %v2551_v62 }
 0x60a   :  { %v2477_v40 = vmax.f32 %v2475_v22, %v2476_v46  ;;  %v2547_v49 = vsel %vm780_vm7, %v2471_v34, %v2546_v53  ;;  %v2553_v37 = vsel %vm778_vm6, %v2513_v27, %v2552_v63 }
 0x60b   :  { %v2525_v30 = vmax.f32 %v2523_v61, %v2524_v33  ;;  %v2554_v5 = vsel %vm780_vm7, %v2519_v58, %v2553_v37 }
 0x60c   :  { %v2548_v38 = vsel %vm782_vm8, %v2477_v40, %v2547_v49 }
 0x60d   :  { %v2555_v26 = vsel %vm782_vm8, %v2525_v30, %v2554_v5  ;;  %2558 = vst [vmem:[#allocation13] sm:$0xff] %v2548_v38  ;;  %2560 = vst [vmem:[#allocation13 + $0x8] sm:$0xff] %v2548_v38 }
 0x60e   :  { %2559 = vst [vmem:[#allocation13 + $0x10] sm:$0xff] %v2555_v26  ;;  %2561 = vst [vmem:[#allocation13 + $0x18] sm:$0xff] %v2555_v26 }
 0x60f   :  { %3022 = shalt.err (!%p3019_p10)
}
 0x610   :  { %s3023_s14 = scalar_lea.hbm %s4497_s7, 512 }
 0x611   :  { %p3024_p11 = scmp.ne.s32.totalorder %s4497_s7, %s3023_s14  ;;  %p3027_p12 = scmp.lt.u32.totalorder %s3023_s14, %s4497_s7 }
 0x613   :  { %p3029_p13 = pnand %p3027_p12, %p3024_p11 }
 0x615   :  { %3032 = shalt.err (!%p3029_p13)
}
 0x616   :  { %s3057_s17 = smov 256   ;;  %s3058_s19 = smov 16  }
 0x617   :  { %2573 = dma.vmem_to_hbm [thread:$0]  %s2568_s8, 512, %s4497_s7, [#allocation4], %s3057_s17, %s3057_s17, %s3058_s19  }
 0x618   :  { %3041 = dma.done.wait [#allocation4], 512  }
 0x619   :  { %3042 = vsyncadd [#allocation4], 4294966784 }
 0x61a   :  { %2577 = vsyncpa [#allocation3], 1 }
 0x61b   :  { %2578 = vsyncpa [#allocation6], 1 }
 0x61c   :  { %2579 = vsyncpa [#allocation9], 1 }
 0x61d   :  { %2580 = vsyncpa [#allocation12], 1 }
 0x61e   :  { %2581 = vsyncpa [#allocation4], 1 }

</bundles_post_ra>
